<compile_context>
chip_gen: v6e
topology: v6e:2x2x1
jax: 0.10.0
libtpu: 0.0.40
codegen_flags: <defaults>
</compile_context>

<pallas_src>
import functools
import math

import jax
import jax.numpy as jnp
from jax.experimental import pallas as pl
from jax.experimental.pallas import tpu as pltpu


# ----------------------------- small helpers -----------------------------

def _erf_approx(x):
    # Abramowitz & Stegun 7.1.26 rational approx of erf (|err| < 1.5e-7);
    # used to implement PyTorch's exact (erf-based) nn.GELU.
    a1, a2, a3, a4, a5 = 0.254829592, -0.284496736, 1.421413741, -1.453152027, 1.061405429
    p = 0.3275911
    s = jnp.where(x >= 0.0, 1.0, -1.0)
    ax = jnp.abs(x)
    t = 1.0 / (1.0 + p * ax)
    poly = ((((a5 * t + a4) * t + a3) * t + a2) * t + a1) * t
    return s * (1.0 - poly * jnp.exp(-ax * ax))


def _gelu_exact(x):
    return 0.5 * x * (1.0 + _erf_approx(x * 0.7071067811865476))


def _layernorm_f32(x, g, b, eps=1e-5):
    mu = jnp.mean(x, axis=-1, keepdims=True)
    var = jnp.mean(jnp.square(x - mu), axis=-1, keepdims=True)
    return (x - mu) * jax.lax.rsqrt(var + eps) * g + b


def _qkt(q, k):
    # q @ k.T without an explicit in-kernel transpose.
    return jax.lax.dot_general(q, k, (((1,), (1,)), ((), ())),
                               preferred_element_type=jnp.float32)


def _pick_row_tile(total, unit, preferred=256):
    """Largest row tile that divides `total`, contains whole `unit`-row windows,
    keeps the sublane dim 8-aligned, and is <= `preferred` (else full extent)."""
    step = (unit * 8) // math.gcd(unit, 8)      # lcm(unit, 8)
    best = None
    m = step
    limit = min(total, preferred)
    while m <= limit:
        if total % m == 0:
            best = m
        m += step
    return best if best is not None else total


def _const_spec(shape):
    # operand whose block index never changes (weights / biases / masks)
    return pl.BlockSpec(shape, lambda *_: (0,) * len(shape))


def _cparams():
    return pltpu.CompilerParams(
        dimension_semantics=("parallel",),
        vmem_limit_bytes=32 * 1024 * 1024)


# ----------------------------- Pallas kernels -----------------------------

def _win_attn_kernel(x_ref, g_ref, b_ref, wqkv_ref, bqkv_ref, bias_ref,
                     wp_ref, bp_ref, attn_out_ref, res_out_ref,
                     *, num_heads, scale):
    # x block: (TM, C) rows = WB whole windows. Fuses: norm1 -> QKV -> per-window
    # MHA (+rel bias, enforced via block-diagonal bias) -> proj -> shortcut add.
    x = x_ref[...].astype(jnp.float32)                        # (TM, C)
    TM, C = x.shape
    dh = C // num_heads
    xn = _layernorm_f32(x, g_ref[...], b_ref[...])
    qkv = jnp.dot(xn.astype(jnp.bfloat16), wqkv_ref[...],
                  preferred_element_type=jnp.float32) + bqkv_ref[...]   # (TM, 3C)
    q = qkv[:, :C] * scale
    k = qkv[:, C:2 * C]
    v = qkv[:, 2 * C:]
    wp = wp_ref[...]
    acc = jnp.zeros((TM, C), jnp.float32)
    for h in range(num_heads):                                # small static loop
        qh = q[:, h * dh:(h + 1) * dh].astype(jnp.bfloat16)
        kh = k[:, h * dh:(h + 1) * dh].astype(jnp.bfloat16)
        vh = v[:, h * dh:(h + 1) * dh].astype(jnp.bfloat16)
        att = _qkt(qh, kh) + bias_ref[h]                      # (TM, TM), block-diag valid
        att = jnp.exp(att - jnp.max(att, axis=-1, keepdims=True))
        att = att * pl.reciprocal(jnp.sum(att, axis=-1, keepdims=True), approx=True)
        oh = jnp.dot(att.astype(jnp.bfloat16), vh, preferred_element_type=jnp.float32)
        # head-concat + proj folded: o @ Wp == sum_h o_h @ Wp[h*dh:(h+1)*dh]
        acc = acc + jnp.dot(oh.astype(jnp.bfloat16), wp[h * dh:(h + 1) * dh, :],
                            preferred_element_type=jnp.float32)
    y = acc + bp_ref[...]
    attn_out_ref[...] = y.astype(attn_out_ref.dtype)
    res_out_ref[...] = (x + y).astype(res_out_ref.dtype)      # shortcut residual fused


def _cross_attn_kernel(x1_ref, x2_ref, wq_ref, bq_ref, wkv_ref, bkv_ref,
                       mask_ref, wp_ref, bp_ref, o_ref, *, num_heads, scale):
    # TODO(synk): SwinDAttention (deformable offsets, n_groups=3) is not defined in
    # the provided source; CVA cross-attention is realized as standard windowed MHA
    # with q(x1) and k/v(pre(x2)); the 'pre' linear is folded into wkv/bkv upstream.
    x1 = x1_ref[...].astype(jnp.float32)                      # (TM, C1)
    x2 = x2_ref[...].astype(jnp.bfloat16)                     # (TM, C2)
    q = jnp.dot(x1.astype(jnp.bfloat16), wq_ref[...],
                preferred_element_type=jnp.float32) + bq_ref[...]
    kv = jnp.dot(x2, wkv_ref[...], preferred_element_type=jnp.float32) + bkv_ref[...]
    TM, C = q.shape
    dh = C // num_heads
    q = q * scale
    k = kv[:, :C]
    v = kv[:, C:]
    wp = wp_ref[...]
    acc = jnp.zeros((TM, C), jnp.float32)
    for h in range(num_heads):
        qh = q[:, h * dh:(h + 1) * dh].astype(jnp.bfloat16)
        kh = k[:, h * dh:(h + 1) * dh].astype(jnp.bfloat16)
        vh = v[:, h * dh:(h + 1) * dh].astype(jnp.bfloat16)
        att = _qkt(qh, kh) + mask_ref[...]                    # block-diagonal mask
        att = jnp.exp(att - jnp.max(att, axis=-1, keepdims=True))
        att = att * pl.reciprocal(jnp.sum(att, axis=-1, keepdims=True), approx=True)
        oh = jnp.dot(att.astype(jnp.bfloat16), vh, preferred_element_type=jnp.float32)
        acc = acc + jnp.dot(oh.astype(jnp.bfloat16), wp[h * dh:(h + 1) * dh, :],
                            preferred_element_type=jnp.float32)
    y = acc + bp_ref[...]
    # CVAModule: returns x1 + drop_path(crossattn(x1, x2)); drop_path = Identity.
    o_ref[...] = (x1 + y).astype(o_ref.dtype)


def _mlp_kernel(x_ref, g_ref, b_ref, w1_ref, b1_ref, w2_ref, b2_ref, o_ref):
    # fused: x + MLP(norm2(x)); x block: (TM, C)
    x = x_ref[...].astype(jnp.float32)
    xn = _layernorm_f32(x, g_ref[...], b_ref[...])
    h = jnp.dot(xn.astype(jnp.bfloat16), w1_ref[...],
                preferred_element_type=jnp.float32) + b1_ref[...]
    h = _gelu_exact(h)
    y = jnp.dot(h.astype(jnp.bfloat16), w2_ref[...],
                preferred_element_type=jnp.float32) + b2_ref[...]
    o_ref[...] = (x + y).astype(o_ref.dtype)


def _add_mlp_kernel(x_ref, y_ref, g_ref, b_ref, w1_ref, b1_ref, w2_ref, b2_ref, o_ref):
    # fused: s = x + y (cross-attn residual); out = s + MLP(norm2(s))
    s = x_ref[...].astype(jnp.float32) + y_ref[...].astype(jnp.float32)
    xn = _layernorm_f32(s, g_ref[...], b_ref[...])
    h = jnp.dot(xn.astype(jnp.bfloat16), w1_ref[...],
                preferred_element_type=jnp.float32) + b1_ref[...]
    h = _gelu_exact(h)
    y = jnp.dot(h.astype(jnp.bfloat16), w2_ref[...],
                preferred_element_type=jnp.float32) + b2_ref[...]
    o_ref[...] = (s + y).astype(o_ref.dtype)


# ----------------------------- pallas_call wrappers -----------------------------

def window_attention_fused(x_win, ln_g, ln_b, wqkv, bqkv, rel_bias, wp, bp,
                           num_heads, row_tile=256):
    """Fused norm1 + window MHA(+rel bias) + proj + shortcut residual.
    Returns (attn_windows, (shortcut + attn)_windows), both (nW, N, C)."""
    nW, N, C = x_win.shape
    rows = nW * N
    tm = _pick_row_tile(rows, N, row_tile)
    wb = tm // N
    scale = float((C // num_heads) ** -0.5)
    # block-diagonal attention bias: rel-pos bias on diagonal window blocks,
    # -1e9 elsewhere so the per-window softmax is exact.
    wid = jnp.arange(tm) // N
    blk = wid[:, None] == wid[None, :]
    bias_full = jnp.where(blk[None], jnp.tile(rel_bias, (1, wb, wb)),
                          jnp.float32(-1e9)).astype(jnp.float32)
    x2d = x_win.reshape(rows, C)
    kern = functools.partial(_win_attn_kernel, num_heads=num_heads, scale=scale)
    attn2d, res2d = pl.pallas_call(
        kern,
        out_shape=(jax.ShapeDtypeStruct((rows, C), x_win.dtype),
                   jax.ShapeDtypeStruct((rows, C), x_win.dtype)),
        grid=(rows // tm,),
        in_specs=[
            pl.BlockSpec((tm, C), lambda i: (i, 0)),
            _const_spec((1, C)), _const_spec((1, C)),
            _const_spec((C, 3 * C)), _const_spec((1, 3 * C)),
            _const_spec((num_heads, tm, tm)),
            _const_spec((C, C)), _const_spec((1, C)),
        ],
        out_specs=(pl.BlockSpec((tm, C), lambda i: (i, 0)),
                   pl.BlockSpec((tm, C), lambda i: (i, 0))),
        compiler_params=_cparams(),
    )(x2d, ln_g.reshape(1, C), ln_b.reshape(1, C),
      wqkv.astype(jnp.bfloat16), bqkv.reshape(1, 3 * C),
      bias_full, wp.astype(jnp.bfloat16), bp.reshape(1, C))
    return attn2d.reshape(nW, N, C), res2d.reshape(nW, N, C)


def cross_attention_fused(x1_win, x2_win, wpre, bpre, wq, wk, wv, bq, bk, bv,
                          wp, bp, num_heads, row_tile=256):
    """CVA: returns x1_win + crossattn(x1_win, pre(x2_win)) windows, (nW, N, C1)."""
    nW, N, C1 = x1_win.shape
    nW2, N2, C2 = x2_win.shape
    assert nW2 == nW and N2 == N, "cross-attention assumes matching window grids"
    rows = nW * N
    tm = _pick_row_tile(rows, N, row_tile)
    scale = float((C1 // num_heads) ** -0.5)
    # fold the CVA 'pre' linear (C2 -> C1) into K/V:
    #   k = (x2 @ Wpre + bpre) @ Wk + bk = x2 @ (Wpre @ Wk) + (bpre @ Wk + bk)
    wkv = jnp.concatenate([wpre @ wk, wpre @ wv], axis=1)          # (C2, 2*C1)
    bkv = jnp.concatenate([bpre @ wk + bk, bpre @ wv + bv], axis=0)  # (2*C1,)
    wid = jnp.arange(tm) // N
    mask_bias = jnp.where(wid[:, None] == wid[None, :], 0.0, -1e9).astype(jnp.float32)
    x1_2d = x1_win.reshape(rows, C1)
    x2_2d = x2_win.reshape(rows, C2)
    kern = functools.partial(_cross_attn_kernel, num_heads=num_heads, scale=scale)
    y2d = pl.pallas_call(
        kern,
        out_shape=jax.ShapeDtypeStruct((rows, C1), x1_win.dtype),
        grid=(rows // tm,),
        in_specs=[
            pl.BlockSpec((tm, C1), lambda i: (i, 0)),
            pl.BlockSpec((tm, C2), lambda i: (i, 0)),
            _const_spec((C1, C1)), _const_spec((1, C1)),
            _const_spec((C2, 2 * C1)), _const_spec((1, 2 * C1)),
            _const_spec((tm, tm)),
            _const_spec((C1, C1)), _const_spec((1, C1)),
        ],
        out_specs=pl.BlockSpec((tm, C1), lambda i: (i, 0)),
        compiler_params=_cparams(),
    )(x1_2d, x2_2d,
      wq.astype(jnp.bfloat16), bq.reshape(1, C1),
      wkv.astype(jnp.bfloat16), bkv.reshape(1, 2 * C1),
      mask_bias, wp.astype(jnp.bfloat16), bp.reshape(1, C1))
    return y2d.reshape(nW, N, C1)


def mlp_residual(x, y_add, gamma, beta, w1, b1, w2, b2, row_tile=256):
    """Fused (x [+ y_add]) + MLP(norm2(x [+ y_add])), row-tiled over B*L."""
    B, L, C = x.shape
    Ch = w1.shape[1]
    rows = B * L
    tm = _pick_row_tile(rows, 1, row_tile)
    x2d = x.reshape(rows, C)
    consts = (gamma.reshape(1, C), beta.reshape(1, C),
              w1.astype(jnp.bfloat16), b1.reshape(1, Ch),
              w2.astype(jnp.bfloat16), b2.reshape(1, C))
    const_specs = [_const_spec((1, C)), _const_spec((1, C)),
                   _const_spec((C, Ch)), _const_spec((1, Ch)),
                   _const_spec((Ch, C)), _const_spec((1, C))]
    data_spec = pl.BlockSpec((tm, C), lambda i: (i, 0))
    if y_add is None:
        out2d = pl.pallas_call(
            _mlp_kernel,
            out_shape=jax.ShapeDtypeStruct((rows, C), x.dtype),
            grid=(rows // tm,),
            in_specs=[data_spec] + const_specs,
            out_specs=data_spec,
            compiler_params=_cparams(),
        )(x2d, *consts)
    else:
        out2d = pl.pallas_call(
            _add_mlp_kernel,
            out_shape=jax.ShapeDtypeStruct((rows, C), x.dtype),
            grid=(rows // tm,),
            in_specs=[data_spec, data_spec] + const_specs,
            out_specs=data_spec,
            compiler_params=_cparams(),
        )(x2d, y_add.reshape(rows, C), *consts)
    return out2d.reshape(B, L, C)


# ----------------------------- JAX glue -----------------------------

def window_partition(x, ws):
    # x: (B, H, W, C) -> (B * nH * nW, ws, ws, C)
    B, H, W, C = x.shape
    x = x.reshape(B, H // ws, ws, W // ws, ws, C)
    return x.transpose(0, 1, 3, 2, 4, 5).reshape(-1, ws, ws, C)


def window_reverse(windows, ws, H, W):
    B = windows.shape[0] // (H * W // ws // ws)
    x = windows.reshape(B, H // ws, W // ws, ws, ws, -1)
    return x.transpose(0, 1, 3, 2, 4, 5).reshape(B, H, W, -1)


def relative_position_index(ws):
    coords = jnp.stack(jnp.meshgrid(jnp.arange(ws), jnp.arange(ws), indexing="ij"))
    coords_flat = coords.reshape(2, -1)
    rel = coords_flat[:, :, None] - coords_flat[:, None, :]
    rel = rel.transpose(1, 2, 0) + (ws - 1)
    return rel[..., 0] * (2 * ws - 1) + rel[..., 1]                 # (N, N)


def trunc_normal(key, shape, std=0.02):
    return (std * jax.random.truncated_normal(key, -2.0, 2.0, shape)).astype(jnp.float32)


def init_block_params(key, dim1, dim2, num_heads, window_size, mlp_ratio, last_view):
    ks = iter(jax.random.split(key, 16))
    p = {}
    p["norm1_g"] = jnp.ones((dim1,), jnp.float32)
    p["norm1_b"] = jnp.zeros((dim1,), jnp.float32)
    p["attn_wqkv"] = trunc_normal(next(ks), (dim1, 3 * dim1))       # fused QKV
    p["attn_bqkv"] = jnp.zeros((3 * dim1,), jnp.float32)
    p["attn_rel_table"] = trunc_normal(next(ks), ((2 * window_size - 1) ** 2, num_heads))
    p["attn_wp"] = trunc_normal(next(ks), (dim1, dim1))
    p["attn_bp"] = jnp.zeros((dim1,), jnp.float32)
    p["norm2_g"] = jnp.ones((dim1,), jnp.float32)
    p["norm2_b"] = jnp.zeros((dim1,), jnp.float32)
    hidden = int(dim1 * mlp_ratio)
    p["mlp_w1"] = trunc_normal(next(ks), (dim1, hidden))
    p["mlp_b1"] = jnp.zeros((hidden,), jnp.float32)
    p["mlp_w2"] = trunc_normal(next(ks), (hidden, dim1))
    p["mlp_b2"] = jnp.zeros((dim1,), jnp.float32)
    if not last_view:
        p["pre_w"] = trunc_normal(next(ks), (dim2, dim1))
        p["pre_b"] = jnp.zeros((dim1,), jnp.float32)
        p["cva_wq"] = trunc_normal(next(ks), (dim1, dim1))
        p["cva_wk"] = trunc_normal(next(ks), (dim1, dim1))
        p["cva_wv"] = trunc_normal(next(ks), (dim1, dim1))
        p["cva_bq"] = jnp.zeros((dim1,), jnp.float32)
        p["cva_bk"] = jnp.zeros((dim1,), jnp.float32)
        p["cva_bv"] = jnp.zeros((dim1,), jnp.float32)
        p["cva_wp"] = trunc_normal(next(ks), (dim1, dim1))
        p["cva_bp"] = jnp.zeros((dim1,), jnp.float32)
    return p


def cross_swin_block_forward(p, x1, x2, *, input_resolution, num_heads, window_size, last_view):
    H, W = input_resolution
    ws = min(window_size, min(input_resolution))      # mirrors window-size clamp in __init__
    B1, L1, C1 = x1.shape
    T1 = L1 // (H * W)
    N = ws * ws

    # relative position bias (num_heads, N, N), gathered in glue
    idx = relative_position_index(ws).reshape(-1)
    rel_bias = p["attn_rel_table"][idx].reshape(N, N, num_heads).transpose(2, 0, 1)

    # fused kernel #1: norm1 + window MHA + proj + shortcut residual (two outputs)
    x1_windows = window_partition(x1.reshape(B1, T1 * H, W, C1), ws).reshape(-1, N, C1)
    attn_win, res_win = window_attention_fused(
        x1_windows, p["norm1_g"], p["norm1_b"],
        p["attn_wqkv"], p["attn_bqkv"], rel_bias, p["attn_wp"], p["attn_bp"], num_heads)
    out = window_reverse(attn_win.reshape(-1, ws, ws, C1), ws, T1 * H, W).reshape(B1, L1, C1)
    x1_res = window_reverse(res_win.reshape(-1, ws, ws, C1), ws, T1 * H, W).reshape(B1, L1, C1)

    y = None
    if not last_view:
        B2, L2, C2 = x2.shape
        T2 = L2 // (H * W)
        x2_windows = window_partition(x2.reshape(B2, T2 * H, W, C2), ws).reshape(-1, N, C2)
        # res_win == window_partition(shortcut + attn) -> reused as CVA queries,
        # so the second window_partition of x1 is skipped entirely.
        y_win = cross_attention_fused(
            res_win, x2_windows, p["pre_w"], p["pre_b"],
            p["cva_wq"], p["cva_wk"], p["cva_wv"],
            p["cva_bq"], p["cva_bk"], p["cva_bv"],
            p["cva_wp"], p["cva_bp"], num_heads)
        # reference: rearrange '(b n) ws c -> b (n ws) c' (plain reshape, window order)
        y = y_win.reshape(B1, -1, C1)

    # fused kernel #3: (x1_res [+ y]) + MLP(norm2(x1_res [+ y]))
    x1_new = mlp_residual(x1_res, y, p["norm2_g"], p["norm2_b"],
                          p["mlp_w1"], p["mlp_b1"], p["mlp_w2"], p["mlp_b2"])
    return x1_new, out


def cross_multiple_view_swin_block_forward(block_params, block_cfgs, x_list):
    n = len(block_params)
    x = list(x_list)
    out = x[n - 1]
    for idx in range(n):
        i = n - 1 - idx
        x[i], out = cross_swin_block_forward(block_params[i], x[i], out, **block_cfgs[i])
    return x


# ----------------------------- demo -----------------------------

if __name__ == "__main__":
    key = jax.random.PRNGKey(0)
    B = 2
    H = W = 8
    window_size = 4
    num_views = 2
    mlp_ratio = 4.0
    view_configs = [
        dict(hidden_size=32, num_heads=4, window_size=window_size, temporal_ratio=1),
        dict(hidden_size=48, num_heads=4, window_size=window_size, temporal_ratio=1),
    ]

    k_param, k_x = jax.random.split(key)
    pkeys = jax.random.split(k_param, num_views)
    xkeys = jax.random.split(k_x, num_views)

    block_params, block_cfgs, x_list = [], [], []
    for i in range(num_views):
        last_view = (i == num_views - 1)
        dim1 = view_configs[i]["hidden_size"]
        dim2 = view_configs[i + 1]["hidden_size"] if not last_view else dim1
        block_params.append(init_block_params(
            pkeys[i], dim1, dim2, view_configs[i]["num_heads"],
            window_size, mlp_ratio, last_view))
        block_cfgs.append(dict(input_resolution=(H, W),
                               num_heads=view_configs[i]["num_heads"],
                               window_size=window_size,
                               last_view=last_view))
        T = view_configs[i]["temporal_ratio"]
        x_list.append(jax.random.normal(xkeys[i], (B, T * H * W, dim1), jnp.float32))

    y = cross_multiple_view_swin_block_forward(block_params, block_cfgs, x_list)
    y = jax.block_until_ready(y)
    assert y[0].shape == (B, H * W, 32) and y[1].shape == (B, H * W, 48)
    assert all(bool(jnp.all(jnp.isfinite(t))) for t in y)
    print("KERNEL_OK")
</pallas_src>

<mosaic_0001>
module attributes {stable_mosaic.version = 11 : i64} {
  func.func @_win_attn_kernel(%arg0: i32, %arg1: memref<128x48xf32, #tpu.memory_space<vmem>>, %arg2: memref<1x48xf32, #tpu.memory_space<vmem>>, %arg3: memref<1x48xf32, #tpu.memory_space<vmem>>, %arg4: memref<48x144xbf16, #tpu.memory_space<vmem>>, %arg5: memref<1x144xf32, #tpu.memory_space<vmem>>, %arg6: memref<4x128x128xf32, #tpu.memory_space<vmem>>, %arg7: memref<48x48xbf16, #tpu.memory_space<vmem>>, %arg8: memref<1x48xf32, #tpu.memory_space<vmem>>, %arg9: memref<128x48xf32, #tpu.memory_space<vmem>>, %arg10: memref<128x48xf32, #tpu.memory_space<vmem>>) attributes {dimension_semantics = [#tpu.dimension_semantics<parallel>], iteration_bounds = array<i64: 1>, scalar_prefetch = 0 : i64, scratch_operands = 0 : i64, tpu.core_type = #tpu.core_type<tc>, window_params = [{transform_indices = @transform_0, window_bounds = array<i64: 128, 48>}, {pipeline_mode = #tpu.pipeline_mode<synchronous>, transform_indices = @transform_1, window_bounds = array<i64: 1, 48>}, {pipeline_mode = #tpu.pipeline_mode<synchronous>, transform_indices = @transform_2, window_bounds = array<i64: 1, 48>}, {pipeline_mode = #tpu.pipeline_mode<synchronous>, transform_indices = @transform_3, window_bounds = array<i64: 48, 144>}, {pipeline_mode = #tpu.pipeline_mode<synchronous>, transform_indices = @transform_4, window_bounds = array<i64: 1, 144>}, {pipeline_mode = #tpu.pipeline_mode<synchronous>, transform_indices = @transform_5, window_bounds = array<i64: 4, 128, 128>}, {pipeline_mode = #tpu.pipeline_mode<synchronous>, transform_indices = @transform_6, window_bounds = array<i64: 48, 48>}, {pipeline_mode = #tpu.pipeline_mode<synchronous>, transform_indices = @transform_7, window_bounds = array<i64: 1, 48>}, {transform_indices = @transform_8, window_bounds = array<i64: 128, 48>}, {transform_indices = @transform_9, window_bounds = array<i64: 128, 48>}]} {
    %c0 = arith.constant 0 : index
    %c0_0 = arith.constant 0 : index
    %0 = vector.load %arg1[%c0, %c0_0] : memref<128x48xf32, #tpu.memory_space<vmem>>, vector<128x48xf32>
    %c0_1 = arith.constant 0 : index
    %c0_2 = arith.constant 0 : index
    %1 = vector.load %arg2[%c0_1, %c0_2] : memref<1x48xf32, #tpu.memory_space<vmem>>, vector<1x48xf32>
    %c0_3 = arith.constant 0 : index
    %c0_4 = arith.constant 0 : index
    %2 = vector.load %arg3[%c0_3, %c0_4] : memref<1x48xf32, #tpu.memory_space<vmem>>, vector<1x48xf32>
    %cst = arith.constant dense<0.000000e+00> : vector<128xf32>
    %3 = vector.multi_reduction <add>, %0, %cst [1] : vector<128x48xf32> to vector<128xf32>
    %4 = vector.shape_cast %3 : vector<128xf32> to vector<128x1xf32>
    %cst_5 = arith.constant 4.800000e+01 : f32
    %5 = vector.broadcast %cst_5 : f32 to vector<128x1xf32>
    %6 = arith.divf %4, %5 : vector<128x1xf32>
    %7 = vector.broadcast %6 : vector<128x1xf32> to vector<128x48xf32>
    %8 = arith.subf %0, %7 : vector<128x48xf32>
    %9 = arith.mulf %8, %8 : vector<128x48xf32>
    %cst_6 = arith.constant dense<0.000000e+00> : vector<128xf32>
    %10 = vector.multi_reduction <add>, %9, %cst_6 [1] : vector<128x48xf32> to vector<128xf32>
    %11 = vector.shape_cast %10 : vector<128xf32> to vector<128x1xf32>
    %cst_7 = arith.constant 4.800000e+01 : f32
    %12 = vector.broadcast %cst_7 : f32 to vector<128x1xf32>
    %13 = arith.divf %11, %12 : vector<128x1xf32>
    %14 = vector.broadcast %6 : vector<128x1xf32> to vector<128x48xf32>
    %15 = arith.subf %0, %14 : vector<128x48xf32>
    %cst_8 = arith.constant 9.99999974E-6 : f32
    %16 = vector.broadcast %cst_8 : f32 to vector<128x1xf32>
    %17 = arith.addf %13, %16 : vector<128x1xf32>
    %18 = math.rsqrt %17 : vector<128x1xf32>
    %19 = vector.broadcast %18 : vector<128x1xf32> to vector<128x48xf32>
    %20 = arith.mulf %15, %19 : vector<128x48xf32>
    %21 = vector.broadcast %1 : vector<1x48xf32> to vector<128x48xf32>
    %22 = arith.mulf %20, %21 : vector<128x48xf32>
    %23 = vector.broadcast %2 : vector<1x48xf32> to vector<128x48xf32>
    %24 = arith.addf %22, %23 : vector<128x48xf32>
    %25 = arith.truncf %24 : vector<128x48xf32> to vector<128x48xbf16>
    %c0_9 = arith.constant 0 : index
    %c0_10 = arith.constant 0 : index
    %26 = vector.load %arg4[%c0_9, %c0_10] : memref<48x144xbf16, #tpu.memory_space<vmem>>, vector<48x144xbf16>
    %cst_11 = arith.constant dense<0.000000e+00> : vector<128x144xf32>
    %27 = tpu.matmul %25, %26, %cst_11 {dimension_numbers = #tpu.dot_dimension_numbers<[1], [0], [0], [1], [0, 0, 1, 1], [], []>} : vector<128x48xbf16>, vector<48x144xbf16>, vector<128x144xf32> -> vector<128x144xf32>
    %c0_12 = arith.constant 0 : index
    %c0_13 = arith.constant 0 : index
    %28 = vector.load %arg5[%c0_12, %c0_13] : memref<1x144xf32, #tpu.memory_space<vmem>>, vector<1x144xf32>
    %29 = vector.broadcast %28 : vector<1x144xf32> to vector<128x144xf32>
    %30 = arith.addf %27, %29 : vector<128x144xf32>
    %31 = vector.extract_strided_slice %30 {offsets = [0, 0], sizes = [128, 48], strides = [1, 1]} : vector<128x144xf32> to vector<128x48xf32>
    %cst_14 = arith.constant 0.288675129 : f32
    %32 = vector.broadcast %cst_14 : f32 to vector<128x48xf32>
    %33 = arith.mulf %31, %32 : vector<128x48xf32>
    %34 = vector.extract_strided_slice %30 {offsets = [0, 48], sizes = [128, 48], strides = [1, 1]} : vector<128x144xf32> to vector<128x48xf32>
    %35 = vector.extract_strided_slice %30 {offsets = [0, 96], sizes = [128, 48], strides = [1, 1]} : vector<128x144xf32> to vector<128x48xf32>
    %c0_15 = arith.constant 0 : index
    %c0_16 = arith.constant 0 : index
    %36 = vector.load %arg7[%c0_15, %c0_16] : memref<48x48xbf16, #tpu.memory_space<vmem>>, vector<48x48xbf16>
    %cst_17 = arith.constant 0.000000e+00 : f32
    %37 = vector.broadcast %cst_17 : f32 to vector<128x48xf32>
    %38 = vector.extract_strided_slice %33 {offsets = [0, 0], sizes = [128, 12], strides = [1, 1]} : vector<128x48xf32> to vector<128x12xf32>
    %39 = arith.truncf %38 : vector<128x12xf32> to vector<128x12xbf16>
    %40 = vector.extract_strided_slice %34 {offsets = [0, 0], sizes = [128, 12], strides = [1, 1]} : vector<128x48xf32> to vector<128x12xf32>
    %41 = arith.truncf %40 : vector<128x12xf32> to vector<128x12xbf16>
    %42 = vector.extract_strided_slice %35 {offsets = [0, 0], sizes = [128, 12], strides = [1, 1]} : vector<128x48xf32> to vector<128x12xf32>
    %43 = arith.truncf %42 : vector<128x12xf32> to vector<128x12xbf16>
    %cst_18 = arith.constant dense<0.000000e+00> : vector<128x128xf32>
    %44 = tpu.matmul %39, %41, %cst_18 {dimension_numbers = #tpu.dot_dimension_numbers<[1], [1], [0], [0], [0, 0, 1, 0], [], []>} : vector<128x12xbf16>, vector<128x12xbf16>, vector<128x128xf32> -> vector<128x128xf32>
    %c0_19 = arith.constant 0 : index
    %c0_20 = arith.constant 0 : index
    %c0_21 = arith.constant 0 : index
    %45 = vector.load %arg6[%c0_19, %c0_20, %c0_21] : memref<4x128x128xf32, #tpu.memory_space<vmem>>, vector<1x128x128xf32>
    %46 = vector.shape_cast %45 : vector<1x128x128xf32> to vector<128x128xf32>
    %47 = arith.addf %44, %46 : vector<128x128xf32>
    %cst_22 = arith.constant dense<0xFF800000> : vector<128xf32>
    %48 = vector.multi_reduction <maximumf>, %47, %cst_22 [1] : vector<128x128xf32> to vector<128xf32>
    %49 = vector.shape_cast %48 : vector<128xf32> to vector<128x1xf32>
    %50 = vector.broadcast %49 : vector<128x1xf32> to vector<128x128xf32>
    %51 = arith.subf %47, %50 : vector<128x128xf32>
    %52 = math.exp %51 : vector<128x128xf32>
    %cst_23 = arith.constant dense<0.000000e+00> : vector<128xf32>
    %53 = vector.multi_reduction <add>, %52, %cst_23 [1] : vector<128x128xf32> to vector<128xf32>
    %54 = vector.shape_cast %53 : vector<128xf32> to vector<128x1xf32>
    %55 = tpu.reciprocal %54 {approx = true} : vector<128x1xf32> -> vector<128x1xf32>
    %56 = vector.broadcast %55 : vector<128x1xf32> to vector<128x128xf32>
    %57 = arith.mulf %52, %56 : vector<128x128xf32>
    %58 = arith.truncf %57 : vector<128x128xf32> to vector<128x128xbf16>
    %cst_24 = arith.constant dense<0.000000e+00> : vector<128x12xf32>
    %59 = tpu.matmul %58, %43, %cst_24 {dimension_numbers = #tpu.dot_dimension_numbers<[1], [0], [0], [1], [0, 0, 1, 1], [], []>} : vector<128x128xbf16>, vector<128x12xbf16>, vector<128x12xf32> -> vector<128x12xf32>
    %60 = arith.truncf %59 : vector<128x12xf32> to vector<128x12xbf16>
    %61 = vector.extract_strided_slice %36 {offsets = [0, 0], sizes = [12, 48], strides = [1, 1]} : vector<48x48xbf16> to vector<12x48xbf16>
    %cst_25 = arith.constant dense<0.000000e+00> : vector<128x48xf32>
    %62 = tpu.matmul %60, %61, %cst_25 {dimension_numbers = #tpu.dot_dimension_numbers<[1], [0], [0], [1], [0, 0, 1, 1], [], []>} : vector<128x12xbf16>, vector<12x48xbf16>, vector<128x48xf32> -> vector<128x48xf32>
    %63 = arith.addf %37, %62 : vector<128x48xf32>
    %64 = vector.extract_strided_slice %33 {offsets = [0, 12], sizes = [128, 12], strides = [1, 1]} : vector<128x48xf32> to vector<128x12xf32>
    %65 = arith.truncf %64 : vector<128x12xf32> to vector<128x12xbf16>
    %66 = vector.extract_strided_slice %34 {offsets = [0, 12], sizes = [128, 12], strides = [1, 1]} : vector<128x48xf32> to vector<128x12xf32>
    %67 = arith.truncf %66 : vector<128x12xf32> to vector<128x12xbf16>
    %68 = vector.extract_strided_slice %35 {offsets = [0, 12], sizes = [128, 12], strides = [1, 1]} : vector<128x48xf32> to vector<128x12xf32>
    %69 = arith.truncf %68 : vector<128x12xf32> to vector<128x12xbf16>
    %cst_26 = arith.constant dense<0.000000e+00> : vector<128x128xf32>
    %70 = tpu.matmul %65, %67, %cst_26 {dimension_numbers = #tpu.dot_dimension_numbers<[1], [1], [0], [0], [0, 0, 1, 0], [], []>} : vector<128x12xbf16>, vector<128x12xbf16>, vector<128x128xf32> -> vector<128x128xf32>
    %c1 = arith.constant 1 : index
    %c0_27 = arith.constant 0 : index
    %c0_28 = arith.constant 0 : index
    %71 = vector.load %arg6[%c1, %c0_27, %c0_28] : memref<4x128x128xf32, #tpu.memory_space<vmem>>, vector<1x128x128xf32>
    %72 = vector.shape_cast %71 : vector<1x128x128xf32> to vector<128x128xf32>
    %73 = arith.addf %70, %72 : vector<128x128xf32>
    %cst_29 = arith.constant dense<0xFF800000> : vector<128xf32>
    %74 = vector.multi_reduction <maximumf>, %73, %cst_29 [1] : vector<128x128xf32> to vector<128xf32>
    %75 = vector.shape_cast %74 : vector<128xf32> to vector<128x1xf32>
    %76 = vector.broadcast %75 : vector<128x1xf32> to vector<128x128xf32>
    %77 = arith.subf %73, %76 : vector<128x128xf32>
    %78 = math.exp %77 : vector<128x128xf32>
    %cst_30 = arith.constant dense<0.000000e+00> : vector<128xf32>
    %79 = vector.multi_reduction <add>, %78, %cst_30 [1] : vector<128x128xf32> to vector<128xf32>
    %80 = vector.shape_cast %79 : vector<128xf32> to vector<128x1xf32>
    %81 = tpu.reciprocal %80 {approx = true} : vector<128x1xf32> -> vector<128x1xf32>
    %82 = vector.broadcast %81 : vector<128x1xf32> to vector<128x128xf32>
    %83 = arith.mulf %78, %82 : vector<128x128xf32>
    %84 = arith.truncf %83 : vector<128x128xf32> to vector<128x128xbf16>
    %cst_31 = arith.constant dense<0.000000e+00> : vector<128x12xf32>
    %85 = tpu.matmul %84, %69, %cst_31 {dimension_numbers = #tpu.dot_dimension_numbers<[1], [0], [0], [1], [0, 0, 1, 1], [], []>} : vector<128x128xbf16>, vector<128x12xbf16>, vector<128x12xf32> -> vector<128x12xf32>
    %86 = arith.truncf %85 : vector<128x12xf32> to vector<128x12xbf16>
    %87 = vector.extract_strided_slice %36 {offsets = [12, 0], sizes = [12, 48], strides = [1, 1]} : vector<48x48xbf16> to vector<12x48xbf16>
    %cst_32 = arith.constant dense<0.000000e+00> : vector<128x48xf32>
    %88 = tpu.matmul %86, %87, %cst_32 {dimension_numbers = #tpu.dot_dimension_numbers<[1], [0], [0], [1], [0, 0, 1, 1], [], []>} : vector<128x12xbf16>, vector<12x48xbf16>, vector<128x48xf32> -> vector<128x48xf32>
    %89 = arith.addf %63, %88 : vector<128x48xf32>
    %90 = vector.extract_strided_slice %33 {offsets = [0, 24], sizes = [128, 12], strides = [1, 1]} : vector<128x48xf32> to vector<128x12xf32>
    %91 = arith.truncf %90 : vector<128x12xf32> to vector<128x12xbf16>
    %92 = vector.extract_strided_slice %34 {offsets = [0, 24], sizes = [128, 12], strides = [1, 1]} : vector<128x48xf32> to vector<128x12xf32>
    %93 = arith.truncf %92 : vector<128x12xf32> to vector<128x12xbf16>
    %94 = vector.extract_strided_slice %35 {offsets = [0, 24], sizes = [128, 12], strides = [1, 1]} : vector<128x48xf32> to vector<128x12xf32>
    %95 = arith.truncf %94 : vector<128x12xf32> to vector<128x12xbf16>
    %cst_33 = arith.constant dense<0.000000e+00> : vector<128x128xf32>
    %96 = tpu.matmul %91, %93, %cst_33 {dimension_numbers = #tpu.dot_dimension_numbers<[1], [1], [0], [0], [0, 0, 1, 0], [], []>} : vector<128x12xbf16>, vector<128x12xbf16>, vector<128x128xf32> -> vector<128x128xf32>
    %c2 = arith.constant 2 : index
    %c0_34 = arith.constant 0 : index
    %c0_35 = arith.constant 0 : index
    %97 = vector.load %arg6[%c2, %c0_34, %c0_35] : memref<4x128x128xf32, #tpu.memory_space<vmem>>, vector<1x128x128xf32>
    %98 = vector.shape_cast %97 : vector<1x128x128xf32> to vector<128x128xf32>
    %99 = arith.addf %96, %98 : vector<128x128xf32>
    %cst_36 = arith.constant dense<0xFF800000> : vector<128xf32>
    %100 = vector.multi_reduction <maximumf>, %99, %cst_36 [1] : vector<128x128xf32> to vector<128xf32>
    %101 = vector.shape_cast %100 : vector<128xf32> to vector<128x1xf32>
    %102 = vector.broadcast %101 : vector<128x1xf32> to vector<128x128xf32>
    %103 = arith.subf %99, %102 : vector<128x128xf32>
    %104 = math.exp %103 : vector<128x128xf32>
    %cst_37 = arith.constant dense<0.000000e+00> : vector<128xf32>
    %105 = vector.multi_reduction <add>, %104, %cst_37 [1] : vector<128x128xf32> to vector<128xf32>
    %106 = vector.shape_cast %105 : vector<128xf32> to vector<128x1xf32>
    %107 = tpu.reciprocal %106 {approx = true} : vector<128x1xf32> -> vector<128x1xf32>
    %108 = vector.broadcast %107 : vector<128x1xf32> to vector<128x128xf32>
    %109 = arith.mulf %104, %108 : vector<128x128xf32>
    %110 = arith.truncf %109 : vector<128x128xf32> to vector<128x128xbf16>
    %cst_38 = arith.constant dense<0.000000e+00> : vector<128x12xf32>
    %111 = tpu.matmul %110, %95, %cst_38 {dimension_numbers = #tpu.dot_dimension_numbers<[1], [0], [0], [1], [0, 0, 1, 1], [], []>} : vector<128x128xbf16>, vector<128x12xbf16>, vector<128x12xf32> -> vector<128x12xf32>
    %112 = arith.truncf %111 : vector<128x12xf32> to vector<128x12xbf16>
    %113 = vector.extract_strided_slice %36 {offsets = [24, 0], sizes = [12, 48], strides = [1, 1]} : vector<48x48xbf16> to vector<12x48xbf16>
    %cst_39 = arith.constant dense<0.000000e+00> : vector<128x48xf32>
    %114 = tpu.matmul %112, %113, %cst_39 {dimension_numbers = #tpu.dot_dimension_numbers<[1], [0], [0], [1], [0, 0, 1, 1], [], []>} : vector<128x12xbf16>, vector<12x48xbf16>, vector<128x48xf32> -> vector<128x48xf32>
    %115 = arith.addf %89, %114 : vector<128x48xf32>
    %116 = vector.extract_strided_slice %33 {offsets = [0, 36], sizes = [128, 12], strides = [1, 1]} : vector<128x48xf32> to vector<128x12xf32>
    %117 = arith.truncf %116 : vector<128x12xf32> to vector<128x12xbf16>
    %118 = vector.extract_strided_slice %34 {offsets = [0, 36], sizes = [128, 12], strides = [1, 1]} : vector<128x48xf32> to vector<128x12xf32>
    %119 = arith.truncf %118 : vector<128x12xf32> to vector<128x12xbf16>
    %120 = vector.extract_strided_slice %35 {offsets = [0, 36], sizes = [128, 12], strides = [1, 1]} : vector<128x48xf32> to vector<128x12xf32>
    %121 = arith.truncf %120 : vector<128x12xf32> to vector<128x12xbf16>
    %cst_40 = arith.constant dense<0.000000e+00> : vector<128x128xf32>
    %122 = tpu.matmul %117, %119, %cst_40 {dimension_numbers = #tpu.dot_dimension_numbers<[1], [1], [0], [0], [0, 0, 1, 0], [], []>} : vector<128x12xbf16>, vector<128x12xbf16>, vector<128x128xf32> -> vector<128x128xf32>
    %c3 = arith.constant 3 : index
    %c0_41 = arith.constant 0 : index
    %c0_42 = arith.constant 0 : index
    %123 = vector.load %arg6[%c3, %c0_41, %c0_42] : memref<4x128x128xf32, #tpu.memory_space<vmem>>, vector<1x128x128xf32>
    %124 = vector.shape_cast %123 : vector<1x128x128xf32> to vector<128x128xf32>
    %125 = arith.addf %122, %124 : vector<128x128xf32>
    %cst_43 = arith.constant dense<0xFF800000> : vector<128xf32>
    %126 = vector.multi_reduction <maximumf>, %125, %cst_43 [1] : vector<128x128xf32> to vector<128xf32>
    %127 = vector.shape_cast %126 : vector<128xf32> to vector<128x1xf32>
    %128 = vector.broadcast %127 : vector<128x1xf32> to vector<128x128xf32>
    %129 = arith.subf %125, %128 : vector<128x128xf32>
    %130 = math.exp %129 : vector<128x128xf32>
    %cst_44 = arith.constant dense<0.000000e+00> : vector<128xf32>
    %131 = vector.multi_reduction <add>, %130, %cst_44 [1] : vector<128x128xf32> to vector<128xf32>
    %132 = vector.shape_cast %131 : vector<128xf32> to vector<128x1xf32>
    %133 = tpu.reciprocal %132 {approx = true} : vector<128x1xf32> -> vector<128x1xf32>
    %134 = vector.broadcast %133 : vector<128x1xf32> to vector<128x128xf32>
    %135 = arith.mulf %130, %134 : vector<128x128xf32>
    %136 = arith.truncf %135 : vector<128x128xf32> to vector<128x128xbf16>
    %cst_45 = arith.constant dense<0.000000e+00> : vector<128x12xf32>
    %137 = tpu.matmul %136, %121, %cst_45 {dimension_numbers = #tpu.dot_dimension_numbers<[1], [0], [0], [1], [0, 0, 1, 1], [], []>} : vector<128x128xbf16>, vector<128x12xbf16>, vector<128x12xf32> -> vector<128x12xf32>
    %138 = arith.truncf %137 : vector<128x12xf32> to vector<128x12xbf16>
    %139 = vector.extract_strided_slice %36 {offsets = [36, 0], sizes = [12, 48], strides = [1, 1]} : vector<48x48xbf16> to vector<12x48xbf16>
    %cst_46 = arith.constant dense<0.000000e+00> : vector<128x48xf32>
    %140 = tpu.matmul %138, %139, %cst_46 {dimension_numbers = #tpu.dot_dimension_numbers<[1], [0], [0], [1], [0, 0, 1, 1], [], []>} : vector<128x12xbf16>, vector<12x48xbf16>, vector<128x48xf32> -> vector<128x48xf32>
    %141 = arith.addf %115, %140 : vector<128x48xf32>
    %c0_47 = arith.constant 0 : index
    %c0_48 = arith.constant 0 : index
    %142 = vector.load %arg8[%c0_47, %c0_48] : memref<1x48xf32, #tpu.memory_space<vmem>>, vector<1x48xf32>
    %143 = vector.broadcast %142 : vector<1x48xf32> to vector<128x48xf32>
    %144 = arith.addf %141, %143 : vector<128x48xf32>
    %c0_49 = arith.constant 0 : index
    %c0_50 = arith.constant 0 : index
    %145 = vector.load %arg9[%c0_49, %c0_50] : memref<128x48xf32, #tpu.memory_space<vmem>>, vector<128x48xf32>
    tpu.vector_store %arg9[%c0_49, %c0_50], %144 {strides = array<i32>} : memref<128x48xf32, #tpu.memory_space<vmem>>, vector<128x48xf32>,
    %146 = arith.addf %0, %144 : vector<128x48xf32>
    %c0_51 = arith.constant 0 : index
    %c0_52 = arith.constant 0 : index
    %147 = vector.load %arg10[%c0_51, %c0_52] : memref<128x48xf32, #tpu.memory_space<vmem>>, vector<128x48xf32>
    tpu.vector_store %arg10[%c0_51, %c0_52], %146 {strides = array<i32>} : memref<128x48xf32, #tpu.memory_space<vmem>>, vector<128x48xf32>,
    return
  }
  func.func @transform_0(%arg0: i32) -> (i32, i32) {
    %c0_i32 = arith.constant 0 : i32
    %c0_i32_0 = arith.constant 0 : i32
    return %arg0, %c0_i32 : i32, i32
  }
  func.func @transform_1(%arg0: i32) -> (i32, i32) {
    %c0_i32 = arith.constant 0 : i32
    %c0_i32_0 = arith.constant 0 : i32
    %c0_i32_1 = arith.constant 0 : i32
    return %c0_i32, %c0_i32_0 : i32, i32
  }
  func.func @transform_2(%arg0: i32) -> (i32, i32) {
    %c0_i32 = arith.constant 0 : i32
    %c0_i32_0 = arith.constant 0 : i32
    %c0_i32_1 = arith.constant 0 : i32
    return %c0_i32, %c0_i32_0 : i32, i32
  }
  func.func @transform_3(%arg0: i32) -> (i32, i32) {
    %c0_i32 = arith.constant 0 : i32
    %c0_i32_0 = arith.constant 0 : i32
    %c0_i32_1 = arith.constant 0 : i32
    return %c0_i32, %c0_i32_0 : i32, i32
  }
  func.func @transform_4(%arg0: i32) -> (i32, i32) {
    %c0_i32 = arith.constant 0 : i32
    %c0_i32_0 = arith.constant 0 : i32
    %c0_i32_1 = arith.constant 0 : i32
    return %c0_i32, %c0_i32_0 : i32, i32
  }
  func.func @transform_5(%arg0: i32) -> (i32, i32, i32) {
    %c0_i32 = arith.constant 0 : i32
    %c0_i32_0 = arith.constant 0 : i32
    %c0_i32_1 = arith.constant 0 : i32
    %c0_i32_2 = arith.constant 0 : i32
    return %c0_i32, %c0_i32_0, %c0_i32_1 : i32, i32, i32
  }
  func.func @transform_6(%arg0: i32) -> (i32, i32) {
    %c0_i32 = arith.constant 0 : i32
    %c0_i32_0 = arith.constant 0 : i32
    %c0_i32_1 = arith.constant 0 : i32
    return %c0_i32, %c0_i32_0 : i32, i32
  }
  func.func @transform_7(%arg0: i32) -> (i32, i32) {
    %c0_i32 = arith.constant 0 : i32
    %c0_i32_0 = arith.constant 0 : i32
    %c0_i32_1 = arith.constant 0 : i32
    return %c0_i32, %c0_i32_0 : i32, i32
  }
  func.func @transform_8(%arg0: i32) -> (i32, i32) {
    %c0_i32 = arith.constant 0 : i32
    %c0_i32_0 = arith.constant 0 : i32
    return %arg0, %c0_i32 : i32, i32
  }
  func.func @transform_9(%arg0: i32) -> (i32, i32) {
    %c0_i32 = arith.constant 0 : i32
    %c0_i32_0 = arith.constant 0 : i32
    return %arg0, %c0_i32 : i32, i32
  }
}

</mosaic_0001>

<bundles_post_ra>
// kernel: tpu_custom_call.1
= control target key start
LH: loop header
LB: loop body
LE: loop exit
PB: predicated region body
PF: predicated region fallthrough
CT: control target
= control target key end

     0   :  { %15 = vsyncpa [#allocation3], 0  ;;  %s4099_s30 = smov [#allocation2]   ;;  %s5934_s0 = inlined_call_operand.vmem [shape: f32[128,48], index: 0, kind: input, shape index: {}]   ;;  %s5935_s1 = inlined_call_operand.vmem [shape: f32[1,48], index: 1, kind: input, shape index: {}]   ;;  %s5936_s2 = inlined_call_operand.vmem [shape: f32[1,48], index: 2, kind: input, shape index: {}]   ;;  %s5937_s3 = inlined_call_operand.vmem [shape: bf16[48,144], index: 3, kind: input, shape index: {}]   ;;  %s5938_s4 = inlined_call_operand.vmem [shape: f32[1,144], index: 4, kind: input, shape index: {}]   ;;  %s5939_s5 = inlined_call_operand.hbm [shape: f32[4,128,128], index: 5, kind: input, shape index: {}]   ;;  %s5940_s6 = inlined_call_operand.vmem [shape: bf16[48,48], index: 6, kind: input, shape index: {}]   ;;  %s5941_s7 = inlined_call_operand.vmem [shape: f32[1,48], index: 7, kind: input, shape index: {}]   ;;  %s5942_s8 = inlined_call_operand.vmem [shape: f32[128,48], index: 8, kind: output, shape index: {0}]   ;;  %s5943_s9 = inlined_call_operand.vmem [shape: f32[128,48], index: 9, kind: output, shape index: {1}]  }
   0x1   :  { %s31_s10 = sshll.u32 %s4099_s30, 4  ;;  %s32_s10 = int_to_ptr.vmem [resolvable:$true] %s31_s10 }
   0x2   :  { %s4085_s11 = scalar_lea.vmem %s32_s10, 8192  ;;  %p4090_p1 = scmp.lt.s32.totalorder %s32_s10, %s32_s10 }
   0x3   :  { %p4086_p0 = scmp.ne.s32.totalorder %s32_s10, %s4085_s11  ;;  %p4091_p2 = scmp.lt.s32.totalorder %s4085_s11, %s4085_s11 }
   0x5   :  { %p4092_p3 = por %p4091_p2, %p4090_p1 }
   0x7   :  { %p4093_p4 = pnand %p4092_p3, %p4086_p0 }
   0x9   :  { %4096 = shalt.err (!%p4093_p4)
}
   0xa   :  { %s4100_s12 = smov 128   ;;  %s4101_s13 = smov 8  }
   0xb   :  { %37 = dma.hbm_to_vmem [thread:$0]  %s5939_s5, 8192, %s32_s10, [#allocation3], %s4100_s12, %s4100_s12, %s4101_s13  }
   0xc   :  { %4097 = dma.done.wait [#allocation3], 8192  }
   0xd   :  { %4098 = vsyncadd [#allocation3], 4294959104  ;;  %vm64_vm0 = vcmask 392192   ;;  %v46_v0 = vld [vmem:[%s5934_s0] sm:$0xff]  ;;  %v48_v1 = vld [vmem:[%s5934_s0 + $0x10] sm:$0xff]  ;;  %vm589_vm1 = vcmask 97280  }
   0xe   :  { %v47_v2 = vld [vmem:[%s5934_s0 + $0x8] sm:$0xff]  ;;  %v65_v3 = vsel %vm64_vm0, %v46_v0, 0.0  ;;  %v71_v4 = vsel %vm64_vm0, %v48_v1, 0.0  ;;  %v49_v5 = vld [vmem:[%s5934_s0 + $0x18] sm:$0xff]  ;;  %v50_v8 = vld [vmem:[%s5934_s0 + $0x20] sm:$0xff]  ;;  %s4104_s21 = smov 68  }
   0xf   :  { %66 = vadd.xlane.f32.xlu0 %v65_v3  ;;  %72 = vadd.xlane.f32.xlu1 %v71_v4  ;;  %v68_v6 = vsel %vm64_vm0, %v47_v2, 0.0  ;;  %v74_v7 = vsel %vm64_vm0, %v49_v5, 0.0  ;;  %v51_v9 = vld [vmem:[%s5934_s0 + $0x28] sm:$0xff]  ;;  %v77_v10 = vsel %vm64_vm0, %v50_v8, 0.0  ;;  %v4194_v12 = vld [vmem:[%s5934_s0 + $0x30] sm:$0xff]  ;;  %v4199_v13 = vld [vmem:[%s5934_s0 + $0x38] sm:$0xff] }
  0x10   :  { %v80_v11 = vsel %vm64_vm0, %v51_v9, 0.0  ;;  %v83_v14 = vsel %vm64_vm0, %v4194_v12, 0.0  ;;  %v86_v15 = vsel %vm64_vm0, %v4199_v13, 0.0  ;;  %v4208_v16 = vld [vmem:[%s5934_s0 + $0x40] sm:$0xff]  ;;  %v4213_v17 = vld [vmem:[%s5934_s0 + $0x48] sm:$0xff]  ;;  %v4222_v20 = vld [vmem:[%s5934_s0 + $0x50] sm:$0xff] }
  0x11   :  { %v89_v18 = vsel %vm64_vm0, %v4208_v16, 0.0  ;;  %v92_v19 = vsel %vm64_vm0, %v4213_v17, 0.0  ;;  %v4227_v21 = vld [vmem:[%s5934_s0 + $0x58] sm:$0xff]  ;;  %v95_v22 = vsel %vm64_vm0, %v4222_v20, 0.0  ;;  %v4236_v24 = vld [vmem:[%s5934_s0 + $0x60] sm:$0xff]  ;;  %v4241_v25 = vld [vmem:[%s5934_s0 + $0x68] sm:$0xff] }
  0x12   :  { %v98_v23 = vsel %vm64_vm0, %v4227_v21, 0.0  ;;  %v101_v26 = vsel %vm64_vm0, %v4236_v24, 0.0  ;;  %v104_v27 = vsel %vm64_vm0, %v4241_v25, 0.0  ;;  %v4250_v28 = vld [vmem:[%s5934_s0 + $0x70] sm:$0xff]  ;;  %v4255_v29 = vld [vmem:[%s5934_s0 + $0x78] sm:$0xff]  ;;  %s4105_s5 = smov 116  }
  0x13   :  { %69 = vadd.xlane.f32.xlu0 %v68_v6  ;;  %75 = vadd.xlane.f32.xlu1 %v74_v7  ;;  %v107_v30 = vsel %vm64_vm0, %v4250_v28, 0.0  ;;  %v110_v31 = vsel %vm64_vm0, %v4255_v29, 0.0  ;;  %s4106_s22 = smov 32   ;;  %s4107_s23 = smov 20   ;;  %vm1529_vm2 = vcmask 1045504   ;;  %vm2151_vm3 = vcmask 64512  }
  0x14   :  { %s4108_s24 = smov 56   ;;  %s4109_s25 = smov 104  }
  0x15   :  { %s4110_s26 = smov 44   ;;  %s4111_s10 = smov 92  }
  0x17   :  { %78 = vadd.xlane.f32.xlu0 %v77_v10  ;;  %81 = vadd.xlane.f32.xlu1 %v80_v11 }
  0x1b   :  { %84 = vadd.xlane.f32.xlu0 %v83_v14  ;;  %87 = vadd.xlane.f32.xlu1 %v86_v15 }
  0x1f   :  { %90 = vadd.xlane.f32.xlu0 %v89_v18  ;;  %93 = vadd.xlane.f32.xlu1 %v92_v19 }
  0x23   :  { %96 = vadd.xlane.f32.xlu0 %v95_v22  ;;  %99 = vadd.xlane.f32.xlu1 %v98_v23 }
  0x27   :  { %102 = vadd.xlane.f32.xlu0 %v101_v26  ;;  %105 = vadd.xlane.f32.xlu1 %v104_v27 }
  0x2b   :  { %108 = vadd.xlane.f32.xlu0 %v107_v30  ;;  %111 = vadd.xlane.f32.xlu1 %v110_v31 }
  0x98   :  { %v67_v32 = vpop.xlane.xlu0 %66  ;;  %v73_v33 = vpop.xlane.xlu1 %72 }
  0x99   :  { %v114_v34 = vmul.f32 0.020833334, %v67_v32  ;;  %v116_v35 = vmul.f32 0.020833334, %v73_v33 }
  0x9b   :  { %v4261_v36 = vsub.f32 %v46_v0, %v114_v34  ;;  %v4263_v37 = vsub.f32 %v48_v1, %v116_v35 }
  0x9c   :  { %v70_v38 = vpop.xlane.xlu0 %69  ;;  %v76_v39 = vpop.xlane.xlu1 %75 }
  0x9d   :  { %v115_v40 = vmul.f32 0.020833334, %v70_v38  ;;  %v117_v41 = vmul.f32 0.020833334, %v76_v39  ;;  %v146_v42 = vmul.f32 %v4261_v36, %v4261_v36  ;;  %v148_v43 = vmul.f32 %v4263_v37, %v4263_v37 }
  0x9f   :  { %v4269_v44 = vsub.f32 %v47_v2, %v115_v40  ;;  %v4271_v45 = vsub.f32 %v49_v5, %v117_v41  ;;  %v162_v46 = vsel %vm64_vm0, %v146_v42, 0.0  ;;  %v168_v49 = vsel %vm64_vm0, %v148_v43, 0.0 }
  0xa0   :  { %163 = vadd.xlane.f32.xlu0 %v162_v46  ;;  %v79_v47 = vpop.xlane.xlu0 %78  ;;  %v82_v48 = vpop.xlane.xlu1 %81 }
  0xa1   :  { %v118_v50 = vmul.f32 0.020833334, %v79_v47  ;;  %v119_v51 = vmul.f32 0.020833334, %v82_v48  ;;  %v147_v52 = vmul.f32 %v4269_v44, %v4269_v44  ;;  %v149_v53 = vmul.f32 %v4271_v45, %v4271_v45 }
  0xa3   :  { %v4279_v54 = vsub.f32 %v50_v8, %v118_v50  ;;  %v4281_v55 = vsub.f32 %v51_v9, %v119_v51  ;;  %v165_v56 = vsel %vm64_vm0, %v147_v52, 0.0  ;;  %v171_v59 = vsel %vm64_vm0, %v149_v53, 0.0 }
  0xa4   :  { %169 = vadd.xlane.f32.xlu0 %v168_v49  ;;  %166 = vadd.xlane.f32.xlu1 %v165_v56  ;;  %v85_v57 = vpop.xlane.xlu0 %84  ;;  %v88_v58 = vpop.xlane.xlu1 %87  ;;  %v3763_v56 = vld [vmem:[%s5937_s3 + $0x14] ss:$8 sps:$4 sm:$0xff]  }
  0xa5   :  { %v120_v60 = vmul.f32 0.020833334, %v85_v57  ;;  %v121_v61 = vmul.f32 0.020833334, %v88_v58  ;;  %v150_v62 = vmul.f32 %v4279_v54, %v4279_v54  ;;  %v151_v63 = vmul.f32 %v4281_v55, %v4281_v55  ;;  %v3765_v57 = vld [vmem:[%s5937_s3 + $0x10] ss:$8 sps:$4 sm:$0xff]  }
  0xa6   :  { %v3766_v58 = vld [vmem:[%s5937_s3 + $0x4] ss:$8 sps:$4 sm:$0xff]  }
  0xa7   :  { %v4290_v0 = vsub.f32 %v4194_v12, %v120_v60  ;;  %v4293_v1 = vsub.f32 %v4199_v13, %v121_v61  ;;  %v174_v2 = vsel %vm64_vm0, %v150_v62, 0.0  ;;  %v177_v5 = vsel %vm64_vm0, %v151_v63, 0.0 }
  0xa8   :  { %172 = vadd.xlane.f32.xlu1 %v171_v59  ;;  %175 = vadd.xlane.f32.xlu0 %v174_v2  ;;  %v91_v3 = vpop.xlane.xlu0 %90  ;;  %v94_v4 = vpop.xlane.xlu1 %93  ;;  %v3768_v59 = vld [vmem:[%s5937_s3] ss:$8 sps:$4 sm:$0xff]   ;;  %v4102_v60 = vmov 0  }
  0xa9   :  { %v122_v6 = vmul.f32 0.020833334, %v91_v3  ;;  %v123_v7 = vmul.f32 0.020833334, %v94_v4  ;;  %v152_v8 = vmul.f32 %v4290_v0, %v4290_v0  ;;  %v153_v9 = vmul.f32 %v4293_v1, %v4293_v1  ;;  %430 = vmatprep.mubr.bf16.mxu0 %v4102_v60 }
  0xab   :  { %v4302_v10 = vsub.f32 %v4208_v16, %v122_v6  ;;  %v4305_v11 = vsub.f32 %v4213_v17, %v123_v7  ;;  %v180_v12 = vsel %vm64_vm0, %v152_v8, 0.0  ;;  %v183_v15 = vsel %vm64_vm0, %v153_v9, 0.0 }
  0xac   :  { %178 = vadd.xlane.f32.xlu1 %v177_v5  ;;  %181 = vadd.xlane.f32.xlu0 %v180_v12  ;;  %v97_v13 = vpop.xlane.xlu0 %96  ;;  %v100_v14 = vpop.xlane.xlu1 %99 }
  0xad   :  { %v124_v18 = vmul.f32 0.020833334, %v97_v13  ;;  %v125_v19 = vmul.f32 0.020833334, %v100_v14  ;;  %v154_v22 = vmul.f32 %v4302_v10, %v4302_v10  ;;  %v155_v16 = vmul.f32 %v4305_v11, %v4305_v11 }
  0xaf   :  { %v4314_v23 = vsub.f32 %v4222_v20, %v124_v18  ;;  %v4317_v17 = vsub.f32 %v4227_v21, %v125_v19  ;;  %v186_v26 = vsel %vm64_vm0, %v154_v22, 0.0  ;;  %v189_v31 = vsel %vm64_vm0, %v155_v16, 0.0 }
  0xb0   :  { %184 = vadd.xlane.f32.xlu1 %v183_v15  ;;  %187 = vadd.xlane.f32.xlu0 %v186_v26  ;;  %v103_v27 = vpop.xlane.xlu0 %102  ;;  %v106_v30 = vpop.xlane.xlu1 %105 }
  0xb1   :  { %v126_v32 = vmul.f32 0.020833334, %v103_v27  ;;  %v127_v33 = vmul.f32 0.020833334, %v106_v30  ;;  %v156_v34 = vmul.f32 %v4314_v23, %v4314_v23  ;;  %v157_v20 = vmul.f32 %v4317_v17, %v4317_v17 }
  0xb3   :  { %v4326_v35 = vsub.f32 %v4236_v24, %v126_v32  ;;  %v4329_v21 = vsub.f32 %v4241_v25, %v127_v33  ;;  %v192_v38 = vsel %vm64_vm0, %v156_v34, 0.0  ;;  %v195_v41 = vsel %vm64_vm0, %v157_v20, 0.0  ;;  %v4374_v33 = vld [vmem:[%s5935_s1] ss:$0 sm:$0xff] }
  0xb4   :  { %190 = vadd.xlane.f32.xlu1 %v189_v31  ;;  %193 = vadd.xlane.f32.xlu0 %v192_v38  ;;  %v109_v39 = vpop.xlane.xlu0 %108  ;;  %v112_v40 = vpop.xlane.xlu1 %111 }
  0xb5   :  { %v128_v42 = vmul.f32 0.020833334, %v109_v39  ;;  %v129_v43 = vmul.f32 0.020833334, %v112_v40  ;;  %v158_v46 = vmul.f32 %v4326_v35, %v4326_v35  ;;  %v159_v24 = vmul.f32 %v4329_v21, %v4329_v21 }
  0xb7   :  { %v4338_v47 = vsub.f32 %v4250_v28, %v128_v42  ;;  %v4341_v25 = vsub.f32 %v4255_v29, %v129_v43  ;;  %v198_v48 = vsel %vm64_vm0, %v158_v46, 0.0  ;;  %v201_v49 = vsel %vm64_vm0, %v159_v24, 0.0  ;;  %v3760_v28 = vld [vmem:[%s5937_s3 + $0x24] ss:$8 sps:$4 sm:$0xff]   ;;  %v3762_v29 = vld [vmem:[%s5937_s3 + $0x20] ss:$8 sps:$4 sm:$0xff]  }
  0xb8   :  { %196 = vadd.xlane.f32.xlu1 %v195_v41  ;;  %199 = vadd.xlane.f32.xlu0 %v198_v48  ;;  %v4381_v46 = vld [vmem:[%s5936_s2] ss:$0 sm:$0xff] }
  0xb9   :  { %v160_v50 = vmul.f32 %v4338_v47, %v4338_v47  ;;  %v161_v51 = vmul.f32 %v4341_v25, %v4341_v25  ;;  %408 = vmatprep.subr.bf16.mxu0 %v3760_v28 }
  0xba   :  { %409 = vmatpush1.bf16.msra.mxu0 %v3762_v29 }
  0xbb   :  { %v204_v52 = vsel %vm64_vm0, %v160_v50, 0.0  ;;  %v207_v53 = vsel %vm64_vm0, %v161_v51, 0.0  ;;  %410 = vmatprep.subr.bf16.mxu0 %v3763_v56 }
  0xbc   :  { %202 = vadd.xlane.f32.xlu1 %v201_v49  ;;  %205 = vadd.xlane.f32.xlu0 %v204_v52 }
  0xbe   :  { %411 = vmatpush1.bf16.msra.mxu0 %v3765_v57 }
  0xbf   :  { %412 = vmatprep.subr.bf16.mxu0 %v3766_v58 }
  0xc0   :  { %208 = vadd.xlane.f32.xlu1 %v207_v53 }
  0xc2   :  { %413 = vmatpush1.bf16.msra.mxu0 %v3768_v59 }
 0x129   :  { %v164_v61 = vpop.xlane.xlu0 %163 }
 0x12a   :  { %v210_v62 = vmul.f32 0.020833334, %v164_v61 }
 0x12c   :  { %v226_v63 = vadd.f32 1e-05, %v210_v62 }
 0x12d   :  { %v167_v2 = vpop.xlane.xlu1 %166  ;;  %v170_v3 = vpop.xlane.xlu0 %169 }
 0x12e   :  { %3773 = vrsqrt.f32 %v226_v63  ;;  %v211_v4 = vmul.f32 0.020833334, %v167_v2  ;;  %v212_v5 = vmul.f32 0.020833334, %v170_v3 }
 0x130   :  { %v227_v6 = vadd.f32 1e-05, %v211_v4  ;;  %v228_v7 = vadd.f32 1e-05, %v212_v5 }
 0x131   :  { %v173_v8 = vpop.xlane.xlu1 %172  ;;  %v176_v9 = vpop.xlane.xlu0 %175 }
 0x132   :  { %3775 = vrsqrt.f32 %v227_v6  ;;  %v213_v12 = vmul.f32 0.020833334, %v173_v8  ;;  %v214_v14 = vmul.f32 0.020833334, %v176_v9 }
 0x133   :  { %3777 = vrsqrt.f32 %v228_v7 }
 0x134   :  { %v229_v13 = vadd.f32 1e-05, %v213_v12  ;;  %v230_v19 = vadd.f32 1e-05, %v214_v14 }
 0x135   :  { %v179_v15 = vpop.xlane.xlu1 %178  ;;  %v182_v16 = vpop.xlane.xlu0 %181 }
 0x136   :  { %3779 = vrsqrt.f32 %v229_v13  ;;  %v215_v18 = vmul.f32 0.020833334, %v179_v15  ;;  %v216_v31 = vmul.f32 0.020833334, %v182_v16 }
 0x138   :  { %v231_v22 = vadd.f32 1e-05, %v215_v18  ;;  %v232_v38 = vadd.f32 1e-05, %v216_v31 }
 0x139   :  { %v185_v26 = vpop.xlane.xlu1 %184  ;;  %v188_v40 = vpop.xlane.xlu0 %187 }
 0x13a   :  { %3781 = vrsqrt.f32 %v231_v22  ;;  %v217_v27 = vmul.f32 0.020833334, %v185_v26  ;;  %v218_v49 = vmul.f32 0.020833334, %v188_v40 }
 0x13b   :  { %v3774_v30 = vpop.eup %3773  ;;  %3783 = vrsqrt.f32 %v230_v19 }
 0x13c   :  { %v258_v32 = vmul.f32 %v3774_v30, %v4261_v36  ;;  %v233_v34 = vadd.f32 1e-05, %v217_v27  ;;  %v234_v58 = vadd.f32 1e-05, %v218_v49 }
 0x13d   :  { %v191_v39 = vpop.xlane.xlu1 %190  ;;  %v194_v62 = vpop.xlane.xlu0 %193 }
 0x13e   :  { %v280_v42 = vmul.f32 %v4374_v33, %v258_v32  ;;  %3785 = vrsqrt.f32 %v233_v34  ;;  %v219_v36 = vmul.f32 0.020833334, %v191_v39  ;;  %v220_v2 = vmul.f32 0.020833334, %v194_v62 }
 0x13f   :  { %v3776_v20 = vpop.eup %3775  ;;  %3787 = vrsqrt.f32 %v232_v38 }
 0x140   :  { %v259_v41 = vmul.f32 %v3776_v20, %v4269_v44  ;;  %v3778_v43 = vpop.eup %3777  ;;  %v302_v50 = vadd.f32 %v4381_v46, %v280_v42  ;;  %v235_v28 = vadd.f32 1e-05, %v219_v36  ;;  %v236_v13 = vadd.f32 1e-05, %v220_v2 }
 0x141   :  { %v260_v44 = vmul.f32 %v3778_v43, %v4263_v37  ;;  %v197_v56 = vpop.xlane.xlu1 %196  ;;  %v200_v15 = vpop.xlane.xlu0 %199 }
 0x142   :  { %v281_v24 = vmul.f32 %v4374_v33, %v259_v41  ;;  %3789 = vrsqrt.f32 %v235_v28  ;;  %v221_v63 = vmul.f32 0.020833334, %v197_v56  ;;  %v222_v19 = vmul.f32 0.020833334, %v200_v15  ;;  %v332_v15 = vld [vmem:[%s5938_s4] sm:$0x3] }
 0x143   :  { %v3780_v48 = vpop.eup %3779  ;;  %v282_v59 = vmul.f32 %v4374_v33, %v260_v44  ;;  %3791 = vrsqrt.f32 %v234_v58  ;;  %s4103_s4 = smov 80  }
 0x144   :  { %v303_v51 = vadd.f32 %v4381_v46, %v281_v24  ;;  %v261_v52 = vmul.f32 %v3780_v48, %v4271_v45  ;;  %v237_v5 = vadd.f32 1e-05, %v221_v63  ;;  %v238_v34 = vadd.f32 1e-05, %v222_v19 }
 0x145   :  { %v304_v3 = vadd.f32 %v4381_v46, %v282_v59  ;;  %v203_v9 = vpop.xlane.xlu1 %202  ;;  %v206_v39 = vpop.xlane.xlu0 %205 }
 0x146   :  { %v318_v29 = vpack.c.bf16 %v303_v51, %v302_v50  ;;  %v283_v57 = vmul.f32 %v4374_v33, %v261_v52  ;;  %3793 = vrsqrt.f32 %v237_v5  ;;  %v224_v41 = vmul.f32 0.020833334, %v206_v39 }
 0x147   :  { %v3782_v53 = vpop.eup %3781  ;;  %3795 = vrsqrt.f32 %v236_v13 }
 0x148   :  { %3125 = vmatmul.mubr.msk.bf16.vlgmr.msra.gmra.mxu0 %vm64_vm0, %v318_v29  ;;  %v3784_v61 = vpop.eup %3783  ;;  %v305_v37 = vadd.f32 %v4381_v46, %v283_v57  ;;  %v263_v45 = vmul.f32 %v3782_v53, %v4281_v55  ;;  %v223_v55 = vmul.f32 0.020833334, %v203_v9  ;;  %v240_v50 = vadd.f32 1e-05, %v224_v41 }
 0x149   :  { %440 = vmatprep.mubr.bf16.mxu0 %v4102_v60  ;;  %v262_v4 = vmul.f32 %v3784_v61, %v4279_v54  ;;  %v209_v32 = vpop.xlane.xlu1 %208 }
 0x14a   :  { %v319_v6 = vpack.c.bf16 %v305_v37, %v304_v3  ;;  %v285_v7 = vmul.f32 %v4374_v33, %v263_v45  ;;  %v239_v26 = vadd.f32 1e-05, %v223_v55 }
 0x14b   :  { %v3786_v8 = vpop.eup %3785  ;;  %v284_v14 = vmul.f32 %v4374_v33, %v262_v4 }
 0x14c   :  { %v3788_v12 = vpop.eup %3787  ;;  %v307_v18 = vadd.f32 %v4381_v46, %v285_v7  ;;  %v265_v54 = vmul.f32 %v3786_v8, %v4293_v1  ;;  %3797 = vrsqrt.f32 %v239_v26  ;;  %v225_v1 = vmul.f32 0.020833334, %v209_v32 }
 0x14d   :  { %v306_v22 = vadd.f32 %v4381_v46, %v284_v14  ;;  %v264_v16 = vmul.f32 %v3788_v12, %v4290_v0  ;;  %3799 = vrsqrt.f32 %v238_v34 }
 0x14e   :  { %v287_v30 = vmul.f32 %v4374_v33, %v265_v54  ;;  %v241_v36 = vadd.f32 1e-05, %v225_v1 }
 0x14f   :  { %v320_v27 = vpack.c.bf16 %v307_v18, %v306_v22  ;;  %v3790_v31 = vpop.eup %3789  ;;  %v286_v20 = vmul.f32 %v4374_v33, %v264_v16 }
 0x150   :  { %3126 = vmatmul.mubr.msk.bf16.gmra.mxu0 %vm64_vm0, %v319_v6  ;;  %v3792_v38 = vpop.eup %3791  ;;  %v309_v40 = vadd.f32 %v4381_v46, %v287_v30  ;;  %v267_v0 = vmul.f32 %v3790_v31, %v4305_v11  ;;  %3801 = vrsqrt.f32 %v241_v36 }
 0x151   :  { %450 = vmatprep.mubr.bf16.mxu0 %v4102_v60  ;;  %v308_v42 = vadd.f32 %v4381_v46, %v286_v20  ;;  %v266_v43 = vmul.f32 %v3792_v38, %v4302_v10  ;;  %3803 = vrsqrt.f32 %v240_v50 }
 0x152   :  { %v289_v48 = vmul.f32 %v4374_v33, %v267_v0 }
 0x153   :  { %v321_v24 = vpack.c.bf16 %v309_v40, %v308_v42  ;;  %v3794_v49 = vpop.eup %3793  ;;  %v288_v51 = vmul.f32 %v4374_v33, %v266_v43 }
 0x154   :  { %v3796_v44 = vpop.eup %3795  ;;  %v311_v11 = vadd.f32 %v4381_v46, %v289_v48  ;;  %v269_v52 = vmul.f32 %v3794_v49, %v4317_v17 }
 0x155   :  { %v310_v10 = vadd.f32 %v4381_v46, %v288_v51  ;;  %v268_v28 = vmul.f32 %v3796_v44, %v4314_v23 }
 0x156   :  { %v291_v53 = vmul.f32 %v4374_v33, %v269_v52 }
 0x157   :  { %v322_v29 = vpack.c.bf16 %v311_v11, %v310_v10  ;;  %v290_v57 = vmul.f32 %v4374_v33, %v268_v28 }
 0x158   :  { %3127 = vmatmul.mubr.msk.bf16.gmra.mxu0 %vm64_vm0, %v320_v27  ;;  %v313_v59 = vadd.f32 %v4381_v46, %v291_v53 }
 0x159   :  { %460 = vmatprep.mubr.bf16.mxu0 %v4102_v60  ;;  %v3798_v56 = vpop.eup %3797  ;;  %v312_v61 = vadd.f32 %v4381_v46, %v290_v57 }
 0x15a   :  { %v3800_v58 = vpop.eup %3799  ;;  %v271_v17 = vmul.f32 %v3798_v56, %v4329_v21 }
 0x15b   :  { %v270_v62 = vmul.f32 %v3800_v58, %v4326_v35  ;;  %v323_v23 = vpack.c.bf16 %v313_v59, %v312_v61 }
 0x15c   :  { %v293_v63 = vmul.f32 %v4374_v33, %v271_v17 }
 0x15d   :  { %v3802_v37 = vpop.eup %3801  ;;  %v292_v45 = vmul.f32 %v4374_v33, %v270_v62 }
 0x15e   :  { %v3804_v2 = vpop.eup %3803  ;;  %v315_v3 = vadd.f32 %v4381_v46, %v293_v63  ;;  %v273_v4 = vmul.f32 %v3802_v37, %v4341_v25  ;;  %v334_v25 = vlaneseq }
 0x15f   :  { %v314_v21 = vadd.f32 %v4381_v46, %v292_v45  ;;  %v272_v5 = vmul.f32 %v3804_v2, %v4338_v47 }
 0x160   :  { %3128 = vmatmul.mubr.msk.bf16.gmra.mxu0 %vm64_vm0, %v321_v24  ;;  %v295_v6 = vmul.f32 %v4374_v33, %v273_v4  ;;  %v335_v13 = vshrl.u32 %v334_v25, 7 }
 0x161   :  { %470 = vmatprep.mubr.bf16.mxu0 %v4102_v60  ;;  %v324_v35 = vpack.c.bf16 %v315_v3, %v314_v21  ;;  %v294_v7 = vmul.f32 %v4374_v33, %v272_v5 }
 0x162   :  { %v317_v8 = vadd.f32 %v4381_v46, %v295_v6  ;;  %v336_v14 = vsub.s32 0, %v335_v13  ;;  %v340_v47 = vsub.s32 1, %v335_v13 }
 0x163   :  { %v316_v9 = vadd.f32 %v4381_v46, %v294_v7 }
 0x164   :  { %v4446_v55 = vrot.slane %v332_v15, %v336_v14  ;;  %v4448_v33 = vrot.slane %v332_v15, %v340_v47 }
 0x165   :  { %v325_v12 = vpack.c.bf16 %v317_v8, %v316_v9 }
 0x166   :  { %5965 = vst [vmem:[#allocation5_spill] sm:$0xff] %v4448_v33 }
 0x168   :  { %3129 = vmatmul.mubr.msk.bf16.gmra.mxu0 %vm64_vm0, %v322_v29 }
 0x169   :  { %480 = vmatprep.mubr.bf16.mxu0 %v4102_v60 }
 0x170   :  { %3130 = vmatmul.mubr.msk.bf16.gmra.mxu0 %vm64_vm0, %v323_v23 }
 0x171   :  { %490 = vmatprep.mubr.bf16.mxu0 %v4102_v60 }
 0x178   :  { %3131 = vmatmul.mubr.msk.bf16.gmra.mxu0 %vm64_vm0, %v324_v35 }
 0x179   :  { %500 = vmatprep.mubr.bf16.mxu0 %v4102_v60 }
 0x180   :  { %3132 = vmatmul.mubr.msk.bf16.gmra.mxu0 %vm64_vm0, %v325_v12 }
 0x208   :  { %v432_v60 = vpop.f32.mrf.mxu0 }
 0x209   :  { %v433_v54 = vadd.f32 %v432_v60, %v4446_v55 }
 0x20a   :  { %v434_v18 = vpop.f32.mrf.mxu0 }
 0x20b   :  { %v435_v46 = vadd.f32 %v434_v18, %v4448_v33  ;;  %v511_v26 = vmul.f32 0.28867513, %v433_v54 }
 0x20c   :  { %v436_v19 = vpop.f32.mrf.mxu0 }
 0x20d   :  { %v437_v22 = vadd.f32 %v436_v19, %v4446_v55 }
 0x20e   :  { %v438_v16 = vpop.f32.mrf.mxu0 }
 0x20f   :  { %v512_v27 = vmul.f32 0.28867513, %v437_v22  ;;  %v4453_v30 = vpack.c.bf16 %v437_v22, %v433_v54  ;;  %v439_v31 = vadd.f32 %v438_v16, %v4448_v33 }
 0x210   :  { %v4456_v32 = vpop.f32.mrf.mxu0 }
 0x211   :  { %v4458_v34 = vpack.c.bf16 %v512_v27, %v511_v26  ;;  %v4460_v20 = vpack.c.bf16 %v439_v31, %v435_v46 }
 0x212   :  { %v444_v38 = vpop.f32.mrf.mxu0 }
 0x213   :  { %5966 = vst [vmem:[#allocation6_spill] sm:$0xff] %v4460_v20  ;;  %v445_v39 = vadd.f32 %v444_v38, %v4448_v33  ;;  %3382 = vmatprep.mubr.msk.bf16.mxu1 %vm589_vm1, %v4458_v34  ;;  %v1029_v20 = vld [vmem:[#allocation2 + $0xe0] sm:$0xff] }
 0x214   :  { %v4465_v1 = vpop.f32.mrf.mxu0 }
 0x216   :  { %v448_v40 = vpop.f32.mrf.mxu0 }
 0x217   :  { %v449_v0 = vadd.f32 %v448_v40, %v4448_v33  ;;  %v447_v40 = vadd.f32 %v4465_v1, %v4446_v55 }
 0x218   :  { %v452_v41 = vpop.f32.mrf.mxu0 }
 0x219   :  { %v4468_v42 = vpack.c.bf16 %v449_v0, %v445_v39  ;;  %v453_v38 = vadd.f32 %v452_v41, %v4446_v55 }
 0x21a   :  { %v454_v43 = vpop.f32.mrf.mxu0 }
 0x21b   :  { %5967 = vst [vmem:[#allocation7_spill] sm:$0xff] %v4468_v42  ;;  %v455_v36 = vadd.f32 %v454_v43, %v4448_v33 }
 0x21c   :  { %v456_v24 = vpop.f32.mrf.mxu0 }
 0x21d   :  { %v457_v16 = vadd.f32 %v456_v24, %v4446_v55 }
 0x21e   :  { %v458_v48 = vpop.f32.mrf.mxu0 }
 0x21f   :  { %v459_v49 = vadd.f32 %v458_v48, %v4448_v33  ;;  %v4524_v0 = vpack.c.bf16 %v457_v16, %v453_v38  ;;  %v516_v24 = vmul.f32 0.28867513, %v457_v16 }
 0x220   :  { %v462_v50 = vpop.f32.mrf.mxu0 }
 0x221   :  { %v4472_v51 = vpack.c.bf16 %v459_v49, %v455_v36  ;;  %v463_v39 = vadd.f32 %v462_v50, %v4446_v55  ;;  %v443_v36 = vadd.f32 %v4456_v32, %v4446_v55  ;;  %v515_v49 = vmul.f32 0.28867513, %v453_v38 }
 0x222   :  { %v464_v44 = vpop.f32.mrf.mxu0 }
 0x223   :  { %5968 = vst [vmem:[#allocation8_spill] sm:$0xff] %v4472_v51  ;;  %v465_v10 = vadd.f32 %v464_v44, %v4448_v33  ;;  %v4532_v41 = vpack.c.bf16 %v447_v40, %v443_v36  ;;  %v513_v32 = vmul.f32 0.28867513, %v443_v36  ;;  %v517_v50 = vmul.f32 0.28867513, %v463_v39 }
 0x224   :  { %v466_v11 = vpop.f32.mrf.mxu0  ;;  %v4548_v44 = vpack.c.bf16 %v516_v24, %v515_v49 }
 0x225   :  { %v467_v26 = vadd.f32 %v466_v11, %v4446_v55 }
 0x226   :  { %v468_v52 = vpop.f32.mrf.mxu0 }
 0x227   :  { %v469_v28 = vadd.f32 %v468_v52, %v4448_v33  ;;  %v4526_v43 = vpack.c.bf16 %v467_v26, %v463_v39  ;;  %v518_v48 = vmul.f32 0.28867513, %v467_v26 }
 0x228   :  { %v472_v29 = vpop.f32.mrf.mxu0 }
 0x229   :  { %v4476_v53 = vpack.c.bf16 %v469_v28, %v465_v10  ;;  %v473_v46 = vadd.f32 %v472_v29, %v4446_v55  ;;  %v4550_v11 = vpack.c.bf16 %v518_v48, %v517_v50 }
 0x22a   :  { %v474_v56 = vpop.f32.mrf.mxu0 }
 0x22b   :  { %5969 = vst [vmem:[#allocation9_spill] sm:$0xff] %v4476_v53  ;;  %v475_v59 = vadd.f32 %v474_v56, %v4448_v33  ;;  %v519_v28 = vmul.f32 0.28867513, %v473_v46 }
 0x22c   :  { %v476_v57 = vpop.f32.mrf.mxu0 }
 0x22d   :  { %v477_v60 = vadd.f32 %v476_v57, %v4446_v55 }
 0x22e   :  { %v478_v58 = vpop.f32.mrf.mxu0 }
 0x22f   :  { %v479_v17 = vadd.f32 %v478_v58, %v4448_v33  ;;  %v4514_v27 = vpack.c.bf16 %v477_v60, %v473_v46  ;;  %v520_v52 = vmul.f32 0.28867513, %v477_v60 }
 0x230   :  { %v482_v61 = vpop.f32.mrf.mxu0 }
 0x231   :  { %v4480_v62 = vpack.c.bf16 %v479_v17, %v475_v59  ;;  %v483_v14 = vadd.f32 %v482_v61, %v4446_v55  ;;  %v4554_v56 = vpack.c.bf16 %v520_v52, %v519_v28 }
 0x232   :  { %v484_v23 = vpop.f32.mrf.mxu0 }
 0x233   :  { %5970 = vst [vmem:[#allocation10_spill] sm:$0xff] %v4480_v62  ;;  %v485_v45 = vadd.f32 %v484_v23, %v4448_v33  ;;  %v521_v29 = vmul.f32 0.28867513, %v483_v14  ;;  %5974 = vst [vmem:[#allocation14_spill] sm:$0xff] %v4554_v56 }
 0x234   :  { %v486_v63 = vpop.f32.mrf.mxu0 }
 0x235   :  { %v487_v8 = vadd.f32 %v486_v63, %v4446_v55 }
 0x236   :  { %v488_v37 = vpop.f32.mrf.mxu0 }
 0x237   :  { %v489_v2 = vadd.f32 %v488_v37, %v4448_v33  ;;  %v4506_v18 = vpack.c.bf16 %v487_v8, %v483_v14  ;;  %v522_v10 = vmul.f32 0.28867513, %v487_v8 }
 0x238   :  { %v492_v3 = vpop.f32.mrf.mxu0 }
 0x239   :  { %v4484_v4 = vpack.c.bf16 %v489_v2, %v485_v45  ;;  %v4487_v35 = vadd.f32 %v492_v3, %v4446_v55  ;;  %v4556_v57 = vpack.c.bf16 %v522_v10, %v521_v29 }
 0x23a   :  { %v494_v21 = vpop.f32.mrf.mxu0 }
 0x23b   :  { %5971 = vst [vmem:[#allocation11_spill] sm:$0xff] %v4484_v4  ;;  %v495_v9 = vadd.f32 %v494_v21, %v4448_v33  ;;  %v523_v17 = vmul.f32 0.28867513, %v4487_v35 }
 0x23c   :  { %v496_v5 = vpop.f32.mrf.mxu0 }
 0x23d   :  { %v4490_v6 = vadd.f32 %v496_v5, %v4446_v55 }
 0x23e   :  { %v498_v7 = vpop.f32.mrf.mxu0 }
 0x23f   :  { %v4496_v12 = vpack.c.bf16 %v4490_v6, %v4487_v35  ;;  %v499_v25 = vadd.f32 %v498_v7, %v4448_v33  ;;  %v524_v58 = vmul.f32 0.28867513, %v4490_v6 }
 0x240   :  { %v502_v13 = vpop.f32.mrf.mxu0 }
 0x241   :  { %v4500_v47 = vpack.c.bf16 %v499_v25, %v495_v9  ;;  %585 = vrot.lane.b32.xlu1 %v4496_v12, %s4103_s4  ;;  %v503_v19 = vadd.f32 %v502_v13, %v4446_v55  ;;  %v4562_v23 = vpack.c.bf16 %v524_v58, %v523_v17 }
 0x242   :  { %v4503_v15 = vpop.f32.mrf.mxu0 }
 0x243   :  { %5972 = vst [vmem:[#allocation12_spill] sm:$0xff] %v4500_v47  ;;  %5973 = vst [vmem:[#allocation13_spill] sm:$0xff] %v4503_v15  ;;  %v525_v61 = vmul.f32 0.28867513, %v503_v19 }
 0x244   :  { %v506_v54 = vpop.f32.mrf.mxu0  ;;  %5975 = vst [vmem:[#allocation15_spill] sm:$0xff] %v4562_v23 }
 0x245   :  { %v507_v22 = vadd.f32 %v506_v54, %v4446_v55  ;;  %583 = vrot.lane.b32.xlu1 %v4506_v18, %s4103_s4  ;;  %v514_v55 = vmul.f32 0.28867513, %v447_v40 }
 0x247   :  { %v4516_v31 = vpack.c.bf16 %v507_v22, %v503_v19  ;;  %v4544_v1 = vpack.c.bf16 %v514_v55, %v513_v32  ;;  %v526_v59 = vmul.f32 0.28867513, %v507_v22 }
 0x249   :  { %581 = vrot.lane.b32.xlu1 %v4514_v27, %s4103_s4  ;;  %587 = vrot.lane.b32.xlu0 %v4516_v31, %s4103_s4  ;;  %v4564_v63 = vpack.c.bf16 %v526_v59, %v525_v61 }
 0x24b   :  { %5976 = vst [vmem:[#allocation16_spill] sm:$0xff] %v4564_v63 }
 0x24d   :  { %577 = vrot.lane.b32.xlu1 %v4524_v0, %s4103_s4  ;;  %579 = vrot.lane.b32.xlu0 %v4526_v43, %s4103_s4 }
 0x251   :  { %573 = vrot.lane.b32.xlu1 %v4453_v30, %s4103_s4  ;;  %575 = vrot.lane.b32.xlu0 %v4532_v41, %s4103_s4 }
 0x255   :  { %1069 = vrot.lane.b32.xlu1 %v4496_v12, %s4104_s21  ;;  %1071 = vrot.lane.b32.xlu0 %v4516_v31, %s4104_s21 }
 0x259   :  { %1065 = vrot.lane.b32.xlu1 %v4514_v27, %s4104_s21  ;;  %1067 = vrot.lane.b32.xlu0 %v4506_v18, %s4104_s21 }
 0x25d   :  { %1061 = vrot.lane.b32.xlu1 %v4524_v0, %s4104_s21  ;;  %1063 = vrot.lane.b32.xlu0 %v4526_v43, %s4104_s21 }
 0x261   :  { %1057 = vrot.lane.b32.xlu1 %v4453_v30, %s4104_s21  ;;  %1059 = vrot.lane.b32.xlu0 %v4532_v41, %s4104_s21 }
 0x265   :  { %1043 = vrot.lane.b32.xlu1 %v4544_v1, %s4105_s5  ;;  %1041 = vrot.lane.b32.xlu0 %v4458_v34, %s4105_s5 }
 0x269   :  { %1047 = vrot.lane.b32.xlu1 %v4550_v11, %s4105_s5  ;;  %1045 = vrot.lane.b32.xlu0 %v4548_v44, %s4105_s5 }
 0x26d   :  { %1051 = vrot.lane.b32.xlu1 %v4556_v57, %s4105_s5  ;;  %1049 = vrot.lane.b32.xlu0 %v4554_v56, %s4105_s5 }
 0x271   :  { %1053 = vrot.lane.b32.xlu0 %v4562_v23, %s4105_s5  ;;  %1055 = vrot.lane.b32.xlu1 %v4564_v63, %s4105_s5 }
 0x275   :  { %901 = vrot.lane.b32.xlu0 %v4516_v31, %s4106_s22  ;;  %899 = vrot.lane.b32.xlu1 %v4496_v12, %s4106_s22 }
 0x279   :  { %895 = vrot.lane.b32.xlu0 %v4514_v27, %s4106_s22  ;;  %897 = vrot.lane.b32.xlu1 %v4506_v18, %s4106_s22 }
 0x27d   :  { %891 = vrot.lane.b32.xlu0 %v4524_v0, %s4106_s22  ;;  %893 = vrot.lane.b32.xlu1 %v4526_v43, %s4106_s22 }
 0x281   :  { %887 = vrot.lane.b32.xlu0 %v4453_v30, %s4106_s22  ;;  %889 = vrot.lane.b32.xlu1 %v4532_v41, %s4106_s22 }
 0x285   :  { %1380 = vrot.lane.b32.xlu0 %v4506_v18, %s4107_s23  ;;  %1384 = vrot.lane.b32.xlu1 %v4516_v31, %s4107_s23 }
 0x289   :  { %1382 = vrot.lane.b32.xlu1 %v4496_v12, %s4107_s23 }
 0x28d   :  { %1378 = vrot.lane.b32.xlu1 %v4514_v27, %s4107_s23 }
 0x291   :  { %1376 = vrot.lane.b32.xlu1 %v4526_v43, %s4107_s23 }
 0x2b3   :  { %v586_v37 = vpop.permute.xlu1 %585 }
 0x2b4   :  { %v633_v8 = vsel %vm589_vm1, %v586_v37, 0 }
 0x2b7   :  { %v584_v45 = vpop.permute.xlu1 %583 }
 0x2b8   :  { %v630_v60 = vsel %vm589_vm1, %v584_v45, 0 }
 0x2bb   :  { %v582_v2 = vpop.permute.xlu1 %581  ;;  %v588_v3 = vpop.permute.xlu0 %587 }
 0x2bc   :  { %3710 = vmatprep.subr.msk.bf16.mxu1 %vm589_vm1, %v588_v3  ;;  %v636_v21 = vsel %vm589_vm1, %v588_v3, 0  ;;  %v627_v16 = vsel %vm589_vm1, %v582_v2, 0 }
 0x2bd   :  { %3367 = vmatpush3.bf16.xpose.msra.mxu1 %v636_v21 }
 0x2be   :  { %3711 = vmatprep.subr.msk.bf16.mxu1 %vm589_vm1, %v586_v37 }
 0x2bf   :  { %v578_v5 = vpop.permute.xlu1 %577  ;;  %v580_v35 = vpop.permute.xlu0 %579 }
 0x2c0   :  { %v624_v36 = vsel %vm589_vm1, %v580_v35, 0  ;;  %v621_v49 = vsel %vm589_vm1, %v578_v5, 0 }
 0x2c3   :  { %v574_v6 = vpop.permute.xlu1 %573  ;;  %v576_v7 = vpop.permute.xlu0 %575 }
 0x2c4   :  { %v618_v10 = vsel %vm589_vm1, %v576_v7, 0  ;;  %v615_v58 = vsel %vm589_vm1, %v574_v6, 0 }
 0x2c5   :  { %3369 = vmatpush3.bf16.xpose.msra.mxu1 %v633_v8 }
 0x2c6   :  { %3712 = vmatprep.subr.msk.bf16.mxu1 %vm589_vm1, %v584_v45 }
 0x2c7   :  { %v4591_v9 = vpop.permute.xlu1 %1069  ;;  %v1072_v25 = vpop.permute.xlu0 %1071 }
 0x2c8   :  { %v1119_v37 = vsel %vm589_vm1, %v1072_v25, 0  ;;  %v1116_v3 = vsel %vm589_vm1, %v4591_v9, 0 }
 0x2cb   :  { %v4593_v13 = vpop.permute.xlu1 %1065  ;;  %v4595_v14 = vpop.permute.xlu0 %1067 }
 0x2cc   :  { %v1113_v21 = vsel %vm589_vm1, %v4595_v14, 0 }
 0x2cd   :  { %3371 = vmatpush3.bf16.xpose.msra.mxu1 %v630_v60  ;;  %v549_v60 = vld [vmem:[#allocation2] sm:$0xff] }
 0x2ce   :  { %3713 = vmatprep.subr.msk.bf16.mxu1 %vm589_vm1, %v582_v2 }
 0x2cf   :  { %v4599_v54 = vpop.permute.xlu1 %1061  ;;  %v4601_v46 = vpop.permute.xlu0 %1063 }
 0x2d3   :  { %v4603_v19 = vpop.permute.xlu1 %1057  ;;  %v4605_v22 = vpop.permute.xlu0 %1059 }
 0x2d4   :  { %v1098_v8 = vsel %vm589_vm1, %v4603_v19, 0 }
 0x2d5   :  { %3373 = vmatpush3.bf16.xpose.msra.mxu1 %v627_v16 }
 0x2d6   :  { %3714 = vmatprep.subr.msk.bf16.mxu1 %vm589_vm1, %v580_v35  ;;  %v1107_v35 = vsel %vm589_vm1, %v4601_v46, 0 }
 0x2d7   :  { %v4609_v26 = vpop.permute.xlu1 %1043  ;;  %v1042_v38 = vpop.permute.xlu0 %1041 }
 0x2db   :  { %v4611_v39 = vpop.permute.xlu1 %1047  ;;  %v4613_v40 = vpop.permute.xlu0 %1045 }
 0x2dd   :  { %3375 = vmatpush3.bf16.xpose.msra.mxu1 %v624_v36 }
 0x2de   :  { %3715 = vmatprep.subr.msk.bf16.mxu1 %vm589_vm1, %v578_v5  ;;  %v1110_v5 = vsel %vm589_vm1, %v4593_v13, 0 }
 0x2df   :  { %v4617_v55 = vpop.permute.xlu1 %1051  ;;  %v4619_v32 = vpop.permute.xlu0 %1049 }
 0x2e3   :  { %v4621_v24 = vpop.permute.xlu0 %1053  ;;  %v4623_v48 = vpop.permute.xlu1 %1055 }
 0x2e5   :  { %3377 = vmatpush3.bf16.xpose.msra.mxu1 %v621_v49  ;;  %v553_v49 = vld [vmem:[#allocation2 + $0x20] sm:$0xff] }
 0x2e6   :  { %3716 = vmatprep.subr.msk.bf16.mxu1 %vm589_vm1, %v576_v7  ;;  %v1101_v7 = vsel %vm589_vm1, %v4605_v22, 0 }
 0x2e7   :  { %v902_v50 = vpop.permute.xlu0 %901  ;;  %v900_v52 = vpop.permute.xlu1 %899 }
 0x2e8   :  { %3398 = vmatprep.subr.bf16.mxu0 %v902_v50 }
 0x2e9   :  { %3399 = vmatpush3.bf16.msra.mxu0 %v902_v50 }
 0x2ea   :  { %3400 = vmatprep.subr.bf16.mxu0 %v900_v52 }
 0x2eb   :  { %v898_v28 = vpop.permute.xlu1 %897  ;;  %v896_v29 = vpop.permute.xlu0 %895 }
 0x2ed   :  { %3379 = vmatpush3.bf16.xpose.msra.mxu1 %v618_v10  ;;  %3401 = vmatpush3.bf16.msra.mxu0 %v900_v52  ;;  %v554_v52 = vld [vmem:[#allocation2 + $0x28] sm:$0xff] }
 0x2ee   :  { %3717 = vmatprep.subr.msk.bf16.mxu1 %vm589_vm1, %v574_v6  ;;  %3402 = vmatprep.subr.bf16.mxu0 %v898_v28  ;;  %v1104_v6 = vsel %vm589_vm1, %v4599_v54, 0 }
 0x2ef   :  { %v894_v59 = vpop.permute.xlu1 %893  ;;  %v892_v17 = vpop.permute.xlu0 %891 }
 0x2f1   :  { %3403 = vmatpush3.bf16.msra.mxu0 %v898_v28 }
 0x2f2   :  { %3404 = vmatprep.subr.bf16.mxu0 %v896_v29 }
 0x2f3   :  { %v890_v61 = vpop.permute.xlu1 %889  ;;  %v888_v45 = vpop.permute.xlu0 %887 }
 0x2f5   :  { %3381 = vmatpush3.bf16.xpose.msra.mxu1 %v615_v58  ;;  %3405 = vmatpush3.bf16.msra.mxu0 %v896_v29  ;;  %v559_v58 = vld [vmem:[#allocation2 + $0x50] sm:$0xff] }
 0x2f6   :  { %3406 = vmatprep.subr.bf16.mxu0 %v894_v59  ;;  %3718 = vmatprep.subr.msk.bf16.mxu1 %vm589_vm1, %v1072_v25 }
 0x2f7   :  { %v4640_v2 = vpop.permute.xlu1 %1384 }
 0x2f9   :  { %3407 = vmatpush3.bf16.msra.mxu0 %v894_v59 }
 0x2fa   :  { %3408 = vmatprep.subr.bf16.mxu0 %v892_v17 }
 0x2fc   :  { %3383 = vmatmul.mubr.msk.bf16.vlgmr.msra.gmra.mxu1 %vm589_vm1, %v4544_v1 }
 0x2fd   :  { %3386 = vmatprep.mubr.msk.bf16.mxu1 %vm589_vm1, %v4548_v44  ;;  %3409 = vmatpush3.bf16.msra.mxu0 %v892_v17  ;;  %v560_v17 = vld [vmem:[#allocation2 + $0x58] sm:$0xff] }
 0x2fe   :  { %3431 = vmatpush3.bf16.xpose.msra.mxu1 %v1119_v37  ;;  %3410 = vmatprep.subr.bf16.mxu0 %v890_v61 }
 0x2ff   :  { %3719 = vmatprep.subr.msk.bf16.mxu1 %vm589_vm1, %v4591_v9  ;;  %v551_v9 = vld [vmem:[#allocation2 + $0x10] sm:$0xff] }
 0x301   :  { %3411 = vmatpush3.bf16.msra.mxu0 %v890_v61 }
 0x302   :  { %3412 = vmatprep.subr.bf16.mxu0 %v888_v45 }
 0x304   :  { %3387 = vmatmul.mubr.msk.bf16.gmra.mxu1 %vm589_vm1, %v4550_v11 }
 0x305   :  { %3390 = vmatprep.mubr.msk.bf16.mxu1 %vm589_vm1, %v4554_v56  ;;  %3413 = vmatpush3.bf16.msra.mxu0 %v888_v45 }
 0x306   :  { %3433 = vmatpush3.bf16.xpose.msra.mxu1 %v1116_v3  ;;  %3462 = vmatprep.subr.bf16.mxu0 %v4640_v2  ;;  %v557_v3 = vld [vmem:[#allocation2 + $0x40] sm:$0xff] }
 0x307   :  { %3720 = vmatprep.subr.msk.bf16.mxu1 %vm589_vm1, %v4595_v14 }
 0x30c   :  { %3391 = vmatmul.mubr.msk.bf16.gmra.mxu1 %vm589_vm1, %v4556_v57 }
 0x30d   :  { %3394 = vmatprep.mubr.msk.bf16.mxu1 %vm589_vm1, %v4562_v23 }
 0x30e   :  { %3435 = vmatpush3.bf16.xpose.msra.mxu1 %v1113_v21 }
 0x30f   :  { %3721 = vmatprep.subr.msk.bf16.mxu1 %vm589_vm1, %v4593_v13 }
 0x314   :  { %3395 = vmatmul.mubr.msk.bf16.gmra.mxu1 %vm589_vm1, %v4564_v63 }
 0x315   :  { %3446 = vmatprep.mubr.msk.bf16.mxu1 %vm589_vm1, %v1042_v38 }
 0x316   :  { %3437 = vmatpush3.bf16.xpose.msra.mxu1 %v1110_v5  ;;  %v558_v5 = vld [vmem:[#allocation2 + $0x48] sm:$0xff] }
 0x317   :  { %3722 = vmatprep.subr.msk.bf16.mxu1 %vm589_vm1, %v4601_v46  ;;  %v550_v46 = vld [vmem:[#allocation2 + $0x8] sm:$0xff] }
 0x31e   :  { %3439 = vmatpush3.bf16.xpose.msra.mxu1 %v1107_v35 }
 0x31f   :  { %3723 = vmatprep.subr.msk.bf16.mxu1 %vm589_vm1, %v4599_v54 }
 0x326   :  { %3441 = vmatpush3.bf16.xpose.msra.mxu1 %v1104_v6 }
 0x327   :  { %3724 = vmatprep.subr.msk.bf16.mxu1 %vm589_vm1, %v4605_v22  ;;  %v552_v22 = vld [vmem:[#allocation2 + $0x18] sm:$0xff] }
 0x32e   :  { %3443 = vmatpush3.bf16.xpose.msra.mxu1 %v1101_v7 }
 0x32f   :  { %3725 = vmatprep.subr.msk.bf16.mxu1 %vm589_vm1, %v4603_v19 }
 0x336   :  { %3445 = vmatpush3.bf16.xpose.msra.mxu1 %v1098_v8  ;;  %v563_v8 = vld [vmem:[#allocation2 + $0x70] sm:$0xff] }
 0x33d   :  { %3447 = vmatmul.mubr.msk.bf16.vlgmr.msra.gmra.mxu1 %vm589_vm1, %v4609_v26 }
 0x33e   :  { %3450 = vmatprep.mubr.msk.bf16.mxu1 %vm589_vm1, %v4613_v40  ;;  %v555_v40 = vld [vmem:[#allocation2 + $0x30] sm:$0xff] }
 0x345   :  { %3451 = vmatmul.mubr.msk.bf16.gmra.mxu1 %vm589_vm1, %v4611_v39 }
 0x346   :  { %3454 = vmatprep.mubr.msk.bf16.mxu1 %vm589_vm1, %v4619_v32 }
 0x34d   :  { %3455 = vmatmul.mubr.msk.bf16.gmra.mxu1 %vm589_vm1, %v4617_v55  ;;  %v556_v55 = vld [vmem:[#allocation2 + $0x38] sm:$0xff] }
 0x34e   :  { %3458 = vmatprep.mubr.msk.bf16.mxu1 %vm589_vm1, %v4621_v24 }
 0x355   :  { %3459 = vmatmul.mubr.msk.bf16.gmra.mxu1 %vm589_vm1, %v4623_v48 }
 0x3bc   :  { %v3384_v25 = vpop.f32.mrf.mxu1 }
 0x3bd   :  { %v4692_v13 = vadd.f32 %v3384_v25, %v551_v9  ;;  %v564_v25 = vld [vmem:[#allocation2 + $0x78] sm:$0xff] }
 0x3be   :  { %v672_v14 = vpop.f32.mrf.mxu1 }
 0x3bf   :  { %739 = vmax.xlane.f32.xlu0 %v4692_v13  ;;  %v4695_v19 = vadd.f32 %v672_v14, %v549_v60 }
 0x3c0   :  { %v3385_v54 = vpop.f32.mrf.mxu1 }
 0x3c1   :  { %v4700_v39 = vadd.f32 %v3385_v54, %v552_v22 }
 0x3c2   :  { %v675_v16 = vpop.f32.mrf.mxu1 }
 0x3c3   :  { %v4697_v26 = vadd.f32 %v675_v16, %v550_v46  ;;  %735 = vmax.xlane.f32.xlu0 %v4695_v19  ;;  %v561_v46 = vld [vmem:[#allocation2 + $0x60] sm:$0xff]  ;;  %v562_v16 = vld [vmem:[#allocation2 + $0x68] sm:$0xff] }
 0x3c4   :  { %v3388_v38 = vpop.f32.mrf.mxu1 }
 0x3c5   :  { %737 = vmax.xlane.f32.xlu1 %v4697_v26  ;;  %v4704_v24 = vadd.f32 %v3388_v38, %v555_v40 }
 0x3c6   :  { %v688_v36 = vpop.f32.mrf.mxu1 }
 0x3c7   :  { %741 = vmax.xlane.f32.xlu0 %v4700_v39  ;;  %v4710_v28 = vadd.f32 %v688_v36, %v553_v49  ;;  %v1019_v36 = vld [vmem:[#allocation2 + $0x90] sm:$0xff] }
 0x3c8   :  { %v3389_v32 = vpop.f32.mrf.mxu1 }
 0x3c9   :  { %v4706_v48 = vadd.f32 %v3389_v32, %v556_v55 }
 0x3ca   :  { %v691_v50 = vpop.f32.mrf.mxu1 }
 0x3cb   :  { %747 = vmax.xlane.f32.xlu0 %v4704_v24  ;;  %749 = vmax.xlane.f32.xlu1 %v4706_v48  ;;  %v4712_v29 = vadd.f32 %v691_v50, %v554_v52  ;;  %v1017_v50 = vld [vmem:[#allocation2 + $0x80] sm:$0xff]  ;;  %v1020_v52 = vld [vmem:[#allocation2 + $0x98] sm:$0xff] }
 0x3cc   :  { %v3392_v10 = vpop.f32.mrf.mxu1 }
 0x3cd   :  { %v4716_v37 = vadd.f32 %v3392_v10, %v559_v58 }
 0x3ce   :  { %v704_v59 = vpop.f32.mrf.mxu1 }
 0x3cf   :  { %743 = vmax.xlane.f32.xlu0 %v4710_v28  ;;  %745 = vmax.xlane.f32.xlu1 %v4712_v29  ;;  %v4722_v6 = vadd.f32 %v704_v59, %v557_v3  ;;  %v1023_v3 = vld [vmem:[#allocation2 + $0xb0] sm:$0xff] }
 0x3d0   :  { %v3393_v61 = vpop.f32.mrf.mxu1 }
 0x3d1   :  { %v4718_v45 = vadd.f32 %v3393_v61, %v560_v17  ;;  %v1018_v61 = vld [vmem:[#allocation2 + $0x88] sm:$0xff] }
 0x3d2   :  { %v707_v21 = vpop.f32.mrf.mxu1 }
 0x3d3   :  { %755 = vmax.xlane.f32.xlu0 %v4716_v37  ;;  %757 = vmax.xlane.f32.xlu1 %v4718_v45  ;;  %v4724_v7 = vadd.f32 %v707_v21, %v558_v5 }
 0x3d4   :  { %v3396_v35 = vpop.f32.mrf.mxu1 }
 0x3d5   :  { %v4728_v60 = vadd.f32 %v3396_v35, %v563_v8 }
 0x3d6   :  { %v720_v9 = vpop.f32.mrf.mxu1 }
 0x3d7   :  { %751 = vmax.xlane.f32.xlu0 %v4722_v6  ;;  %753 = vmax.xlane.f32.xlu1 %v4724_v7  ;;  %v4734_v38 = vadd.f32 %v720_v9, %v561_v46  ;;  %v1021_v9 = vld [vmem:[#allocation2 + $0xa0] sm:$0xff] }
 0x3d8   :  { %v3397_v14 = vpop.f32.mrf.mxu1 }
 0x3d9   :  { %v4730_v54 = vadd.f32 %v3397_v14, %v564_v25  ;;  %v1024_v25 = vld [vmem:[#allocation2 + $0xb8] sm:$0xff] }
 0x3da   :  { %v723_v22 = vpop.f32.mrf.mxu1 }
 0x3db   :  { %763 = vmax.xlane.f32.xlu0 %v4728_v60  ;;  %765 = vmax.xlane.f32.xlu1 %v4730_v54  ;;  %v4736_v40 = vadd.f32 %v723_v22, %v562_v16 }
 0x3df   :  { %761 = vmax.xlane.f32.xlu1 %v4736_v40  ;;  %759 = vmax.xlane.f32.xlu0 %v4734_v38 }
 0x3fd   :  { %v3448_v55 = vpop.f32.mrf.mxu1 }
 0x3fe   :  { %v4740_v32 = vadd.f32 %v3448_v55, %v1019_v36  ;;  %v1022_v36 = vld [vmem:[#allocation2 + $0xa8] sm:$0xff]  ;;  %v1027_v55 = vld [vmem:[#allocation2 + $0xd0] sm:$0xff] }
 0x3ff   :  { %v1155_v49 = vpop.f32.mrf.mxu1 }
 0x400   :  { %1222 = vmax.xlane.f32.xlu0 %v4740_v32  ;;  %v4743_v58 = vadd.f32 %v1155_v49, %v1017_v50 }
 0x401   :  { %v3449_v10 = vpop.f32.mrf.mxu1 }
 0x402   :  { %v4745_v59 = vadd.f32 %v3449_v10, %v1020_v52 }
 0x403   :  { %v1158_v17 = vpop.f32.mrf.mxu1 }
 0x404   :  { %1224 = vmax.xlane.f32.xlu1 %v4745_v59  ;;  %1218 = vmax.xlane.f32.xlu0 %v4743_v58  ;;  %v4749_v5 = vadd.f32 %v1158_v17, %v1018_v61  ;;  %v1025_v17 = vld [vmem:[#allocation2 + $0xc0] sm:$0xff]  ;;  %v1028_v61 = vld [vmem:[#allocation2 + $0xd8] sm:$0xff] }
 0x405   :  { %v3452_v21 = vpop.f32.mrf.mxu1 }
 0x406   :  { %v4751_v35 = vadd.f32 %v3452_v21, %v1023_v3 }
 0x407   :  { %v1171_v8 = vpop.f32.mrf.mxu1 }
 0x408   :  { %1220 = vmax.xlane.f32.xlu1 %v4749_v5  ;;  %1230 = vmax.xlane.f32.xlu0 %v4751_v35  ;;  %v4755_v46 = vadd.f32 %v1171_v8, %v1021_v9 }
 0x409   :  { %v3453_v14 = vpop.f32.mrf.mxu1 }
 0x40a   :  { %v4757_v22 = vadd.f32 %v3453_v14, %v1024_v25  ;;  %v1026_v25 = vld [vmem:[#allocation2 + $0xc8] sm:$0xff] }
 0x40b   :  { %v1174_v16 = vpop.f32.mrf.mxu1 }
 0x40c   :  { %1232 = vmax.xlane.f32.xlu1 %v4757_v22  ;;  %1226 = vmax.xlane.f32.xlu0 %v4755_v46  ;;  %v4761_v50 = vadd.f32 %v1174_v16, %v1022_v36  ;;  %v1031_v16 = vld [vmem:[#allocation2 + $0xf0] sm:$0xff] }
 0x40d   :  { %v3456_v49 = vpop.f32.mrf.mxu1 }
 0x40e   :  { %v4763_v52 = vadd.f32 %v3456_v49, %v1027_v55 }
 0x40f   :  { %v1187_v10 = vpop.f32.mrf.mxu1 }
 0x410   :  { %1228 = vmax.xlane.f32.xlu1 %v4761_v50  ;;  %1238 = vmax.xlane.f32.xlu0 %v4763_v52  ;;  %v4767_v21 = vadd.f32 %v1187_v10, %v1025_v17  ;;  %v1032_v17 = vld [vmem:[#allocation2 + $0xf8] sm:$0xff] }
 0x411   :  { %v3457_v3 = vpop.f32.mrf.mxu1 }
 0x412   :  { %v4769_v8 = vadd.f32 %v3457_v3, %v1028_v61 }
 0x413   :  { %v1190_v9 = vpop.f32.mrf.mxu1 }
 0x414   :  { %1240 = vmax.xlane.f32.xlu1 %v4769_v8  ;;  %1234 = vmax.xlane.f32.xlu0 %v4767_v21  ;;  %v4773_v14 = vadd.f32 %v1190_v9, %v1026_v25  ;;  %v1030_v25 = vld [vmem:[#allocation2 + $0xe8] sm:$0xff] }
 0x415   :  { %v3460_v36 = vpop.f32.mrf.mxu1 }
 0x416   :  { %v4776_v55 = vadd.f32 %v3460_v36, %v1031_v16  ;;  %v4788_v16 = vpop.permute.xlu1 %1382  ;;  %v4790_v36 = vpop.permute.xlu0 %1380 }
 0x417   :  { %v1203_v49 = vpop.f32.mrf.mxu1 }
 0x418   :  { %1236 = vmax.xlane.f32.xlu1 %v4773_v14  ;;  %v4779_v10 = vadd.f32 %v1203_v49, %v1029_v20 }
 0x419   :  { %v3461_v61 = vpop.f32.mrf.mxu1 }
 0x41a   :  { %v4782_v3 = vadd.f32 %v3461_v61, %v1032_v17  ;;  %v4792_v20 = vpop.permute.xlu1 %1378 }
 0x41b   :  { %v1206_v9 = vpop.f32.mrf.mxu1 }
 0x41c   :  { %1246 = vmax.xlane.f32.xlu1 %v4776_v55  ;;  %v4785_v42 = vadd.f32 %v1206_v9, %v1030_v25 }
 0x41e   :  { %v4795_v53 = vpop.permute.xlu1 %1376 }
 0x420   :  { %1242 = vmax.xlane.f32.xlu1 %v4779_v10 }
 0x424   :  { %1248 = vmax.xlane.f32.xlu1 %v4782_v3 }
 0x428   :  { %1244 = vmax.xlane.f32.xlu1 %v4785_v42 }
 0x448   :  { %v740_v49 = vpop.xlane.xlu0 %739 }
 0x449   :  { %v769_v51 = vsub.f32 %v4692_v13, %v740_v49 }
 0x44b   :  { %v787_v17 = vmul.f32 1.442695, %v769_v51 }
 0x44c   :  { %v736_v61 = vpop.xlane.xlu0 %735 }
 0x44d   :  { %3805 = vpow2.f32 %v787_v17  ;;  %v767_v62 = vsub.f32 %v4695_v19, %v736_v61 }
 0x44e   :  { %v738_v9 = vpop.xlane.xlu1 %737 }
 0x44f   :  { %v783_v25 = vmul.f32 1.442695, %v767_v62  ;;  %v768_v4 = vsub.f32 %v4697_v26, %v738_v9 }
 0x450   :  { %v742_v47 = vpop.xlane.xlu0 %741 }
 0x451   :  { %3807 = vpow2.f32 %v783_v25  ;;  %v770_v15 = vsub.f32 %v4700_v39, %v742_v47  ;;  %v785_v23 = vmul.f32 1.442695, %v768_v4 }
 0x453   :  { %v789_v33 = vmul.f32 1.442695, %v770_v15 }
 0x454   :  { %v748_v63 = vpop.xlane.xlu0 %747  ;;  %v750_v56 = vpop.xlane.xlu1 %749 }
 0x455   :  { %3809 = vpow2.f32 %v789_v33  ;;  %v773_v13 = vsub.f32 %v4704_v24, %v748_v63  ;;  %v774_v51 = vsub.f32 %v4706_v48, %v750_v56 }
 0x456   :  { %3811 = vpow2.f32 %v785_v23 }
 0x457   :  { %v795_v49 = vmul.f32 1.442695, %v773_v13  ;;  %v797_v62 = vmul.f32 1.442695, %v774_v51 }
 0x458   :  { %v744_v19 = vpop.xlane.xlu0 %743  ;;  %v746_v17 = vpop.xlane.xlu1 %745 }
 0x459   :  { %3813 = vpow2.f32 %v795_v49  ;;  %v772_v26 = vsub.f32 %v4712_v29, %v746_v17 }
 0x45a   :  { %v4803_v61 = vpop.eup %3805  ;;  %3815 = vpow2.f32 %v797_v62 }
 0x45b   :  { %819 = vadd.xlane.f32.xlu0 %v4803_v61  ;;  %v793_v47 = vmul.f32 1.442695, %v772_v26 }
 0x45c   :  { %v756_v4 = vpop.xlane.xlu0 %755  ;;  %v758_v24 = vpop.xlane.xlu1 %757 }
 0x45d   :  { %v777_v33 = vsub.f32 %v4716_v37, %v756_v4  ;;  %3817 = vpow2.f32 %v793_v47  ;;  %v778_v37 = vsub.f32 %v4718_v45, %v758_v24  ;;  %v771_v24 = vsub.f32 %v4710_v28, %v744_v19 }
 0x45e   :  { %v4807_v15 = vpop.eup %3807 }
 0x45f   :  { %815 = vadd.xlane.f32.xlu1 %v4807_v15  ;;  %v803_v23 = vmul.f32 1.442695, %v777_v33 }
 0x460   :  { %v752_v56 = vpop.xlane.xlu0 %751  ;;  %v754_v13 = vpop.xlane.xlu1 %753 }
 0x461   :  { %v775_v63 = vsub.f32 %v4722_v6, %v752_v56  ;;  %3819 = vpow2.f32 %v803_v23  ;;  %v805_v6 = vmul.f32 1.442695, %v778_v37  ;;  %v791_v37 = vmul.f32 1.442695, %v771_v24 }
 0x462   :  { %v4811_v39 = vpop.eup %3809 }
 0x463   :  { %821 = vadd.xlane.f32.xlu1 %v4811_v39  ;;  %v4814_v29 = vpop.eup %3811  ;;  %v799_v9 = vmul.f32 1.442695, %v775_v63 }
 0x464   :  { %v764_v48 = vpop.xlane.xlu0 %763  ;;  %v766_v4 = vpop.xlane.xlu1 %765 }
 0x465   :  { %3821 = vpow2.f32 %v799_v9  ;;  %v781_v51 = vsub.f32 %v4728_v60, %v764_v48  ;;  %v782_v47 = vsub.f32 %v4730_v54, %v766_v4  ;;  %v776_v9 = vsub.f32 %v4724_v7, %v754_v13 }
 0x466   :  { %v4817_v25 = vpop.eup %3813  ;;  %3823 = vpow2.f32 %v805_v6 }
 0x467   :  { %817 = vadd.xlane.f32.xlu1 %v4814_v29  ;;  %827 = vadd.xlane.f32.xlu0 %v4817_v25  ;;  %v4822_v49 = vpop.eup %3815  ;;  %v811_v62 = vmul.f32 1.442695, %v781_v51  ;;  %v813_v60 = vmul.f32 1.442695, %v782_v47 }
 0x468   :  { %v760_v17 = vpop.xlane.xlu0 %759  ;;  %v762_v6 = vpop.xlane.xlu1 %761 }
 0x469   :  { %v779_v45 = vsub.f32 %v4734_v38, %v760_v17  ;;  %3825 = vpow2.f32 %v811_v62  ;;  %v780_v4 = vsub.f32 %v4736_v40, %v762_v6 }
 0x46a   :  { %v4826_v26 = vpop.eup %3817 }
 0x46b   :  { %829 = vadd.xlane.f32.xlu0 %v4822_v49  ;;  %v807_v33 = vmul.f32 1.442695, %v779_v45  ;;  %v801_v45 = vmul.f32 1.442695, %v776_v9 }
 0x46d   :  { %3827 = vpow2.f32 %v807_v33 }
 0x46e   :  { %v4830_v56 = vpop.eup %3819  ;;  %3829 = vpow2.f32 %v813_v60  ;;  %v809_v60 = vmul.f32 1.442695, %v780_v4 }
 0x46f   :  { %825 = vadd.xlane.f32.xlu0 %v4826_v26  ;;  %3831 = vpow2.f32 %v791_v37 }
 0x472   :  { %v4833_v23 = vpop.eup %3821 }
 0x473   :  { %835 = vadd.xlane.f32.xlu0 %v4830_v56  ;;  %v4838_v38 = vpop.eup %3823 }
 0x476   :  { %v4841_v54 = vpop.eup %3825 }
 0x477   :  { %831 = vadd.xlane.f32.xlu0 %v4833_v23  ;;  %5977 = vst [vmem:[#allocation17_spill] sm:$0xff] %v4841_v54 }
 0x478   :  { %1374 = vrot.lane.b32.xlu1 %v4524_v0, %s4107_s23 }
 0x47a   :  { %v4844_v63 = vpop.eup %3827 }
 0x47b   :  { %837 = vadd.xlane.f32.xlu0 %v4838_v38  ;;  %v4848_v48 = vpop.eup %3829 }
 0x47c   :  { %5978 = vst [vmem:[#allocation18_spill] sm:$0xff] %v4848_v48  ;;  %v4857_v9 = vpop.eup %3831 }
 0x47f   :  { %843 = vadd.xlane.f32.xlu0 %v4841_v54 }
 0x483   :  { %839 = vadd.xlane.f32.xlu0 %v4844_v63 }
 0x487   :  { %845 = vadd.xlane.f32.xlu0 %v4848_v48 }
 0x489   :  { %v1223_v51 = vpop.xlane.xlu0 %1222 }
 0x48a   :  { %v1252_v17 = vsub.f32 %v4740_v32, %v1223_v51 }
 0x48c   :  { %v1270_v62 = vmul.f32 1.442695, %v1252_v17 }
 0x48d   :  { %v1225_v47 = vpop.xlane.xlu1 %1224  ;;  %v1219_v19 = vpop.xlane.xlu0 %1218 }
 0x48e   :  { %3833 = vpow2.f32 %v1270_v62  ;;  %v1253_v28 = vsub.f32 %v4745_v59, %v1225_v47  ;;  %v1250_v7 = vsub.f32 %v4743_v58, %v1219_v19 }
 0x48f   :  { %3835 = vpow2.f32 %v801_v45 }
 0x490   :  { %v1272_v33 = vmul.f32 1.442695, %v1253_v28  ;;  %v1266_v37 = vmul.f32 1.442695, %v1250_v7 }
 0x491   :  { %v1221_v24 = vpop.xlane.xlu1 %1220  ;;  %v1231_v47 = vpop.xlane.xlu0 %1230 }
 0x492   :  { %3837 = vpow2.f32 %v1272_v33  ;;  %v1251_v13 = vsub.f32 %v4749_v5, %v1221_v24  ;;  %v1256_v24 = vsub.f32 %v4751_v35, %v1231_v47 }
 0x493   :  { %3839 = vpow2.f32 %v809_v60 }
 0x494   :  { %v1268_v32 = vmul.f32 1.442695, %v1251_v13 }
 0x495   :  { %v1233_v51 = vpop.xlane.xlu1 %1232  ;;  %v1227_v19 = vpop.xlane.xlu0 %1226 }
 0x496   :  { %3841 = vpow2.f32 %v1268_v32  ;;  %v1254_v33 = vsub.f32 %v4755_v46, %v1227_v19 }
 0x497   :  { %3843 = vpow2.f32 %v1266_v37  ;;  %v1278_v37 = vmul.f32 1.442695, %v1256_v24 }
 0x498   :  { %v1274_v13 = vmul.f32 1.442695, %v1254_v33 }
 0x499   :  { %v1229_v62 = vpop.xlane.xlu1 %1228  ;;  %v1239_v7 = vpop.xlane.xlu0 %1238 }
 0x49a   :  { %v1255_v32 = vsub.f32 %v4761_v50, %v1229_v62  ;;  %3845 = vpow2.f32 %v1274_v13  ;;  %v1260_v50 = vsub.f32 %v4763_v52, %v1239_v7 }
 0x49b   :  { %v4859_v40 = vpop.eup %3833  ;;  %3847 = vpow2.f32 %v1278_v37 }
 0x49c   :  { %5979 = vst [vmem:[#allocation19_spill] sm:$0xff] %v4859_v40  ;;  %1302 = vadd.xlane.f32.xlu0 %v4859_v40  ;;  %823 = vadd.xlane.f32.xlu1 %v4857_v9  ;;  %v4863_v59 = vpop.eup %3835  ;;  %v1257_v40 = vsub.f32 %v4757_v22, %v1233_v51  ;;  %v1286_v33 = vmul.f32 1.442695, %v1260_v50 }
 0x49d   :  { %v1241_v45 = vpop.xlane.xlu1 %1240 }
 0x49e   :  { %v1280_v48 = vmul.f32 1.442695, %v1257_v40  ;;  %v1261_v46 = vsub.f32 %v4769_v8, %v1241_v45 }
 0x49f   :  { %v4865_v6 = vpop.eup %3837 }
 0x4a0   :  { %5980 = vst [vmem:[#allocation20_spill] sm:$0xff] %v4865_v6  ;;  %1304 = vadd.xlane.f32.xlu0 %v4865_v6  ;;  %833 = vadd.xlane.f32.xlu1 %v4863_v59  ;;  %v4869_v58 = vpop.eup %3839  ;;  %v1288_v62 = vmul.f32 1.442695, %v1261_v46 }
 0x4a1   :  { %v1237_v4 = vpop.xlane.xlu1 %1236 }
 0x4a2   :  { %v1259_v54 = vsub.f32 %v4773_v14, %v1237_v4 }
 0x4a3   :  { %v4871_v5 = vpop.eup %3841 }
 0x4a4   :  { %5981 = vst [vmem:[#allocation21_spill] sm:$0xff] %v4871_v5  ;;  %1300 = vadd.xlane.f32.xlu0 %v4871_v5  ;;  %841 = vadd.xlane.f32.xlu1 %v4869_v58  ;;  %v4875_v17 = vpop.eup %3843  ;;  %v1276_v5 = vmul.f32 1.442695, %v1255_v32  ;;  %v1284_v47 = vmul.f32 1.442695, %v1259_v54 }
 0x4a5   :  { %5982 = vst [vmem:[#allocation22_spill] sm:$0xff] %v4875_v17  ;;  %v1247_v28 = vpop.xlane.xlu1 %1246 }
 0x4a6   :  { %3849 = vpow2.f32 %v1276_v5  ;;  %v1264_v54 = vsub.f32 %v4776_v55, %v1247_v28 }
 0x4a7   :  { %3851 = vpow2.f32 %v1280_v48  ;;  %v4893_v5 = vpop.eup %3845 }
 0x4a8   :  { %1298 = vadd.xlane.f32.xlu1 %v4875_v17  ;;  %v1235_v17 = vpop.xlane.xlu0 %1234  ;;  %3853 = vpow2.f32 %v1284_v47  ;;  %v4896_v52 = vpop.eup %3847 }
 0x4a9   :  { %v1243_v60 = vpop.xlane.xlu1 %1242  ;;  %v1258_v35 = vsub.f32 %v4767_v21, %v1235_v17  ;;  %3855 = vpow2.f32 %v1288_v62 }
 0x4aa   :  { %v1262_v14 = vsub.f32 %v4779_v10, %v1243_v60 }
 0x4ab   :  { %v1282_v22 = vmul.f32 1.442695, %v1258_v35 }
 0x4ac   :  { %v1290_v21 = vmul.f32 1.442695, %v1262_v14 }
 0x4ad   :  { %v1249_v6 = vpop.xlane.xlu1 %1248  ;;  %3857 = vpow2.f32 %v1282_v22 }
 0x4ae   :  { %v1265_v8 = vsub.f32 %v4782_v3, %v1249_v6  ;;  %3859 = vpow2.f32 %v1286_v33  ;;  %v1294_v3 = vmul.f32 1.442695, %v1264_v54 }
 0x4b0   :  { %v1296_v48 = vmul.f32 1.442695, %v1265_v8 }
 0x4b1   :  { %v1245_v19 = vpop.xlane.xlu1 %1244 }
 0x4b2   :  { %v1263_v51 = vsub.f32 %v4785_v42, %v1245_v19 }
 0x4b3   :  { %v4899_v42 = vpop.eup %3849 }
 0x4b4   :  { %v1292_v40 = vmul.f32 1.442695, %v1263_v51  ;;  %v4903_v10 = vpop.eup %3851 }
 0x4b5   :  { %v4905_v6 = vpop.eup %3853 }
 0x4b6   :  { %3861 = vpow2.f32 %v1292_v40  ;;  %v4909_v55 = vpop.eup %3855 }
 0x4b7   :  { %3863 = vpow2.f32 %v1290_v21 }
 0x4b8   :  { %3865 = vpow2.f32 %v1296_v48 }
 0x4b9   :  { %1370 = vrot.lane.b32.xlu1 %v4453_v30, %s4107_s23  ;;  %3867 = vpow2.f32 %v1294_v3 }
 0x4ba   :  { %1372 = vrot.lane.b32.xlu0 %v4532_v41, %s4107_s23  ;;  %v4911_v17 = vpop.eup %3857 }
 0x4bb   :  { %v4915_v45 = vpop.eup %3859 }
 0x4c3   :  { %v4917_v4 = vpop.eup %3861 }
 0x4c4   :  { %v4921_v60 = vpop.eup %3863 }
 0x4c5   :  { %v4923_v24 = vpop.eup %3865 }
 0x4c6   :  { %v4927_v32 = vpop.eup %3867 }
 0x4d9   :  { %1306 = vadd.xlane.f32.xlu0 %v4893_v5 }
 0x4dd   :  { %1310 = vadd.xlane.f32.xlu0 %v4896_v52  ;;  %1308 = vadd.xlane.f32.xlu1 %v4899_v42 }
 0x4e1   :  { %1312 = vadd.xlane.f32.xlu0 %v4903_v10  ;;  %1316 = vadd.xlane.f32.xlu1 %v4905_v6 }
 0x4e4   :  { %v820_v13 = vpop.xlane.xlu0 %819 }
 0x4e5   :  { %1314 = vadd.xlane.f32.xlu0 %v4911_v17  ;;  %1320 = vadd.xlane.f32.xlu1 %v4909_v55 }
 0x4e8   :  { %v816_v28 = vpop.xlane.xlu1 %815 }
 0x4e9   :  { %1318 = vadd.xlane.f32.xlu0 %v4915_v45  ;;  %1324 = vadd.xlane.f32.xlu1 %v4917_v4 }
 0x4ec   :  { %v822_v7 = vpop.xlane.xlu1 %821 }
 0x4ed   :  { %1322 = vadd.xlane.f32.xlu0 %v4921_v60  ;;  %1328 = vadd.xlane.f32.xlu1 %v4923_v24  ;;  %3869 = vrcp.f32 %v822_v7 }
 0x4ee   :  { %3871 = vrcp.f32 %v816_v28 }
 0x4ef   :  { %3873 = vrcp.f32 %v820_v13 }
 0x4f0   :  { %v818_v37 = vpop.xlane.xlu1 %817  ;;  %v828_v46 = vpop.xlane.xlu0 %827 }
 0x4f1   :  { %3875 = vrcp.f32 %v818_v37  ;;  %1326 = vadd.xlane.f32.xlu0 %v4927_v32 }
 0x4f4   :  { %v830_v35 = vpop.xlane.xlu0 %829 }
 0x4f5   :  { %3877 = vrcp.f32 %v830_v35  ;;  %v529_v35 = vld [vmem:[%s5940_s6 + $0x8] sm:$0xf] }
 0x4f8   :  { %v826_v62 = vpop.xlane.xlu0 %825 }
 0x4f9   :  { %3879 = vrcp.f32 %v826_v62 }
 0x4fa   :  { %v3870_v47 = vpop.eup %3869  ;;  %3881 = vrcp.f32 %v828_v46  ;;  %v528_v46 = vld [vmem:[%s5940_s6 + $0x4] sm:$0xf] }
 0x4fb   :  { %v3872_v19 = vpop.eup %3871  ;;  %v866_v51 = vmul.f32 %v3870_v47, %v4811_v39  ;;  %v5984_v39 = vld [vmem:[#allocation16_spill] sm:$0xff]  ;;  %v3149_v47 = vcombine.low %v528_v46, %v529_v35 }
 0x4fc   :  { %v3874_v50 = vpop.eup %3873  ;;  %v863_v33 = vmul.f32 %v3872_v19, %v4807_v15  ;;  %v836_v54 = vpop.xlane.xlu0 %835 }
 0x4fd   :  { %v865_v8 = vmul.f32 %v3874_v50, %v4803_v61 }
 0x4fe   :  { %v3876_v22 = vpop.eup %3875  ;;  %1810 = vrot.lane.b32.xlu1 %v4496_v12, %s4108_s24 }
 0x4ff   :  { %v864_v14 = vmul.f32 %v3876_v22, %v4814_v29  ;;  %v880_v21 = vpack.c.bf16 %v866_v51, %v865_v8  ;;  %v5985_v29 = vld [vmem:[#allocation15_spill] sm:$0xff]  ;;  %v4980_v8 = vrot.slane %v3149_v47, 2 }
 0x500   :  { %v832_v15 = vpop.xlane.xlu0 %831 }
 0x501   :  { %v879_v40 = vpack.c.bf16 %v864_v14, %v863_v33 }
 0x502   :  { %1808 = vrot.lane.b32.xlu1 %v4506_v18, %s4108_s24  ;;  %v3878_v19 = vpop.eup %3877 }
 0x503   :  { %3414 = vmatprep.mubr.bf16.mxu0 %v879_v40  ;;  %v870_v14 = vmul.f32 %v3878_v19, %v4822_v49 }
 0x504   :  { %3415 = vmatmul.mubr.bf16.vlgmr.msra.gmra.mxu0 %v880_v21 }
 0x505   :  { %3463 = vmatpush3.bf16.msra.mxu0 %v4640_v2  ;;  %v838_v2 = vpop.xlane.xlu0 %837 }
 0x506   :  { %3464 = vmatprep.subr.bf16.mxu0 %v4788_v16  ;;  %1806 = vrot.lane.b32.xlu1 %v4514_v27, %s4108_s24  ;;  %v3880_v22 = vpop.eup %3879 }
 0x507   :  { %1812 = vrot.lane.b32.xlu0 %v4516_v31, %s4108_s24  ;;  %v3882_v51 = vpop.eup %3881 }
 0x509   :  { %3465 = vmatpush3.bf16.msra.mxu0 %v4788_v16  ;;  %v1375_v16 = vpop.permute.xlu1 %1374  ;;  %v844_v61 = vpop.xlane.xlu0 %843 }
 0x50a   :  { %3466 = vmatprep.subr.bf16.mxu0 %v4790_v36  ;;  %1802 = vrot.lane.b32.xlu1 %v4524_v0, %s4108_s24 }
 0x50b   :  { %1804 = vrot.lane.b32.xlu0 %v4526_v43, %s4108_s24 }
 0x50d   :  { %3467 = vmatpush3.bf16.msra.mxu0 %v4790_v36  ;;  %v840_v36 = vpop.xlane.xlu0 %839 }
 0x50e   :  { %3468 = vmatprep.subr.bf16.mxu0 %v4792_v20  ;;  %1798 = vrot.lane.b32.xlu1 %v4453_v30, %s4108_s24 }
 0x50f   :  { %1800 = vrot.lane.b32.xlu0 %v4532_v41, %s4108_s24 }
 0x511   :  { %3469 = vmatpush3.bf16.msra.mxu0 %v4792_v20  ;;  %v5983_v20 = vld [vmem:[#allocation14_spill] sm:$0xff]  ;;  %v846_v48 = vpop.xlane.xlu0 %845 }
 0x512   :  { %3470 = vmatprep.subr.bf16.mxu0 %v4795_v53  ;;  %1784 = vrot.lane.b32.xlu1 %v4544_v1, %s4109_s25 }
 0x513   :  { %1782 = vrot.lane.b32.xlu0 %v4458_v34, %s4109_s25 }
 0x515   :  { %3471 = vmatpush3.bf16.msra.mxu0 %v4795_v53 }
 0x516   :  { %3472 = vmatprep.subr.bf16.mxu0 %v1375_v16  ;;  %1788 = vrot.lane.b32.xlu1 %v4550_v11, %s4109_s25 }
 0x517   :  { %1786 = vrot.lane.b32.xlu0 %v4548_v44, %s4109_s25 }
 0x519   :  { %3473 = vmatpush3.bf16.msra.mxu0 %v1375_v16 }
 0x51a   :  { %1792 = vrot.lane.b32.xlu1 %v4556_v57, %s4109_s25 }
 0x51b   :  { %1790 = vrot.lane.b32.xlu0 %v5983_v20, %s4109_s25 }
 0x51e   :  { %1796 = vrot.lane.b32.xlu1 %v5984_v39, %s4109_s25 }
 0x51f   :  { %1794 = vrot.lane.b32.xlu0 %v5985_v29, %s4109_s25 }
 0x522   :  { %2463 = vrot.lane.b32.xlu1 %v4496_v12, %s4110_s26 }
 0x523   :  { %2465 = vrot.lane.b32.xlu0 %v4516_v31, %s4110_s26 }
 0x525   :  { %v4961_v53 = vpop.xlane.xlu0 %1302  ;;  %v824_v3 = vpop.xlane.xlu1 %823 }
 0x526   :  { %2459 = vrot.lane.b32.xlu1 %v4514_v27, %s4110_s26  ;;  %3883 = vrcp.f32 %v824_v3 }
 0x527   :  { %2461 = vrot.lane.b32.xlu0 %v4506_v18, %s4110_s26  ;;  %3885 = vrcp.f32 %v832_v15 }
 0x529   :  { %v1305_v28 = vpop.xlane.xlu0 %1304  ;;  %v834_v7 = vpop.xlane.xlu1 %833 }
 0x52a   :  { %2455 = vrot.lane.b32.xlu1 %v4524_v0, %s4110_s26  ;;  %3887 = vrcp.f32 %v834_v7 }
 0x52b   :  { %2457 = vrot.lane.b32.xlu0 %v4526_v43, %s4110_s26  ;;  %3889 = vrcp.f32 %v838_v2 }
 0x52c   :  { %3891 = vrcp.f32 %v836_v54  ;;  %v868_v54 = vmul.f32 %v3880_v22, %v4826_v26  ;;  %v5991_v22 = vld [vmem:[#allocation17_spill] sm:$0xff] }
 0x52d   :  { %v1301_v13 = vpop.xlane.xlu0 %1300  ;;  %v842_v37 = vpop.xlane.xlu1 %841  ;;  %3893 = vrcp.f32 %v840_v36 }
 0x52e   :  { %2451 = vrot.lane.b32.xlu1 %v4453_v30, %s4110_s26  ;;  %3895 = vrcp.f32 %v842_v37 }
 0x52f   :  { %2453 = vrot.lane.b32.xlu0 %v4532_v41, %s4110_s26  ;;  %3897 = vrcp.f32 %v846_v48  ;;  %v5986_v48 = vld [vmem:[#allocation5_spill] sm:$0xff] }
 0x531   :  { %v1373_v50 = vpop.permute.xlu0 %1372  ;;  %v1299_v62 = vpop.xlane.xlu1 %1298 }
 0x532   :  { %3474 = vmatprep.subr.bf16.mxu0 %v1373_v50  ;;  %2437 = vrot.lane.b32.xlu1 %v4544_v1, %s4111_s10  ;;  %3899 = vrcp.f32 %v1299_v62  ;;  %v5990_v62 = vld [vmem:[#allocation12_spill] sm:$0xff] }
 0x533   :  { %2435 = vrot.lane.b32.xlu0 %v4458_v34, %s4111_s10  ;;  %3475 = vmatpush3.bf16.msra.mxu0 %v1373_v50  ;;  %v3884_v33 = vpop.eup %3883  ;;  %3901 = vrcp.f32 %v844_v61  ;;  %v869_v34 = vmul.f32 %v3882_v51, %v4817_v25 }
 0x534   :  { %v867_v21 = vmul.f32 %v3884_v33, %v4857_v9  ;;  %v3886_v15 = vpop.eup %3885  ;;  %3903 = vrcp.f32 %v1301_v13  ;;  %v508_v9 = vpop.f32.mrf.mxu0  ;;  %v5992_v33 = vld [vmem:[#allocation21_spill] sm:$0xff] }
 0x535   :  { %v1371_v40 = vpop.permute.xlu1 %1370  ;;  %v882_v2 = vpack.c.bf16 %v870_v14, %v869_v34  ;;  %v871_v16 = vmul.f32 %v3886_v15, %v4833_v23  ;;  %v509_v3 = vadd.f32 %v508_v9, %v5986_v48  ;;  %3905 = vrcp.f32 %v1305_v28  ;;  %v5993_v15 = vld [vmem:[#allocation20_spill] sm:$0xff]  ;;  %v5996_v9 = vld [vmem:[#allocation10_spill] sm:$0xff] }
 0x536   :  { %2441 = vrot.lane.b32.xlu1 %v4550_v11, %s4111_s10  ;;  %3476 = vmatprep.subr.bf16.mxu0 %v1371_v40  ;;  %v881_v1 = vpack.c.bf16 %v868_v54, %v867_v21  ;;  %3907 = vrcp.f32 %v4961_v53 }
 0x537   :  { %2439 = vrot.lane.b32.xlu0 %v4548_v44, %s4111_s10  ;;  %3477 = vmatpush3.bf16.msra.mxu0 %v1371_v40  ;;  %v3888_v49 = vpop.eup %3887 }
 0x538   :  { %3726 = vmatprep.subr.msk.bf16.mxu0 %vm1529_vm2, %v4980_v8  ;;  %v3890_v26 = vpop.eup %3889  ;;  %3418 = vmatprep.mubr.bf16.mxu0 %v881_v1  ;;  %v872_v11 = vmul.f32 %v3888_v49, %v4863_v59  ;;  %v527_v59 = vld [vmem:[%s5940_s6] sm:$0xf]  ;;  %v5994_v1 = vld [vmem:[#allocation11_spill] sm:$0xff] }
 0x539   :  { %v3892_v61 = vpop.eup %3891  ;;  %3419 = vmatmul.mubr.bf16.gmra.mxu0 %v882_v2  ;;  %v874_v7 = vmul.f32 %v3890_v26, %v4838_v38  ;;  %v3158_v28 = vcombine.low %v527_v59, %v528_v46  ;;  %v5989_v46 = vld [vmem:[#allocation22_spill] sm:$0xff]  ;;  %v1531_v26 = vsel %vm1529_vm2, %v4980_v8, 0 }
 0x53a   :  { %2445 = vrot.lane.b32.xlu1 %v4556_v57, %s4111_s10  ;;  %v3894_v44 = vpop.eup %3893  ;;  %v883_v25 = vpack.c.bf16 %v872_v11, %v871_v16  ;;  %v5987_v57 = vld [vmem:[#allocation13_spill] sm:$0xff] }
 0x53b   :  { %2443 = vrot.lane.b32.xlu0 %v5983_v20, %s4111_s10  ;;  %v3896_v36 = vpop.eup %3895  ;;  %v505_v13 = vadd.f32 %v5987_v57, %v5986_v48  ;;  %v873_v20 = vmul.f32 %v3892_v61, %v4830_v56  ;;  %v875_v38 = vmul.f32 %v3894_v44, %v4844_v63  ;;  %3727 = vmatprep.subr.msk.bf16.mxu1 %vm1529_vm2, %v3158_v28  ;;  %v1658_v35 = vsel %vm1529_vm2, %v3158_v28, 0 }
 0x53c   :  { %3422 = vmatprep.mubr.bf16.mxu0 %v883_v25  ;;  %v876_v23 = vmul.f32 %v3896_v36, %v4869_v58  ;;  %v3898_v47 = vpop.eup %3897  ;;  %3513 = vmatpush3.bf16.msra.mxu1 %v1658_v35 }
 0x53d   :  { %v5012_v58 = vpack.c.bf16 %v509_v3, %v505_v13  ;;  %v884_v37 = vpack.c.bf16 %v874_v7, %v873_v20 }
 0x53e   :  { %2449 = vrot.lane.b32.xlu1 %v5984_v39, %s4111_s10  ;;  %v885_v53 = vpack.c.bf16 %v876_v23, %v875_v38  ;;  %v5988_v39 = vld [vmem:[#allocation18_spill] sm:$0xff] }
 0x53f   :  { %2447 = vrot.lane.b32.xlu0 %v5985_v29, %s4111_s10  ;;  %v3900_v19 = vpop.eup %3899  ;;  %v878_v29 = vmul.f32 %v3898_v47, %v5988_v39 }
 0x540   :  { %v3902_v56 = vpop.eup %3901  ;;  %v1346_v50 = vmul.f32 %v3900_v19, %v5989_v46 }
 0x541   :  { %3423 = vmatmul.mubr.bf16.gmra.mxu0 %v884_v37  ;;  %v3904_v63 = vpop.eup %3903  ;;  %v877_v51 = vmul.f32 %v3902_v56, %v5991_v22 }
 0x542   :  { %2149 = vrot.lane.b32.xlu1 %v5012_v58, %s4101_s13  ;;  %3426 = vmatprep.mubr.bf16.mxu0 %v885_v53  ;;  %v1347_v14 = vmul.f32 %v3904_v63, %v5992_v33  ;;  %v3906_v21 = vpop.eup %3905 }
 0x543   :  { %2147 = vrot.lane.b32.xlu0 %v4516_v31, %s4101_s13  ;;  %v886_v40 = vpack.c.bf16 %v878_v29, %v877_v51  ;;  %v3908_v31 = vpop.eup %3907  ;;  %v1349_v34 = vmul.f32 %v3906_v21, %v5993_v15 }
 0x544   :  { %v1362_v54 = vpack.c.bf16 %v1347_v14, %v1346_v50 }
 0x546   :  { %2145 = vrot.lane.b32.xlu1 %v5990_v62, %s4101_s13 }
 0x547   :  { %2143 = vrot.lane.b32.xlu0 %v4496_v12, %s4101_s13  ;;  %v5995_v12 = vld [vmem:[#allocation19_spill] sm:$0xff] }
 0x548   :  { %v1348_v49 = vmul.f32 %v3908_v31, %v5995_v12 }
 0x549   :  { %3427 = vmatmul.mubr.bf16.gmra.mxu0 %v886_v40 }
 0x54a   :  { %2139 = vrot.lane.b32.xlu1 %v4506_v18, %s4101_s13  ;;  %3478 = vmatprep.mubr.bf16.mxu0 %v1362_v54  ;;  %v1363_v2 = vpack.c.bf16 %v1349_v34, %v1348_v49  ;;  %v5997_v18 = vld [vmem:[#allocation9_spill] sm:$0xff] }
 0x54b   :  { %2135 = vrot.lane.b32.xlu0 %v4514_v27, %s4101_s13 }
 0x54e   :  { %2141 = vrot.lane.b32.xlu1 %v5994_v1, %s4101_s13 }
 0x551   :  { %3479 = vmatmul.mubr.bf16.vlgmr.msra.gmra.mxu0 %v1363_v2 }
 0x552   :  { %2137 = vrot.lane.b32.xlu1 %v5996_v9, %s4101_s13  ;;  %3495 = vmatpush3.bf16.msra.mxu0 %v1531_v26 }
 0x556   :  { %2131 = vrot.lane.b32.xlu1 %v4526_v43, %s4101_s13 }
 0x55a   :  { %2133 = vrot.lane.b32.xlu1 %v5997_v18, %s4101_s13 }
 0x562   :  { %v1307_v27 = vpop.xlane.xlu0 %1306 }
 0x563   :  { %3909 = vrcp.f32 %v1307_v27 }
 0x566   :  { %v1311_v16 = vpop.xlane.xlu0 %1310  ;;  %v1309_v11 = vpop.xlane.xlu1 %1308 }
 0x567   :  { %3911 = vrcp.f32 %v1309_v11 }
 0x568   :  { %3913 = vrcp.f32 %v1311_v16 }
 0x56a   :  { %v1313_v61 = vpop.xlane.xlu0 %1312  ;;  %v1317_v44 = vpop.xlane.xlu1 %1316 }
 0x56b   :  { %3915 = vrcp.f32 %v1313_v61 }
 0x56c   :  { %3917 = vrcp.f32 %v1317_v44 }
 0x56e   :  { %v1315_v8 = vpop.xlane.xlu0 %1314  ;;  %v1321_v25 = vpop.xlane.xlu1 %1320 }
 0x56f   :  { %3919 = vrcp.f32 %v1315_v8 }
 0x570   :  { %3921 = vrcp.f32 %v1321_v25  ;;  %v3910_v43 = vpop.eup %3909 }
 0x571   :  { %v1350_v57 = vmul.f32 %v3910_v43, %v4893_v5 }
 0x572   :  { %v1319_v36 = vpop.xlane.xlu0 %1318  ;;  %v1325_v48 = vpop.xlane.xlu1 %1324 }
 0x573   :  { %3923 = vrcp.f32 %v1319_v36 }
 0x574   :  { %v3912_v3 = vpop.eup %3911  ;;  %3925 = vrcp.f32 %v1325_v48 }
 0x575   :  { %v3914_v7 = vpop.eup %3913  ;;  %v1351_v13 = vmul.f32 %v3912_v3, %v4899_v42 }
 0x576   :  { %v1323_v23 = vpop.xlane.xlu0 %1322  ;;  %v1329_v59 = vpop.xlane.xlu1 %1328  ;;  %v1352_v38 = vmul.f32 %v3914_v7, %v4896_v52 }
 0x577   :  { %3927 = vrcp.f32 %v1323_v23  ;;  %v1364_v28 = vpack.c.bf16 %v1351_v13, %v1350_v57 }
 0x578   :  { %v3916_v20 = vpop.eup %3915  ;;  %3929 = vrcp.f32 %v1329_v59 }
 0x579   :  { %v1353_v37 = vmul.f32 %v3916_v20, %v4903_v10  ;;  %v3918_v35 = vpop.eup %3917  ;;  %3482 = vmatprep.mubr.bf16.mxu0 %v1364_v28 }
 0x57a   :  { %v1327_v47 = vpop.xlane.xlu0 %1326  ;;  %v5048_v53 = vpop.permute.xlu1 %1810  ;;  %v1355_v42 = vmul.f32 %v3918_v35, %v4905_v6 }
 0x57b   :  { %3931 = vrcp.f32 %v1327_v47  ;;  %v1365_v19 = vpack.c.bf16 %v1353_v37, %v1352_v38 }
 0x57c   :  { %v3920_v56 = vpop.eup %3919 }
 0x57d   :  { %3483 = vmatmul.mubr.bf16.gmra.mxu0 %v1365_v19  ;;  %v1354_v5 = vmul.f32 %v3920_v56, %v4911_v17  ;;  %v3922_v63 = vpop.eup %3921 }
 0x57e   :  { %v5052_v39 = vpop.permute.xlu0 %1812  ;;  %v5054_v29 = vpop.permute.xlu1 %1808  ;;  %v1357_v50 = vmul.f32 %v3922_v63, %v4909_v55 }
 0x57f   :  { %3728 = vmatprep.subr.msk.bf16.mxu0 %vm589_vm1, %v5052_v39  ;;  %v1366_v52 = vpack.c.bf16 %v1355_v42, %v1354_v5 }
 0x580   :  { %v3924_v10 = vpop.eup %3923 }
 0x581   :  { %3486 = vmatprep.mubr.bf16.mxu0 %v1366_v52  ;;  %v1356_v46 = vmul.f32 %v3924_v10, %v4915_v45  ;;  %v3926_v22 = vpop.eup %3925 }
 0x582   :  { %v5060_v51 = vpop.permute.xlu0 %1804  ;;  %v5062_v17 = vpop.permute.xlu1 %1806  ;;  %v1359_v40 = vmul.f32 %v3926_v22, %v4917_v4 }
 0x583   :  { %v1367_v6 = vpack.c.bf16 %v1357_v50, %v1356_v46 }
 0x584   :  { %v3928_v33 = vpop.eup %3927 }
 0x585   :  { %3487 = vmatmul.mubr.bf16.gmra.mxu0 %v1367_v6  ;;  %v1358_v14 = vmul.f32 %v3928_v33, %v4921_v60  ;;  %v3930_v21 = vpop.eup %3929 }
 0x586   :  { %v5066_v54 = vpop.permute.xlu0 %1800  ;;  %v5068_v31 = vpop.permute.xlu1 %1802  ;;  %v1361_v34 = vmul.f32 %v3930_v21, %v4923_v24 }
 0x587   :  { %v1368_v45 = vpack.c.bf16 %v1359_v40, %v1358_v14 }
 0x588   :  { %v3932_v15 = vpop.eup %3931 }
 0x589   :  { %3490 = vmatprep.mubr.bf16.mxu0 %v1368_v45  ;;  %v1360_v55 = vmul.f32 %v3932_v15, %v4927_v32 }
 0x58a   :  { %v5072_v12 = vpop.permute.xlu0 %1782  ;;  %v5074_v49 = vpop.permute.xlu1 %1798 }
 0x58b   :  { %v1369_v2 = vpack.c.bf16 %v1361_v34, %v1360_v55 }
 0x58d   :  { %3491 = vmatmul.mubr.bf16.gmra.mxu0 %v1369_v2 }
 0x58e   :  { %v5076_v60 = vpop.permute.xlu0 %1786  ;;  %v5078_v4 = vpop.permute.xlu1 %1784 }
 0x592   :  { %v5080_v26 = vpop.permute.xlu0 %1790  ;;  %v5082_v27 = vpop.permute.xlu1 %1788 }
 0x596   :  { %v5084_v16 = vpop.permute.xlu0 %1794  ;;  %v5086_v11 = vpop.permute.xlu1 %1792 }
 0x59a   :  { %v5088_v32 = vpop.permute.xlu0 %2465  ;;  %v5090_v24 = vpop.permute.xlu1 %1796 }
 0x59e   :  { %v5092_v61 = vpop.permute.xlu0 %2461  ;;  %v5094_v44 = vpop.permute.xlu1 %2463 }
 0x5a2   :  { %v5096_v8 = vpop.permute.xlu0 %2457  ;;  %v5098_v25 = vpop.permute.xlu1 %2459 }
 0x5a6   :  { %v5100_v36 = vpop.permute.xlu0 %2453  ;;  %v5102_v48 = vpop.permute.xlu1 %2455 }
 0x5aa   :  { %v5104_v43 = vpop.permute.xlu0 %2435  ;;  %v5106_v3 = vpop.permute.xlu1 %2451 }
 0x5ae   :  { %v5108_v7 = vpop.permute.xlu0 %2439  ;;  %v5110_v23 = vpop.permute.xlu1 %2437 }
 0x5b2   :  { %v5112_v59 = vpop.permute.xlu0 %2443  ;;  %v5114_v57 = vpop.permute.xlu1 %2441 }
 0x5b6   :  { %v5116_v13 = vpop.permute.xlu1 %2445  ;;  %v5118_v20 = vpop.permute.xlu0 %2447 }
 0x5ba   :  { %v5120_v28 = vpop.permute.xlu1 %2449  ;;  %v2148_v38 = vpop.permute.xlu0 %2147 }
 0x5be   :  { %v2150_v37 = vpop.permute.xlu1 %2149  ;;  %v2144_v50 = vpop.permute.xlu0 %2143 }
 0x5bf   :  { %v2159_v35 = vsel %vm2151_vm3, %v2148_v38, %v2150_v37 }
 0x5c0   :  { %3562 = vmatprep.subr.bf16.mxu1 %v2159_v35 }
 0x5c2   :  { %v2146_v47 = vpop.permute.xlu1 %2145  ;;  %v2136_v40 = vpop.permute.xlu0 %2135 }
 0x5c3   :  { %v2158_v6 = vsel %vm2151_vm3, %v2144_v50, %v2146_v47 }
 0x5c4   :  { %v3416_v19 = vpop.f32.mrf.mxu0 }
 0x5c6   :  { %v2140_v56 = vpop.permute.xlu1 %2139  ;;  %v945_v5 = vpop.f32.mrf.mxu0 }
 0x5c8   :  { %v3417_v42 = vpop.f32.mrf.mxu0 }
 0x5c9   :  { %v1009_v46 = vpack.c.bf16 %v3417_v42, %v3416_v19 }
 0x5ca   :  { %v2142_v63 = vpop.permute.xlu1 %2141  ;;  %v948_v52 = vpop.f32.mrf.mxu0 }
 0x5cb   :  { %v1008_v10 = vpack.c.bf16 %v948_v52, %v945_v5  ;;  %v2157_v14 = vsel %vm2151_vm3, %v2140_v56, %v2142_v63 }
 0x5cd   :  { %3514 = vmatprep.mubr.msk.bf16.mxu1 %vm589_vm1, %v1008_v10 }
 0x5ce   :  { %v2138_v22 = vpop.permute.xlu1 %2137  ;;  %3515 = vmatmul.mubr.msk.bf16.vlgmr.msra.gmra.mxu1 %vm589_vm1, %v1009_v46 }
 0x5cf   :  { %3563 = vmatpush3.bf16.msra.mxu1 %v2159_v35  ;;  %v2156_v21 = vsel %vm2151_vm3, %v2136_v40, %v2138_v22 }
 0x5d0   :  { %3564 = vmatprep.subr.bf16.mxu1 %v2158_v6 }
 0x5d2   :  { %v2132_v33 = vpop.permute.xlu1 %2131 }
 0x5d3   :  { %3565 = vmatpush3.bf16.msra.mxu1 %v2158_v6 }
 0x5d4   :  { %3566 = vmatprep.subr.bf16.mxu1 %v2157_v14 }
 0x5d6   :  { %v2134_v45 = vpop.permute.xlu1 %2133 }
 0x5d7   :  { %3567 = vmatpush3.bf16.msra.mxu1 %v2157_v14  ;;  %v2155_v15 = vsel %vm2151_vm3, %v2132_v33, %v2134_v45 }
 0x5d8   :  { %3568 = vmatprep.subr.bf16.mxu1 %v2156_v21 }
 0x5db   :  { %3569 = vmatpush3.bf16.msra.mxu1 %v2156_v21 }
 0x5dc   :  { %3570 = vmatprep.subr.bf16.mxu1 %v2155_v15 }
 0x5df   :  { %3571 = vmatpush3.bf16.msra.mxu1 %v2155_v15 }
 0x5f9   :  { %v3420_v55 = vpop.f32.mrf.mxu0 }
 0x5fb   :  { %v961_v34 = vpop.f32.mrf.mxu0 }
 0x5fd   :  { %v3421_v2 = vpop.f32.mrf.mxu0 }
 0x5fe   :  { %v1011_v35 = vpack.c.bf16 %v3421_v2, %v3420_v55  ;;  %v1860_v55 = vsel %vm589_vm1, %v5052_v39, 0  ;;  %v1854_v2 = vsel %vm589_vm1, %v5054_v29, 0  ;;  %v1851_v39 = vsel %vm589_vm1, %v5062_v17, 0 }
 0x5ff   :  { %v964_v38 = vpop.f32.mrf.mxu0 }
 0x600   :  { %v1010_v37 = vpack.c.bf16 %v964_v38, %v961_v34  ;;  %v1857_v34 = vsel %vm589_vm1, %v5048_v53, 0 }
 0x601   :  { %v3424_v47 = vpop.f32.mrf.mxu0 }
 0x602   :  { %3518 = vmatprep.mubr.msk.bf16.mxu1 %vm589_vm1, %v1010_v37 }
 0x603   :  { %v977_v19 = vpop.f32.mrf.mxu0  ;;  %3519 = vmatmul.mubr.msk.bf16.gmra.mxu1 %vm589_vm1, %v1011_v35 }
 0x605   :  { %v3425_v56 = vpop.f32.mrf.mxu0 }
 0x606   :  { %v1013_v63 = vpack.c.bf16 %v3425_v56, %v3424_v47 }
 0x607   :  { %v980_v5 = vpop.f32.mrf.mxu0 }
 0x608   :  { %v1012_v42 = vpack.c.bf16 %v980_v5, %v977_v19  ;;  %v1845_v19 = vsel %vm589_vm1, %v5068_v31, 0 }
 0x609   :  { %v3428_v52 = vpop.f32.mrf.mxu0 }
 0x60a   :  { %3522 = vmatprep.mubr.msk.bf16.mxu1 %vm589_vm1, %v1012_v42 }
 0x60b   :  { %v993_v10 = vpop.f32.mrf.mxu0  ;;  %3523 = vmatmul.mubr.msk.bf16.gmra.mxu1 %vm589_vm1, %v1013_v63 }
 0x60d   :  { %v3429_v46 = vpop.f32.mrf.mxu0 }
 0x60e   :  { %v1015_v6 = vpack.c.bf16 %v3429_v46, %v3428_v52  ;;  %v1842_v52 = vsel %vm589_vm1, %v5066_v54, 0 }
 0x60f   :  { %v996_v50 = vpop.f32.mrf.mxu0 }
 0x610   :  { %v1014_v22 = vpack.c.bf16 %v996_v50, %v993_v10 }
 0x611   :  { %v3480_v33 = vpop.f32.mrf.mxu0 }
 0x612   :  { %3526 = vmatprep.mubr.msk.bf16.mxu1 %vm589_vm1, %v1014_v22 }
 0x613   :  { %v1428_v14 = vpop.f32.mrf.mxu0  ;;  %3527 = vmatmul.mubr.msk.bf16.gmra.mxu1 %vm589_vm1, %v1015_v6 }
 0x615   :  { %v3481_v40 = vpop.f32.mrf.mxu0 }
 0x616   :  { %v1492_v15 = vpack.c.bf16 %v3481_v40, %v3480_v33  ;;  %v1839_v33 = vsel %vm589_vm1, %v5074_v49, 0 }
 0x617   :  { %v1431_v21 = vpop.f32.mrf.mxu0 }
 0x618   :  { %v1491_v45 = vpack.c.bf16 %v1431_v21, %v1428_v14 }
 0x61a   :  { %3496 = vmatprep.mubr.msk.bf16.mxu0 %vm589_vm1, %v1491_v45 }
 0x61b   :  { %3497 = vmatmul.mubr.msk.bf16.vlgmr.msra.gmra.mxu0 %vm589_vm1, %v1492_v15  ;;  %v1768_v15 = vld [vmem:[#allocation2 + $0x110] sm:$0xff] }
 0x61c   :  { %3531 = vmatpush3.bf16.xpose.msra.mxu0 %v1860_v55 }
 0x61d   :  { %3729 = vmatprep.subr.msk.bf16.mxu0 %vm589_vm1, %v5048_v53  ;;  %v1848_v53 = vsel %vm589_vm1, %v5060_v51, 0 }
 0x624   :  { %3533 = vmatpush3.bf16.xpose.msra.mxu0 %v1857_v34 }
 0x625   :  { %3730 = vmatprep.subr.msk.bf16.mxu0 %vm589_vm1, %v5054_v29 }
 0x62c   :  { %3535 = vmatpush3.bf16.xpose.msra.mxu0 %v1854_v2 }
 0x62d   :  { %3731 = vmatprep.subr.msk.bf16.mxu0 %vm589_vm1, %v5062_v17 }
 0x634   :  { %3537 = vmatpush3.bf16.xpose.msra.mxu0 %v1851_v39  ;;  %v1766_v39 = vld [vmem:[#allocation2 + $0x100] sm:$0xff] }
 0x635   :  { %3732 = vmatprep.subr.msk.bf16.mxu0 %vm589_vm1, %v5060_v51 }
 0x63c   :  { %3539 = vmatpush3.bf16.xpose.msra.mxu0 %v1848_v53 }
 0x63d   :  { %v3484_v38 = vpop.f32.mrf.mxu0  ;;  %3733 = vmatprep.subr.msk.bf16.mxu0 %vm589_vm1, %v5068_v31 }
 0x63f   :  { %v1444_v29 = vpop.f32.mrf.mxu0 }
 0x641   :  { %v3485_v37 = vpop.f32.mrf.mxu0 }
 0x642   :  { %v1494_v17 = vpack.c.bf16 %v3485_v37, %v3484_v38  ;;  %v1767_v38 = vld [vmem:[#allocation2 + $0x108] sm:$0xff]  ;;  %v1769_v37 = vld [vmem:[#allocation2 + $0x118] sm:$0xff] }
 0x643   :  { %v1447_v35 = vpop.f32.mrf.mxu0 }
 0x644   :  { %v1493_v47 = vpack.c.bf16 %v1447_v35, %v1444_v29  ;;  %3541 = vmatpush3.bf16.xpose.msra.mxu0 %v1845_v19 }
 0x645   :  { %v3488_v56 = vpop.f32.mrf.mxu0  ;;  %3734 = vmatprep.subr.msk.bf16.mxu0 %vm589_vm1, %v5066_v54  ;;  %v2513_v54 = vsel %vm589_vm1, %v5088_v32, 0 }
 0x646   :  { %3500 = vmatprep.mubr.msk.bf16.mxu0 %vm589_vm1, %v1493_v47 }
 0x647   :  { %v1460_v51 = vpop.f32.mrf.mxu0  ;;  %3501 = vmatmul.mubr.msk.bf16.gmra.mxu0 %vm589_vm1, %v1494_v17 }
 0x649   :  { %v3489_v5 = vpop.f32.mrf.mxu0 }
 0x64a   :  { %v1496_v10 = vpack.c.bf16 %v3489_v5, %v3488_v56  ;;  %v1772_v56 = vld [vmem:[#allocation2 + $0x130] sm:$0xff]  ;;  %v1773_v5 = vld [vmem:[#allocation2 + $0x138] sm:$0xff] }
 0x64b   :  { %v1463_v42 = vpop.f32.mrf.mxu0 }
 0x64c   :  { %v1495_v63 = vpack.c.bf16 %v1463_v42, %v1460_v51  ;;  %3543 = vmatpush3.bf16.xpose.msra.mxu0 %v1842_v52 }
 0x64d   :  { %v3492_v31 = vpop.f32.mrf.mxu0  ;;  %3735 = vmatprep.subr.msk.bf16.mxu0 %vm589_vm1, %v5074_v49  ;;  %v2510_v49 = vsel %vm589_vm1, %v5094_v44, 0 }
 0x64e   :  { %3504 = vmatprep.mubr.msk.bf16.mxu0 %vm589_vm1, %v1495_v63 }
 0x64f   :  { %v1476_v46 = vpop.f32.mrf.mxu0  ;;  %3505 = vmatmul.mubr.msk.bf16.gmra.mxu0 %vm589_vm1, %v1496_v10  ;;  %v1770_v10 = vld [vmem:[#allocation2 + $0x120] sm:$0xff] }
 0x651   :  { %v3493_v50 = vpop.f32.mrf.mxu0 }
 0x652   :  { %v1498_v14 = vpack.c.bf16 %v3493_v50, %v3492_v31 }
 0x653   :  { %v1479_v22 = vpop.f32.mrf.mxu0 }
 0x654   :  { %v1497_v6 = vpack.c.bf16 %v1479_v22, %v1476_v46  ;;  %3545 = vmatpush3.bf16.xpose.msra.mxu0 %v1839_v33  ;;  %v1771_v46 = vld [vmem:[#allocation2 + $0x128] sm:$0xff]  ;;  %v1776_v33 = vld [vmem:[#allocation2 + $0x150] sm:$0xff] }
 0x655   :  { %3737 = vmatprep.subr.msk.bf16.mxu0 %vm589_vm1, %v5088_v32 }
 0x656   :  { %3508 = vmatprep.mubr.msk.bf16.mxu0 %vm589_vm1, %v1497_v6 }
 0x657   :  { %3509 = vmatmul.mubr.msk.bf16.gmra.mxu0 %vm589_vm1, %v1498_v14 }
 0x658   :  { %3546 = vmatprep.mubr.msk.bf16.mxu0 %vm589_vm1, %v5072_v12  ;;  %v2507_v12 = vsel %vm589_vm1, %v5092_v61, 0 }
 0x65f   :  { %3547 = vmatmul.mubr.msk.bf16.vlgmr.msra.gmra.mxu0 %vm589_vm1, %v5078_v4  ;;  %v2501_v4 = vsel %vm589_vm1, %v5096_v8, 0 }
 0x660   :  { %3613 = vmatpush3.bf16.xpose.msra.mxu0 %v2513_v54  ;;  %3550 = vmatprep.mubr.msk.bf16.mxu0 %vm589_vm1, %v5076_v60  ;;  %v2504_v60 = vsel %vm589_vm1, %v5098_v25, 0  ;;  %v1777_v54 = vld [vmem:[#allocation2 + $0x158] sm:$0xff] }
 0x661   :  { %3738 = vmatprep.subr.msk.bf16.mxu0 %vm589_vm1, %v5094_v44 }
 0x667   :  { %3551 = vmatmul.mubr.msk.bf16.gmra.mxu0 %vm589_vm1, %v5082_v27  ;;  %v2495_v27 = vsel %vm589_vm1, %v5100_v36, 0 }
 0x668   :  { %3615 = vmatpush3.bf16.xpose.msra.mxu0 %v2510_v49  ;;  %3554 = vmatprep.mubr.msk.bf16.mxu0 %vm589_vm1, %v5080_v26  ;;  %v2498_v26 = vsel %vm589_vm1, %v5102_v48, 0 }
 0x669   :  { %3739 = vmatprep.subr.msk.bf16.mxu0 %vm589_vm1, %v5092_v61 }
 0x66f   :  { %3555 = vmatmul.mubr.msk.bf16.gmra.mxu0 %vm589_vm1, %v5086_v11 }
 0x670   :  { %3617 = vmatpush3.bf16.xpose.msra.mxu0 %v2507_v12  ;;  %3558 = vmatprep.mubr.msk.bf16.mxu0 %vm589_vm1, %v5084_v16  ;;  %v2492_v16 = vsel %vm589_vm1, %v5106_v3, 0 }
 0x671   :  { %3740 = vmatprep.subr.msk.bf16.mxu0 %vm589_vm1, %v5098_v25 }
 0x677   :  { %3559 = vmatmul.mubr.msk.bf16.gmra.mxu0 %vm589_vm1, %v5090_v24 }
 0x678   :  { %3619 = vmatpush3.bf16.xpose.msra.mxu0 %v2504_v60  ;;  %3628 = vmatprep.mubr.msk.bf16.mxu0 %vm589_vm1, %v5104_v43 }
 0x679   :  { %3741 = vmatprep.subr.msk.bf16.mxu0 %vm589_vm1, %v5096_v8 }
 0x680   :  { %3621 = vmatpush3.bf16.xpose.msra.mxu0 %v2501_v4  ;;  %v1774_v4 = vld [vmem:[#allocation2 + $0x140] sm:$0xff] }
 0x681   :  { %3742 = vmatprep.subr.msk.bf16.mxu0 %vm589_vm1, %v5102_v48 }
 0x688   :  { %3623 = vmatpush3.bf16.xpose.msra.mxu0 %v2498_v26 }
 0x689   :  { %3743 = vmatprep.subr.msk.bf16.mxu0 %vm589_vm1, %v5100_v36 }
 0x68e   :  { %v5237_v11 = vpop.f32.mrf.mxu1 }
 0x690   :  { %3625 = vmatpush3.bf16.xpose.msra.mxu0 %v2495_v27  ;;  %v5239_v32 = vpop.f32.mrf.mxu1  ;;  %v1775_v27 = vld [vmem:[#allocation2 + $0x148] sm:$0xff] }
 0x691   :  { %3744 = vmatprep.subr.msk.bf16.mxu0 %vm589_vm1, %v5106_v3 }
 0x692   :  { %v5243_v61 = vpop.f32.mrf.mxu1 }
 0x694   :  { %v1697_v25 = vpop.f32.mrf.mxu1 }
 0x698   :  { %3627 = vmatpush3.bf16.xpose.msra.mxu0 %v2492_v16 }
 0x69f   :  { %3629 = vmatmul.mubr.msk.bf16.vlgmr.msra.gmra.mxu0 %vm589_vm1, %v5110_v23 }
 0x6a0   :  { %3632 = vmatprep.mubr.msk.bf16.mxu0 %vm589_vm1, %v5108_v7 }
 0x6a7   :  { %3633 = vmatmul.mubr.msk.bf16.gmra.mxu0 %vm589_vm1, %v5114_v57 }
 0x6a8   :  { %3636 = vmatprep.mubr.msk.bf16.mxu0 %vm589_vm1, %v5112_v59 }
 0x6af   :  { %3637 = vmatmul.mubr.msk.bf16.gmra.mxu0 %vm589_vm1, %v5116_v13 }
 0x6b0   :  { %3640 = vmatprep.mubr.msk.bf16.mxu0 %vm589_vm1, %v5118_v20 }
 0x6b7   :  { %3641 = vmatmul.mubr.msk.bf16.gmra.mxu0 %vm589_vm1, %v5120_v28 }
 0x6db   :  { %v5241_v24 = vpop.f32.mrf.mxu0 }
 0x6dd   :  { %v5245_v44 = vpop.f32.mrf.mxu0 }
 0x6df   :  { %v5247_v8 = vpop.f32.mrf.mxu0 }
 0x6e1   :  { %v1570_v36 = vpop.f32.mrf.mxu0 }
 0x6e2   :  { %v5249_v48 = vadd.f32 %v1697_v25, %v1570_v36  ;;  %v1780_v36 = vld [vmem:[#allocation2 + $0x170] sm:$0xff] }
 0x707   :  { %v5251_v43 = vpop.f32.mrf.mxu0 }
 0x709   :  { %v5253_v3 = vpop.f32.mrf.mxu0 }
 0x70b   :  { %v5255_v7 = vpop.f32.mrf.mxu0 }
 0x70d   :  { %v5257_v23 = vpop.f32.mrf.mxu0 }
 0x70e   :  { %5998 = vst [vmem:[#allocation14_spill] sm:$0xff] %v5257_v23 }
 0x70f   :  { %v5259_v59 = vpop.f32.mrf.mxu0 }
 0x710   :  { %5999 = vst [vmem:[#allocation16_spill] sm:$0xff] %v5259_v59  ;;  %v2432_v59 = vld [vmem:[#allocation2 + $0x1e8] sm:$0xff] }
 0x711   :  { %v5261_v57 = vpop.f32.mrf.mxu0 }
 0x712   :  { %6000 = vst [vmem:[#allocation15_spill] sm:$0xff] %v5261_v57 }
 0x713   :  { %v5263_v13 = vpop.f32.mrf.mxu0 }
 0x714   :  { %6001 = vst [vmem:[#allocation5_spill] sm:$0xff] %v5263_v13  ;;  %v2433_v13 = vld [vmem:[#allocation2 + $0x1f0] sm:$0xff] }
 0x715   :  { %v5265_v20 = vpop.f32.mrf.mxu0 }
 0x716   :  { %6002 = vst [vmem:[#allocation13_spill] sm:$0xff] %v5265_v20 }
 0x717   :  { %v5267_v28 = vpop.f32.mrf.mxu0 }
 0x718   :  { %6003 = vst [vmem:[#allocation18_spill] sm:$0xff] %v5267_v28  ;;  %v2428_v28 = vld [vmem:[#allocation2 + $0x1c8] sm:$0xff] }
 0x719   :  { %v5269_v40 = vpop.f32.mrf.mxu0 }
 0x71a   :  { %6004 = vst [vmem:[#allocation22_spill] sm:$0xff] %v5269_v40  ;;  %v2426_v40 = vld [vmem:[#allocation2 + $0x1b8] sm:$0xff] }
 0x71b   :  { %v5271_v21 = vpop.f32.mrf.mxu0 }
 0x71c   :  { %6005 = vst [vmem:[#allocation12_spill] sm:$0xff] %v5271_v21 }
 0x71d   :  { %v5273_v45 = vpop.f32.mrf.mxu0 }
 0x71e   :  { %6006 = vst [vmem:[#allocation17_spill] sm:$0xff] %v5273_v45  ;;  %v2424_v45 = vld [vmem:[#allocation2 + $0x1a8] sm:$0xff] }
 0x71f   :  { %v3548_v55 = vpop.f32.mrf.mxu0 }
 0x720   :  { %v5275_v34 = vadd.f32 %v3548_v55, %v1768_v15 }
 0x721   :  { %v1896_v2 = vpop.f32.mrf.mxu0 }
 0x722   :  { %1963 = vmax.xlane.f32.xlu0 %v5275_v34  ;;  %v5278_v29 = vadd.f32 %v1896_v2, %v1766_v39  ;;  %v1778_v39 = vld [vmem:[#allocation2 + $0x160] sm:$0xff] }
 0x723   :  { %v3549_v53 = vpop.f32.mrf.mxu0 }
 0x724   :  { %v5283_v17 = vadd.f32 %v3549_v53, %v1769_v37  ;;  %v1781_v37 = vld [vmem:[#allocation2 + $0x178] sm:$0xff] }
 0x725   :  { %v1899_v35 = vpop.f32.mrf.mxu0 }
 0x726   :  { %v5280_v47 = vadd.f32 %v1899_v35, %v1767_v38  ;;  %1959 = vmax.xlane.f32.xlu0 %v5278_v29  ;;  %v6007_v38 = vld [vmem:[#allocation8_spill] sm:$0xff] }
 0x727   :  { %v3552_v19 = vpop.f32.mrf.mxu0 }
 0x728   :  { %1961 = vmax.xlane.f32.xlu1 %v5280_v47  ;;  %v5287_v63 = vadd.f32 %v3552_v19, %v1772_v56 }
 0x729   :  { %v1912_v51 = vpop.f32.mrf.mxu0 }
 0x72a   :  { %1965 = vmax.xlane.f32.xlu0 %v5283_v17  ;;  %v5293_v22 = vadd.f32 %v1912_v51, %v1770_v10  ;;  %v1779_v51 = vld [vmem:[#allocation2 + $0x168] sm:$0xff] }
 0x72b   :  { %v3553_v42 = vpop.f32.mrf.mxu0 }
 0x72c   :  { %v5289_v52 = vadd.f32 %v3553_v42, %v1773_v5  ;;  %v6008_v42 = vld [vmem:[#allocation7_spill] sm:$0xff] }
 0x72d   :  { %v1915_v31 = vpop.f32.mrf.mxu0 }
 0x72e   :  { %1971 = vmax.xlane.f32.xlu0 %v5287_v63  ;;  %1973 = vmax.xlane.f32.xlu1 %v5289_v52  ;;  %v5295_v6 = vadd.f32 %v1915_v31, %v1771_v46 }
 0x72f   :  { %v3556_v50 = vpop.f32.mrf.mxu0 }
 0x730   :  { %v5299_v12 = vadd.f32 %v3556_v50, %v1776_v33 }
 0x731   :  { %v1928_v14 = vpop.f32.mrf.mxu0 }
 0x732   :  { %1969 = vmax.xlane.f32.xlu1 %v5295_v6  ;;  %1967 = vmax.xlane.f32.xlu0 %v5293_v22  ;;  %v5305_v16 = vadd.f32 %v1928_v14, %v1774_v4 }
 0x733   :  { %v3557_v49 = vpop.f32.mrf.mxu0 }
 0x734   :  { %v5301_v60 = vadd.f32 %v3557_v49, %v1777_v54 }
 0x735   :  { %v1931_v26 = vpop.f32.mrf.mxu0 }
 0x736   :  { %1979 = vmax.xlane.f32.xlu0 %v5299_v12  ;;  %1981 = vmax.xlane.f32.xlu1 %v5301_v60  ;;  %v5307_v25 = vadd.f32 %v1931_v26, %v1775_v27 }
 0x737   :  { %v3560_v15 = vpop.f32.mrf.mxu0 }
 0x738   :  { %v5311_v55 = vadd.f32 %v3560_v15, %v1780_v36 }
 0x739   :  { %v1944_v2 = vpop.f32.mrf.mxu0 }
 0x73a   :  { %1977 = vmax.xlane.f32.xlu1 %v5307_v25  ;;  %1975 = vmax.xlane.f32.xlu0 %v5305_v16  ;;  %v5314_v53 = vadd.f32 %v1944_v2, %v1778_v39 }
 0x73b   :  { %v3561_v35 = vpop.f32.mrf.mxu0 }
 0x73c   :  { %v5323_v19 = vadd.f32 %v3561_v35, %v1781_v37 }
 0x73d   :  { %v1947_v56 = vpop.f32.mrf.mxu0 }
 0x73e   :  { %1987 = vmax.xlane.f32.xlu0 %v5311_v55  ;;  %v5326_v5 = vadd.f32 %v1947_v56, %v1779_v51 }
 0x742   :  { %1983 = vmax.xlane.f32.xlu0 %v5314_v53 }
 0x74b   :  { %2129 = vrot.lane.b32.xlu1 %v6007_v38, %s4101_s13 }
 0x74f   :  { %2123 = vrot.lane.b32.xlu1 %v4532_v41, %s4101_s13 }
 0x758   :  { %2127 = vrot.lane.b32.xlu0 %v4524_v0, %s4101_s13 }
 0x773   :  { %1989 = vmax.xlane.f32.xlu1 %v5323_v19 }
 0x777   :  { %1985 = vmax.xlane.f32.xlu1 %v5326_v5 }
 0x788   :  { %2125 = vrot.lane.b32.xlu1 %v6008_v42, %s4101_s13 }
 0x7ab   :  { %v1964_v10 = vpop.xlane.xlu0 %1963 }
 0x7ac   :  { %v1993_v41 = vsub.f32 %v5275_v34, %v1964_v10 }
 0x7ae   :  { %v2011_v31 = vmul.f32 1.442695, %v1993_v41 }
 0x7af   :  { %v1960_v0 = vpop.xlane.xlu0 %1959 }
 0x7b0   :  { %3933 = vpow2.f32 %v2011_v31  ;;  %v1991_v46 = vsub.f32 %v5278_v29, %v1960_v0 }
 0x7b1   :  { %v1962_v50 = vpop.xlane.xlu1 %1961 }
 0x7b2   :  { %v2007_v33 = vmul.f32 1.442695, %v1991_v46  ;;  %v1992_v14 = vsub.f32 %v5280_v47, %v1962_v50 }
 0x7b3   :  { %v1966_v54 = vpop.xlane.xlu0 %1965 }
 0x7b4   :  { %3935 = vpow2.f32 %v2007_v33  ;;  %v2009_v49 = vmul.f32 1.442695, %v1992_v14  ;;  %v1994_v4 = vsub.f32 %v5283_v17, %v1966_v54 }
 0x7b6   :  { %3937 = vpow2.f32 %v2009_v49  ;;  %v2013_v26 = vmul.f32 1.442695, %v1994_v4 }
 0x7b7   :  { %v1974_v27 = vpop.xlane.xlu1 %1973  ;;  %v1972_v36 = vpop.xlane.xlu0 %1971 }
 0x7b8   :  { %3939 = vpow2.f32 %v2013_v26  ;;  %v1997_v34 = vsub.f32 %v5287_v63, %v1972_v36  ;;  %v1998_v35 = vsub.f32 %v5289_v52, %v1974_v27 }
 0x7ba   :  { %v2019_v15 = vmul.f32 1.442695, %v1997_v34  ;;  %v2021_v41 = vmul.f32 1.442695, %v1998_v35 }
 0x7bb   :  { %v1970_v2 = vpop.xlane.xlu1 %1969  ;;  %v1968_v39 = vpop.xlane.xlu0 %1967 }
 0x7bc   :  { %v1996_v29 = vsub.f32 %v5295_v6, %v1970_v2  ;;  %v1995_v37 = vsub.f32 %v5293_v22, %v1968_v39  ;;  %3941 = vpow2.f32 %v2019_v15 }
 0x7bd   :  { %v5338_v47 = vpop.eup %3933 }
 0x7be   :  { %v2017_v17 = vmul.f32 1.442695, %v1996_v29  ;;  %v2015_v56 = vmul.f32 1.442695, %v1995_v37  ;;  %2043 = vadd.xlane.f32.xlu0 %v5338_v47 }
 0x7bf   :  { %v1982_v51 = vpop.xlane.xlu1 %1981  ;;  %v1980_v10 = vpop.xlane.xlu0 %1979 }
 0x7c0   :  { %3943 = vpow2.f32 %v2017_v17  ;;  %v2001_v6 = vsub.f32 %v5299_v12, %v1980_v10  ;;  %v2002_v54 = vsub.f32 %v5301_v60, %v1982_v51 }
 0x7c1   :  { %v5342_v63 = vpop.eup %3935  ;;  %3945 = vpow2.f32 %v2015_v56 }
 0x7c2   :  { %2039 = vadd.xlane.f32.xlu1 %v5342_v63  ;;  %3947 = vpow2.f32 %v2021_v41  ;;  %v2027_v50 = vmul.f32 1.442695, %v2001_v6  ;;  %v2029_v27 = vmul.f32 1.442695, %v2002_v54 }
 0x7c3   :  { %v5346_v22 = vpop.eup %3937  ;;  %v1978_v31 = vpop.xlane.xlu1 %1977 }
 0x7c4   :  { %v1976_v52 = vpop.xlane.xlu0 %1975  ;;  %v2000_v0 = vsub.f32 %v5307_v25, %v1978_v31  ;;  %2041 = vadd.xlane.f32.xlu0 %v5346_v22 }
 0x7c5   :  { %v5350_v46 = vpop.eup %3939  ;;  %v1999_v33 = vsub.f32 %v5305_v16, %v1976_v52 }
 0x7c6   :  { %v2025_v14 = vmul.f32 1.442695, %v2000_v0  ;;  %2045 = vadd.xlane.f32.xlu1 %v5350_v46 }
 0x7c7   :  { %v2023_v49 = vmul.f32 1.442695, %v1999_v33  ;;  %v2130_v34 = vpop.permute.xlu1 %2129 }
 0x7c8   :  { %v1988_v12 = vpop.xlane.xlu0 %1987  ;;  %3949 = vpow2.f32 %v2025_v14 }
 0x7c9   :  { %3951 = vpow2.f32 %v2027_v50  ;;  %v5355_v4 = vpop.eup %3941  ;;  %v2005_v16 = vsub.f32 %v5311_v55, %v1988_v12 }
 0x7ca   :  { %2051 = vadd.xlane.f32.xlu0 %v5355_v4  ;;  %3953 = vpow2.f32 %v2023_v49 }
 0x7cb   :  { %3955 = vpow2.f32 %v2029_v27  ;;  %v2035_v2 = vmul.f32 1.442695, %v2005_v16  ;;  %v2124_v10 = vpop.permute.xlu1 %2123 }
 0x7cc   :  { %v1984_v25 = vpop.xlane.xlu0 %1983 }
 0x7cd   :  { %v5358_v26 = vpop.eup %3943  ;;  %v2003_v39 = vsub.f32 %v5314_v53, %v1984_v25  ;;  %3957 = vpow2.f32 %v2035_v2  ;;  %v6009_v25 = vld [vmem:[#allocation6_spill] sm:$0xff] }
 0x7ce   :  { %v5361_v36 = vpop.eup %3945  ;;  %2049 = vadd.xlane.f32.xlu1 %v5358_v26  ;;  %v2420_v2 = vld [vmem:[#allocation2 + $0x188] sm:$0xff] }
 0x7cf   :  { %2047 = vadd.xlane.f32.xlu0 %v5361_v36  ;;  %v5367_v29 = vpop.eup %3947  ;;  %v2031_v37 = vmul.f32 1.442695, %v2003_v39 }
 0x7d0   :  { %v2128_v60 = vpop.permute.xlu0 %2127 }
 0x7d1   :  { %v2154_v15 = vsel %vm2151_vm3, %v2128_v60, %v2130_v34  ;;  %3959 = vpow2.f32 %v2031_v37 }
 0x7d2   :  { %3572 = vmatprep.subr.bf16.mxu1 %v2154_v15 }
 0x7d3   :  { %3573 = vmatpush3.bf16.msra.mxu1 %v2154_v15  ;;  %2053 = vadd.xlane.f32.xlu0 %v5367_v29 }
 0x7d5   :  { %v5370_v55 = vpop.eup %3949 }
 0x7d6   :  { %v5372_v35 = vpop.eup %3951  ;;  %2057 = vadd.xlane.f32.xlu1 %v5370_v55 }
 0x7d7   :  { %2059 = vadd.xlane.f32.xlu0 %v5372_v35  ;;  %v5376_v17 = vpop.eup %3953 }
 0x7d8   :  { %v5379_v53 = vpop.eup %3955 }
 0x7da   :  { %v5382_v56 = vpop.eup %3957 }
 0x7db   :  { %2055 = vadd.xlane.f32.xlu0 %v5376_v17 }
 0x7de   :  { %v5385_v51 = vpop.eup %3959 }
 0x7df   :  { %2061 = vadd.xlane.f32.xlu0 %v5379_v53 }
 0x7e3   :  { %2067 = vadd.xlane.f32.xlu0 %v5382_v56 }
 0x7e7   :  { %2063 = vadd.xlane.f32.xlu0 %v5385_v51 }
 0x7fc   :  { %v1990_v41 = vpop.xlane.xlu1 %1989 }
 0x7fd   :  { %v2006_v6 = vsub.f32 %v5323_v19, %v1990_v41  ;;  %v3630_v19 = vpop.f32.mrf.mxu0  ;;  %v2419_v41 = vld [vmem:[#allocation2 + $0x180] sm:$0xff] }
 0x7ff   :  { %v2037_v31 = vmul.f32 1.442695, %v2006_v6  ;;  %v2549_v49 = vpop.f32.mrf.mxu0 }
 0x800   :  { %v1986_v52 = vpop.xlane.xlu1 %1985 }
 0x801   :  { %3961 = vpow2.f32 %v2037_v31  ;;  %v2004_v0 = vsub.f32 %v5326_v5, %v1986_v52  ;;  %v3631_v5 = vpop.f32.mrf.mxu0  ;;  %v5406_v52 = vadd.f32 %v2549_v49, %v2419_v41 }
 0x803   :  { %v2033_v50 = vmul.f32 1.442695, %v2004_v0  ;;  %v2552_v27 = vpop.f32.mrf.mxu0  ;;  %v2423_v0 = vld [vmem:[#allocation2 + $0x1a0] sm:$0xff] }
 0x804   :  { %v2126_v33 = vpop.permute.xlu1 %2125  ;;  %v5401_v37 = vadd.f32 %v2552_v27, %v2420_v2  ;;  %v2425_v2 = vld [vmem:[#allocation2 + $0x1b0] sm:$0xff] }
 0x805   :  { %3963 = vpow2.f32 %v2033_v50  ;;  %v2153_v14 = vsel %vm2151_vm3, %v2124_v10, %v2126_v33  ;;  %v3634_v16 = vpop.f32.mrf.mxu0  ;;  %v2421_v10 = vld [vmem:[#allocation2 + $0x190] sm:$0xff] }
 0x806   :  { %3574 = vmatprep.subr.bf16.mxu1 %v2153_v14  ;;  %v5404_v31 = vadd.f32 %v3630_v19, %v2421_v10  ;;  %v5418_v10 = vadd.f32 %v3634_v16, %v2425_v2  ;;  %v2431_v2 = vld [vmem:[#allocation2 + $0x1e0] sm:$0xff] }
 0x807   :  { %3575 = vmatpush3.bf16.msra.mxu1 %v2153_v14  ;;  %v2565_v34 = vpop.f32.mrf.mxu0 }
 0x808   :  { %v5414_v27 = vadd.f32 %v2565_v34, %v2423_v0 }
 0x809   :  { %v3635_v60 = vpop.f32.mrf.mxu0 }
 0x80a   :  { %v5424_v34 = vadd.f32 %v3635_v60, %v2426_v40 }
 0x80b   :  { %v2568_v15 = vpop.f32.mrf.mxu0 }
 0x80c   :  { %v5420_v41 = vadd.f32 %v2568_v15, %v2424_v45  ;;  %v2430_v15 = vld [vmem:[#allocation2 + $0x1d8] sm:$0xff] }
 0x80d   :  { %v3638_v39 = vpop.f32.mrf.mxu0 }
 0x80e   :  { %v5391_v12 = vpop.eup %3961 }
 0x80f   :  { %2069 = vadd.xlane.f32.xlu0 %v5391_v12  ;;  %v2581_v6 = vpop.f32.mrf.mxu0 }
 0x811   :  { %v3639_v50 = vpop.f32.mrf.mxu0 }
 0x812   :  { %v5394_v54 = vpop.eup %3963  ;;  %v5436_v60 = vadd.f32 %v3639_v50, %v2430_v15  ;;  %v2434_v15 = vld [vmem:[#allocation2 + $0x1f8] sm:$0xff] }
 0x813   :  { %2065 = vadd.xlane.f32.xlu1 %v5394_v54  ;;  %v2584_v21 = vpop.f32.mrf.mxu0 }
 0x814   :  { %v5432_v16 = vadd.f32 %v2584_v21, %v2428_v28 }
 0x824   :  { %2121 = vrot.lane.b32.xlu1 %v6009_v25, %s4101_s13 }
 0x825   :  { %2119 = vrot.lane.b32.xlu0 %v4453_v30, %s4101_s13  ;;  %v2422_v30 = vld [vmem:[#allocation2 + $0x198] sm:$0xff]  ;;  %s4112_s13 = smov 124  }
 0x826   :  { %v5412_v14 = vadd.f32 %v3631_v5, %v2422_v30  ;;  %v2427_v5 = vld [vmem:[#allocation2 + $0x1c0] sm:$0xff]  ;;  %v3642_v30 = vpop.f32.mrf.mxu0 }
 0x827   :  { %v5426_v0 = vadd.f32 %v2581_v6, %v2427_v5 }
 0x828   :  { %v2597_v20 = vpop.f32.mrf.mxu0 }
 0x829   :  { %v5438_v6 = vadd.f32 %v2597_v20, %v2431_v2 }
 0x844   :  { %2614 = vmax.xlane.f32.xlu0 %v5401_v37 }
 0x847   :  { %v5410_v33 = vpop.xlane.xlu0 %2043 }
 0x848   :  { %2612 = vmax.xlane.f32.xlu1 %v5406_v52  ;;  %2616 = vmax.xlane.f32.xlu0 %v5404_v31 }
 0x84b   :  { %v2040_v19 = vpop.xlane.xlu1 %2039 }
 0x84c   :  { %3965 = vrcp.f32 %v2040_v19  ;;  %2618 = vmax.xlane.f32.xlu1 %v5412_v14  ;;  %2620 = vmax.xlane.f32.xlu0 %v5414_v27  ;;  %v2429_v19 = vld [vmem:[#allocation2 + $0x1d0] sm:$0xff] }
 0x84d   :  { %v2042_v49 = vpop.xlane.xlu0 %2041  ;;  %v5430_v45 = vadd.f32 %v3638_v39, %v2429_v19  ;;  %v5444_v39 = vadd.f32 %v3642_v30, %v2433_v13 }
 0x84e   :  { %3967 = vrcp.f32 %v2042_v49  ;;  %v3643_v49 = vpop.f32.mrf.mxu0 }
 0x84f   :  { %v5450_v20 = vadd.f32 %v3643_v49, %v2434_v15 }
 0x850   :  { %2622 = vmax.xlane.f32.xlu1 %v5420_v41  ;;  %2624 = vmax.xlane.f32.xlu0 %v5418_v10  ;;  %v2600_v57 = vpop.f32.mrf.mxu0 }
 0x851   :  { %v5446_v19 = vadd.f32 %v2600_v57, %v2432_v59 }
 0x853   :  { %v2052_v2 = vpop.xlane.xlu0 %2051 }
 0x854   :  { %2626 = vmax.xlane.f32.xlu1 %v5424_v34  ;;  %2628 = vmax.xlane.f32.xlu0 %v5426_v0 }
 0x858   :  { %2630 = vmax.xlane.f32.xlu1 %v5432_v16  ;;  %2632 = vmax.xlane.f32.xlu0 %v5430_v45  ;;  %v2048_v23 = vpop.xlane.xlu0 %2047 }
 0x859   :  { %v3966_v40 = vpop.eup %3965 }
 0x85a   :  { %v2087_v28 = vmul.f32 %v3966_v40, %v5342_v63  ;;  %v2046_v63 = vpop.xlane.xlu1 %2045  ;;  %v530_v40 = vld [vmem:[%s5940_s6 + $0xc] sm:$0xf] }
 0x85b   :  { %v3968_v5 = vpop.eup %3967  ;;  %3969 = vrcp.f32 %v2046_v63 }
 0x85c   :  { %2634 = vmax.xlane.f32.xlu1 %v5436_v60  ;;  %2636 = vmax.xlane.f32.xlu0 %v5438_v6  ;;  %v2088_v21 = vmul.f32 %v3968_v5, %v5346_v22  ;;  %v2054_v59 = vpop.xlane.xlu0 %2053 }
 0x85e   :  { %v2103_v50 = vpack.c.bf16 %v2088_v21, %v2087_v28  ;;  %v2050_v22 = vpop.xlane.xlu1 %2049 }
 0x85f   :  { %3971 = vrcp.f32 %v2050_v22 }
 0x860   :  { %2638 = vmax.xlane.f32.xlu1 %v5446_v19  ;;  %2640 = vmax.xlane.f32.xlu0 %v5444_v39  ;;  %v2060_v57 = vpop.xlane.xlu0 %2059  ;;  %3973 = vrcp.f32 %v2048_v23  ;;  %v5472_v23 = vld [vmem:[%s5940_s6 + $0x10] sm:$0xf] }
 0x861   :  { %3578 = vmatprep.mubr.bf16.mxu1 %v2103_v50  ;;  %3975 = vrcp.f32 %v5410_v33  ;;  %v3175_v15 = vcombine.low %v530_v40, %v5472_v23 }
 0x862   :  { %3977 = vrcp.f32 %v2054_v59 }
 0x864   :  { %2642 = vmax.xlane.f32.xlu1 %v5450_v20  ;;  %v2056_v13 = vpop.xlane.xlu0 %2055 }
 0x865   :  { %3979 = vrcp.f32 %v2056_v13 }
 0x866   :  { %3981 = vrcp.f32 %v2052_v2 }
 0x868   :  { %v3970_v30 = vpop.eup %3969 }
 0x869   :  { %v2090_v50 = vmul.f32 %v3970_v30, %v5350_v46  ;;  %v2303_v46 = vsel %vm1529_vm2, %v3175_v15, 0 }
 0x875   :  { %2776 = vrot.lane.b32.xlu1 %v5990_v62, %s4112_s13  ;;  %v2062_v62 = vpop.xlane.xlu0 %2061 }
 0x876   :  { %2778 = vrot.lane.b32.xlu0 %v5012_v58, %s4112_s13 }
 0x879   :  { %2770 = vrot.lane.b32.xlu1 %v5997_v18, %s4112_s13  ;;  %v2068_v58 = vpop.xlane.xlu0 %2067 }
 0x87a   :  { %2774 = vrot.lane.b32.xlu0 %v5994_v1, %s4112_s13  ;;  %v2058_v1 = vpop.xlane.xlu1 %2057 }
 0x87b   :  { %3983 = vrcp.f32 %v2058_v1 }
 0x87c   :  { %3985 = vrcp.f32 %v2062_v62 }
 0x87d   :  { %2768 = vrot.lane.b32.xlu1 %v6007_v38, %s4112_s13  ;;  %v2064_v18 = vpop.xlane.xlu0 %2063 }
 0x87e   :  { %2772 = vrot.lane.b32.xlu0 %v5996_v9, %s4112_s13  ;;  %v3972_v9 = vpop.eup %3971 }
 0x87f   :  { %v3974_v33 = vpop.eup %3973  ;;  %v2092_v13 = vmul.f32 %v3972_v9, %v5358_v26 }
 0x880   :  { %v3976_v5 = vpop.eup %3975  ;;  %v2091_v59 = vmul.f32 %v3974_v33, %v5361_v36 }
 0x881   :  { %v2089_v63 = vmul.f32 %v3976_v5, %v5338_v47  ;;  %v3978_v22 = vpop.eup %3977 }
 0x882   :  { %v2105_v1 = vpack.c.bf16 %v2092_v13, %v2091_v59  ;;  %v3980_v30 = vpop.eup %3979  ;;  %v2094_v26 = vmul.f32 %v3978_v22, %v5367_v29 }
 0x883   :  { %v2104_v62 = vpack.c.bf16 %v2090_v50, %v2089_v63  ;;  %v2095_v47 = vmul.f32 %v3980_v30, %v5376_v17 }
 0x898   :  { %v2070_v38 = vpop.xlane.xlu0 %2069 }
 0x89c   :  { %v2066_v49 = vpop.xlane.xlu1 %2065  ;;  %v2120_v28 = vpop.permute.xlu0 %2119 }
 0x89d   :  { %3987 = vrcp.f32 %v2066_v49  ;;  %v3982_v49 = vpop.eup %3981 }
 0x89e   :  { %3989 = vrcp.f32 %v2060_v57  ;;  %v3984_v36 = vpop.eup %3983  ;;  %v2093_v57 = vmul.f32 %v3982_v49, %v5355_v4 }
 0x89f   :  { %3991 = vrcp.f32 %v2064_v18  ;;  %v2096_v18 = vmul.f32 %v3984_v36, %v5370_v55  ;;  %v3986_v40 = vpop.eup %3985 }
 0x8a0   :  { %v2122_v21 = vpop.permute.xlu1 %2121  ;;  %3993 = vrcp.f32 %v2070_v38  ;;  %v2106_v9 = vpack.c.bf16 %v2094_v26, %v2093_v57  ;;  %v2098_v50 = vmul.f32 %v3986_v40, %v5379_v53 }
 0x8a1   :  { %v2152_v2 = vsel %vm2151_vm3, %v2120_v28, %v2122_v21  ;;  %3995 = vrcp.f32 %v2068_v58  ;;  %v2107_v33 = vpack.c.bf16 %v2096_v18, %v2095_v47 }
 0x8a2   :  { %3576 = vmatprep.subr.bf16.mxu1 %v2152_v2 }
 0x8a3   :  { %3577 = vmatpush3.bf16.msra.mxu1 %v2152_v2 }
 0x8a4   :  { %3736 = vmatprep.subr.msk.bf16.mxu1 %vm1529_vm2, %v3175_v15 }
 0x8a6   :  { %3579 = vmatmul.mubr.bf16.vlgmr.msra.gmra.mxu1 %v2104_v62 }
 0x8a7   :  { %3582 = vmatprep.mubr.bf16.mxu1 %v2105_v1  ;;  %3595 = vmatpush3.bf16.msra.mxu1 %v2303_v46 }
 0x8aa   :  { %v3988_v5 = vpop.eup %3987 }
 0x8ab   :  { %v3990_v28 = vpop.eup %3989  ;;  %v2100_v38 = vmul.f32 %v3988_v5, %v5394_v54 }
 0x8ac   :  { %v3992_v21 = vpop.eup %3991  ;;  %v2097_v29 = vmul.f32 %v3990_v28, %v5372_v35 }
 0x8ad   :  { %v2099_v17 = vmul.f32 %v3992_v21, %v5385_v51  ;;  %v3994_v4 = vpop.eup %3993 }
 0x8ae   :  { %3583 = vmatmul.mubr.bf16.gmra.mxu1 %v2106_v9  ;;  %v2108_v58 = vpack.c.bf16 %v2098_v50, %v2097_v29  ;;  %v3996_v55 = vpop.eup %3995  ;;  %v2102_v2 = vmul.f32 %v3994_v4, %v5391_v12 }
 0x8af   :  { %3586 = vmatprep.mubr.bf16.mxu1 %v2107_v33  ;;  %v2109_v15 = vpack.c.bf16 %v2100_v38, %v2099_v17  ;;  %v2101_v59 = vmul.f32 %v3996_v55, %v5382_v56 }
 0x8b1   :  { %v2110_v13 = vpack.c.bf16 %v2102_v2, %v2101_v59 }
 0x8b6   :  { %3587 = vmatmul.mubr.bf16.gmra.mxu1 %v2108_v58 }
 0x8b7   :  { %3590 = vmatprep.mubr.bf16.mxu1 %v2109_v15 }
 0x8be   :  { %3591 = vmatmul.mubr.bf16.gmra.mxu1 %v2110_v13 }
 0x8cd   :  { %v2615_v63 = vpop.xlane.xlu0 %2614 }
 0x8ce   :  { %v2645_v56 = vsub.f32 %v5401_v37, %v2615_v63 }
 0x8d0   :  { %v2662_v18 = vmul.f32 1.442695, %v2645_v56 }
 0x8d1   :  { %v2613_v53 = vpop.xlane.xlu1 %2612  ;;  %v2617_v62 = vpop.xlane.xlu0 %2616 }
 0x8d2   :  { %v2646_v54 = vsub.f32 %v5404_v31, %v2617_v62  ;;  %v2644_v35 = vsub.f32 %v5406_v52, %v2613_v53 }
 0x8d4   :  { %v2664_v51 = vmul.f32 1.442695, %v2646_v54  ;;  %v2660_v30 = vmul.f32 1.442695, %v2644_v35 }
 0x8d5   :  { %v2619_v46 = vpop.xlane.xlu1 %2618  ;;  %v2621_v22 = vpop.xlane.xlu0 %2620 }
 0x8d6   :  { %v2647_v1 = vsub.f32 %v5412_v14, %v2619_v46  ;;  %3997 = vpow2.f32 %v2664_v51  ;;  %v2648_v47 = vsub.f32 %v5414_v27, %v2621_v22 }
 0x8d7   :  { %3999 = vpow2.f32 %v2660_v30 }
 0x8d8   :  { %v2666_v36 = vmul.f32 1.442695, %v2647_v1  ;;  %v2668_v14 = vmul.f32 1.442695, %v2648_v47 }
 0x8d9   :  { %v2623_v49 = vpop.xlane.xlu1 %2622  ;;  %v2625_v12 = vpop.xlane.xlu0 %2624 }
 0x8da   :  { %v2650_v26 = vsub.f32 %v5418_v10, %v2625_v12  ;;  %4001 = vpow2.f32 %v2666_v36  ;;  %v2649_v9 = vsub.f32 %v5420_v41, %v2623_v49 }
 0x8dc   :  { %v2672_v31 = vmul.f32 1.442695, %v2650_v26  ;;  %v2670_v37 = vmul.f32 1.442695, %v2649_v9  ;;  %v5582_v9 = vpop.f32.mrf.mxu1 }
 0x8dd   :  { %v2627_v57 = vpop.xlane.xlu1 %2626  ;;  %v2629_v52 = vpop.xlane.xlu0 %2628 }
 0x8de   :  { %4003 = vpow2.f32 %v2672_v31  ;;  %v2651_v40 = vsub.f32 %v5424_v34, %v2627_v57  ;;  %v2652_v10 = vsub.f32 %v5426_v0, %v2629_v52 }
 0x8df   :  { %4005 = vpow2.f32 %v2662_v18 }
 0x8e0   :  { %4007 = vpow2.f32 %v2668_v14  ;;  %v2674_v28 = vmul.f32 1.442695, %v2651_v40  ;;  %v2676_v38 = vmul.f32 1.442695, %v2652_v10 }
 0x8e1   :  { %v2631_v33 = vpop.xlane.xlu1 %2630  ;;  %v2633_v5 = vpop.xlane.xlu0 %2632  ;;  %4009 = vpow2.f32 %v2670_v37 }
 0x8e2   :  { %v2654_v27 = vsub.f32 %v5430_v45, %v2633_v5  ;;  %4011 = vpow2.f32 %v2674_v28  ;;  %v2653_v45 = vsub.f32 %v5432_v16, %v2631_v33 }
 0x8e3   :  { %v5502_v21 = vpop.eup %3997  ;;  %4013 = vpow2.f32 %v2676_v38 }
 0x8e4   :  { %2696 = vadd.xlane.f32.xlu1 %v5502_v21  ;;  %v2680_v29 = vmul.f32 1.442695, %v2654_v27  ;;  %v5506_v17 = vpop.eup %3999  ;;  %v2678_v53 = vmul.f32 1.442695, %v2653_v45 }
 0x8e5   :  { %v2635_v50 = vpop.xlane.xlu1 %2634  ;;  %v2637_v41 = vpop.xlane.xlu0 %2636 }
 0x8e6   :  { %v2655_v34 = vsub.f32 %v5436_v60, %v2635_v50  ;;  %4015 = vpow2.f32 %v2680_v29  ;;  %v2656_v2 = vsub.f32 %v5438_v6, %v2637_v41 }
 0x8e7   :  { %v5511_v55 = vpop.eup %4001 }
 0x8e8   :  { %2692 = vadd.xlane.f32.xlu1 %v5506_v17  ;;  %v2682_v4 = vmul.f32 1.442695, %v2655_v34 }
 0x8e9   :  { %v2639_v0 = vpop.xlane.xlu1 %2638  ;;  %v2641_v58 = vpop.xlane.xlu0 %2640 }
 0x8ea   :  { %v2658_v15 = vsub.f32 %v5444_v39, %v2641_v58  ;;  %4017 = vpow2.f32 %v2682_v4  ;;  %v2684_v39 = vmul.f32 1.442695, %v2656_v2  ;;  %v2657_v47 = vsub.f32 %v5446_v19, %v2639_v0 }
 0x8eb   :  { %v5514_v60 = vpop.eup %4003 }
 0x8ec   :  { %v2688_v59 = vmul.f32 1.442695, %v2658_v15  ;;  %2698 = vadd.xlane.f32.xlu1 %v5511_v55  ;;  %2704 = vadd.xlane.f32.xlu0 %v5514_v60  ;;  %v5522_v16 = vpop.eup %4005  ;;  %v2686_v31 = vmul.f32 1.442695, %v2657_v47 }
 0x8ed   :  { %v2643_v13 = vpop.xlane.xlu1 %2642  ;;  %v5518_v63 = vpop.permute.xlu0 %2778 }
 0x8ee   :  { %3644 = vmatprep.subr.bf16.mxu0 %v5518_v63  ;;  %3694 = vmatprep.subr.bf16.mxu1 %v5518_v63  ;;  %4019 = vpow2.f32 %v2688_v59  ;;  %v5525_v6 = vpop.eup %4007  ;;  %v2659_v57 = vsub.f32 %v5450_v20, %v2643_v13 }
 0x8ef   :  { %3645 = vmatpush3.bf16.msra.mxu0 %v5518_v63  ;;  %4021 = vpow2.f32 %v2678_v53  ;;  %v5534_v35 = vpop.eup %4009 }
 0x8f0   :  { %2694 = vadd.xlane.f32.xlu1 %v5522_v16  ;;  %2700 = vadd.xlane.f32.xlu0 %v5525_v6  ;;  %4023 = vpow2.f32 %v2684_v39  ;;  %v5537_v51 = vpop.eup %4011  ;;  %v2690_v52 = vmul.f32 1.442695, %v2659_v57 }
 0x8f1   :  { %v5529_v62 = vpop.permute.xlu1 %2776  ;;  %v5531_v54 = vpop.permute.xlu0 %2774  ;;  %4025 = vpow2.f32 %v2686_v31 }
 0x8f2   :  { %3646 = vmatprep.subr.bf16.mxu0 %v5529_v62  ;;  %v5542_v46 = vpop.eup %4013  ;;  %4027 = vpow2.f32 %v2690_v52 }
 0x8f3   :  { %3647 = vmatpush3.bf16.msra.mxu0 %v5529_v62  ;;  %v5547_v1 = vpop.eup %4015 }
 0x8f4   :  { %3648 = vmatprep.subr.bf16.mxu0 %v5531_v54  ;;  %2702 = vadd.xlane.f32.xlu1 %v5534_v35 }
 0x8f5   :  { %2706 = vadd.xlane.f32.xlu0 %v5537_v51  ;;  %v5544_v22 = vpop.permute.xlu0 %2772  ;;  %v5550_v30 = vpop.permute.xlu1 %2770 }
 0x8f7   :  { %3649 = vmatpush3.bf16.msra.mxu0 %v5531_v54  ;;  %v5554_v49 = vpop.eup %4017 }
 0x8f8   :  { %3650 = vmatprep.subr.bf16.mxu0 %v5544_v22  ;;  %2708 = vadd.xlane.f32.xlu1 %v5542_v46 }
 0x8f9   :  { %2712 = vadd.xlane.f32.xlu0 %v5547_v1  ;;  %v5564_v36 = vpop.permute.xlu1 %2768 }
 0x8fb   :  { %3651 = vmatpush3.bf16.msra.mxu0 %v5544_v22  ;;  %v5557_v12 = vpop.eup %4019 }
 0x8fc   :  { %3652 = vmatprep.subr.bf16.mxu0 %v5550_v30  ;;  %2720 = vadd.xlane.f32.xlu1 %v5557_v12  ;;  %v5562_v56 = vpop.eup %4021 }
 0x8fd   :  { %2714 = vadd.xlane.f32.xlu0 %v5554_v49  ;;  %v5567_v26 = vpop.eup %4023 }
 0x8fe   :  { %v5579_v18 = vpop.eup %4025 }
 0x8ff   :  { %3653 = vmatpush3.bf16.msra.mxu0 %v5550_v30  ;;  %v5584_v14 = vpop.eup %4027 }
 0x900   :  { %3654 = vmatprep.subr.bf16.mxu0 %v5564_v36  ;;  %2716 = vadd.xlane.f32.xlu1 %v5567_v26 }
 0x901   :  { %2710 = vadd.xlane.f32.xlu0 %v5562_v56 }
 0x903   :  { %3655 = vmatpush3.bf16.msra.mxu0 %v5564_v36 }
 0x911   :  { %2764 = vrot.lane.b32.xlu1 %v6009_v25, %s4112_s13  ;;  %v5587_v25 = vpop.f32.mrf.mxu1 }
 0x917   :  { %2766 = vrot.lane.b32.xlu0 %v6008_v42, %s4112_s13  ;;  %v5589_v42 = vpop.f32.mrf.mxu1 }
 0x919   :  { %v5591_v19 = vpop.f32.mrf.mxu1 }
 0x91b   :  { %v5593_v20 = vpop.f32.mrf.mxu1 }
 0x91d   :  { %v5595_v40 = vpop.f32.mrf.mxu1 }
 0x91f   :  { %v5597_v33 = vpop.f32.mrf.mxu1 }
 0x921   :  { %v5599_v5 = vpop.f32.mrf.mxu1 }
 0x923   :  { %v5601_v37 = vpop.f32.mrf.mxu1 }
 0x925   :  { %v5603_v10 = vpop.f32.mrf.mxu1 }
 0x927   :  { %v5605_v28 = vpop.f32.mrf.mxu1 }
 0x929   :  { %v5607_v27 = vpop.f32.mrf.mxu1 }
 0x936   :  { %2718 = vadd.xlane.f32.xlu0 %v5579_v18 }
 0x93a   :  { %2722 = vadd.xlane.f32.xlu0 %v5584_v14 }
 0x966   :  { %v3580_v50 = vpop.f32.mrf.mxu1 }
 0x968   :  { %v2202_v41 = vpop.f32.mrf.mxu1 }
 0x96a   :  { %v3581_v38 = vpop.f32.mrf.mxu1 }
 0x96b   :  { %v2266_v0 = vpack.c.bf16 %v3581_v38, %v3580_v50 }
 0x96c   :  { %v2205_v34 = vpop.f32.mrf.mxu1 }
 0x96d   :  { %v2265_v29 = vpack.c.bf16 %v2205_v34, %v2202_v41  ;;  %v2697_v58 = vpop.xlane.xlu1 %2696 }
 0x96e   :  { %v3584_v45 = vpop.f32.mrf.mxu1 }
 0x96f   :  { %3596 = vmatprep.mubr.msk.bf16.mxu1 %vm589_vm1, %v2265_v29 }
 0x970   :  { %v2218_v4 = vpop.f32.mrf.mxu1  ;;  %3597 = vmatmul.mubr.msk.bf16.vlgmr.msra.gmra.mxu1 %vm589_vm1, %v2266_v0 }
 0x971   :  { %3702 = vmatpush3.bf16.msra.mxu1 %v5518_v63  ;;  %v2693_v15 = vpop.xlane.xlu1 %2692 }
 0x972   :  { %3695 = vmatprep.subr.bf16.mxu1 %v5529_v62  ;;  %v3585_v2 = vpop.f32.mrf.mxu1  ;;  %4029 = vrcp.f32 %v2693_v15 }
 0x973   :  { %v2268_v53 = vpack.c.bf16 %v3585_v2, %v3584_v45 }
 0x974   :  { %v2221_v59 = vpop.f32.mrf.mxu1 }
 0x975   :  { %v2267_v13 = vpack.c.bf16 %v2221_v59, %v2218_v4  ;;  %3703 = vmatpush3.bf16.msra.mxu1 %v5529_v62  ;;  %v2699_v39 = vpop.xlane.xlu1 %2698  ;;  %v2705_v47 = vpop.xlane.xlu0 %2704 }
 0x976   :  { %3696 = vmatprep.subr.bf16.mxu1 %v5531_v54  ;;  %v3588_v31 = vpop.f32.mrf.mxu1 }
 0x977   :  { %3600 = vmatprep.mubr.msk.bf16.mxu1 %vm589_vm1, %v2267_v13 }
 0x978   :  { %3601 = vmatmul.mubr.msk.bf16.gmra.mxu1 %vm589_vm1, %v2268_v53  ;;  %v2234_v63 = vpop.f32.mrf.mxu1 }
 0x979   :  { %3704 = vmatpush3.bf16.msra.mxu1 %v5531_v54  ;;  %v2695_v57 = vpop.xlane.xlu1 %2694  ;;  %v2701_v52 = vpop.xlane.xlu0 %2700 }
 0x97a   :  { %3697 = vmatprep.subr.bf16.mxu1 %v5544_v22  ;;  %4031 = vrcp.f32 %v2695_v57  ;;  %v3589_v62 = vpop.f32.mrf.mxu1 }
 0x97b   :  { %4033 = vrcp.f32 %v2701_v52  ;;  %v2270_v29 = vpack.c.bf16 %v3589_v62, %v3588_v31 }
 0x97c   :  { %v2237_v50 = vpop.f32.mrf.mxu1 }
 0x97d   :  { %3705 = vmatpush3.bf16.msra.mxu1 %v5544_v22  ;;  %v2269_v41 = vpack.c.bf16 %v2237_v50, %v2234_v63  ;;  %v2703_v38 = vpop.xlane.xlu1 %2702 }
 0x97e   :  { %3698 = vmatprep.subr.bf16.mxu1 %v5550_v30  ;;  %v2707_v34 = vpop.xlane.xlu0 %2706  ;;  %4035 = vrcp.f32 %v2703_v38  ;;  %v3592_v0 = vpop.f32.mrf.mxu1 }
 0x97f   :  { %4037 = vrcp.f32 %v2699_v39  ;;  %3604 = vmatprep.mubr.msk.bf16.mxu1 %vm589_vm1, %v2269_v41  ;;  %v4030_v2 = vpop.eup %4029 }
 0x980   :  { %4039 = vrcp.f32 %v2707_v34  ;;  %v2250_v54 = vpop.f32.mrf.mxu1  ;;  %3605 = vmatmul.mubr.msk.bf16.gmra.mxu1 %vm589_vm1, %v2270_v29 }
 0x981   :  { %4041 = vrcp.f32 %v2697_v58  ;;  %3706 = vmatpush3.bf16.msra.mxu1 %v5550_v30  ;;  %v2709_v45 = vpop.xlane.xlu1 %2708  ;;  %v2740_v30 = vmul.f32 %v4030_v2, %v5506_v17 }
 0x982   :  { %v2713_v22 = vpop.xlane.xlu0 %2712  ;;  %4043 = vrcp.f32 %v2705_v47  ;;  %3699 = vmatprep.subr.bf16.mxu1 %v5564_v36  ;;  %v3593_v4 = vpop.f32.mrf.mxu1 }
 0x983   :  { %v2272_v39 = vpack.c.bf16 %v3593_v4, %v3592_v0 }
 0x984   :  { %v2253_v15 = vpop.f32.mrf.mxu1 }
 0x985   :  { %v2271_v59 = vpack.c.bf16 %v2253_v15, %v2250_v54  ;;  %3707 = vmatpush3.bf16.msra.mxu1 %v5564_v36  ;;  %v2721_v13 = vpop.xlane.xlu1 %2720 }
 0x986   :  { %v2715_v53 = vpop.xlane.xlu0 %2714 }
 0x987   :  { %v4032_v31 = vpop.eup %4031  ;;  %3608 = vmatprep.mubr.msk.bf16.mxu1 %vm589_vm1, %v2271_v59  ;;  %4045 = vrcp.f32 %v2715_v53 }
 0x988   :  { %3609 = vmatmul.mubr.msk.bf16.gmra.mxu1 %vm589_vm1, %v2272_v39  ;;  %v2741_v58 = vmul.f32 %v4032_v31, %v5522_v16  ;;  %v4034_v47 = vpop.eup %4033  ;;  %4047 = vrcp.f32 %v2709_v45 }
 0x989   :  { %v2717_v63 = vpop.xlane.xlu1 %2716  ;;  %4049 = vrcp.f32 %v2713_v22  ;;  %v2744_v50 = vmul.f32 %v4034_v47, %v5525_v6 }
 0x98a   :  { %v2711_v57 = vpop.xlane.xlu0 %2710  ;;  %v2756_v52 = vpack.c.bf16 %v2741_v58, %v2740_v30 }
 0x98b   :  { %v4036_v36 = vpop.eup %4035  ;;  %4051 = vrcp.f32 %v2711_v57 }
 0x98c   :  { %v4038_v62 = vpop.eup %4037  ;;  %3660 = vmatprep.mubr.bf16.mxu0 %v2756_v52  ;;  %v2745_v41 = vmul.f32 %v4036_v36, %v5534_v35  ;;  %4053 = vrcp.f32 %v2717_v63 }
 0x98d   :  { %v4040_v38 = vpop.eup %4039  ;;  %v2765_v0 = vpop.permute.xlu1 %2764  ;;  %v2743_v54 = vmul.f32 %v4038_v62, %v5511_v55 }
 0x98e   :  { %v2767_v34 = vpop.permute.xlu0 %2766  ;;  %v4042_v29 = vpop.eup %4041  ;;  %v2758_v17 = vpack.c.bf16 %v2745_v41, %v2744_v50  ;;  %v2747_v45 = vmul.f32 %v4040_v38, %v5537_v51 }
 0x98f   :  { %3656 = vmatprep.subr.bf16.mxu0 %v2767_v34  ;;  %3700 = vmatprep.subr.bf16.mxu1 %v2767_v34  ;;  %v4044_v16 = vpop.eup %4043  ;;  %v2742_v6 = vmul.f32 %v4042_v29, %v5502_v21  ;;  %v1706_v29 = vadd.f32 %v5243_v61, %v5247_v8  ;;  %v1722_v61 = vadd.f32 %v5589_v42, %v5255_v7  ;;  %v6013_v42 = vld [vmem:[#allocation5_spill] sm:$0xff] }
 0x990   :  { %3657 = vmatpush3.bf16.msra.mxu0 %v2767_v34  ;;  %3708 = vmatpush3.bf16.msra.mxu1 %v2767_v34  ;;  %v2746_v35 = vmul.f32 %v4044_v16, %v5514_v60 }
 0x991   :  { %3658 = vmatprep.subr.bf16.mxu0 %v2765_v0  ;;  %3701 = vmatprep.subr.bf16.mxu1 %v2765_v0  ;;  %v2757_v22 = vpack.c.bf16 %v2743_v54, %v2742_v6  ;;  %v1719_v54 = vadd.f32 %v5582_v9, %v5251_v43 }
 0x992   :  { %3664 = vmatprep.mubr.bf16.mxu1 %v2758_v17  ;;  %v2759_v4 = vpack.c.bf16 %v2747_v45, %v2746_v35  ;;  %v6010_v35 = vld [vmem:[#allocation14_spill] sm:$0xff] }
 0x994   :  { %3659 = vmatpush3.bf16.msra.mxu0 %v2765_v0  ;;  %3709 = vmatpush3.bf16.msra.mxu1 %v2765_v0  ;;  %v4046_v15 = vpop.eup %4045 }
 0x995   :  { %v4048_v2 = vpop.eup %4047  ;;  %v2751_v55 = vmul.f32 %v4046_v15, %v5554_v49  ;;  %v6012_v15 = vld [vmem:[#allocation15_spill] sm:$0xff] }
 0x996   :  { %v4050_v59 = vpop.eup %4049  ;;  %v2748_v39 = vmul.f32 %v4048_v2, %v5542_v46  ;;  %v1727_v2 = vadd.f32 %v5595_v40, %v6012_v15 }
 0x997   :  { %3661 = vmatmul.mubr.bf16.vlgmr.msra.gmra.mxu0 %v2757_v22  ;;  %3665 = vmatmul.mubr.bf16.vlgmr.msra.gmra.mxu1 %v2759_v4  ;;  %v2750_v21 = vmul.f32 %v4050_v59, %v5547_v1  ;;  %v1714_v22 = vadd.f32 %v5591_v19, %v6010_v35  ;;  %v6011_v4 = vld [vmem:[#allocation16_spill] sm:$0xff] }
 0x998   :  { %v4052_v53 = vpop.eup %4051 }
 0x999   :  { %v2749_v51 = vmul.f32 %v4052_v53, %v5562_v56  ;;  %v2761_v60 = vpack.c.bf16 %v2751_v55, %v2750_v21  ;;  %v4054_v47 = vpop.eup %4053  ;;  %v1738_v53 = vadd.f32 %v5597_v33, %v6013_v42 }
 0x99a   :  { %v2752_v49 = vmul.f32 %v4054_v47, %v5567_v26 }
 0x99b   :  { %v2760_v31 = vpack.c.bf16 %v2749_v51, %v2748_v39  ;;  %v6014_v39 = vld [vmem:[#allocation13_spill] sm:$0xff] }
 0x99c   :  { %v1730_v51 = vadd.f32 %v5599_v5, %v6014_v39 }
 0x99d   :  { %3668 = vmatprep.mubr.bf16.mxu1 %v2760_v31 }
 0x99f   :  { %3669 = vmatmul.mubr.bf16.gmra.mxu1 %v2761_v60 }
 0x9bf   :  { %v2719_v30 = vpop.xlane.xlu0 %2718 }
 0x9c0   :  { %4055 = vrcp.f32 %v2719_v30 }
 0x9c1   :  { %4057 = vrcp.f32 %v2721_v13  ;;  %v532_v13 = vld [vmem:[%s5940_s6 + $0x14] sm:$0xf] }
 0x9c2   :  { %v3192_v50 = vcombine.low %v5472_v23, %v532_v13 }
 0x9c3   :  { %v2723_v58 = vpop.xlane.xlu0 %2722 }
 0x9c4   :  { %4059 = vrcp.f32 %v2723_v58  ;;  %v2896_v41 = vrot.slane %v3192_v50, 2  ;;  %v6016_v58 = vld [vmem:[#allocation22_spill] sm:$0xff] }
 0x9c5   :  { %v1743_v47 = vadd.f32 %v5603_v10, %v6016_v58 }
 0x9c6   :  { %3745 = vmatprep.subr.msk.bf16.mxu1 %vm1529_vm2, %v2896_v41  ;;  %v2922_v26 = vsel %vm1529_vm2, %v2896_v41, 0 }
 0x9c7   :  { %3677 = vmatpush3.bf16.msra.mxu1 %v2922_v26 }
 0x9cd   :  { %v4056_v57 = vpop.eup %4055 }
 0x9ce   :  { %v2753_v46 = vmul.f32 %v4056_v57, %v5579_v18  ;;  %v4058_v52 = vpop.eup %4057  ;;  %v1703_v18 = vadd.f32 %v5237_v11, %v5241_v24 }
 0x9cf   :  { %v2754_v1 = vmul.f32 %v4058_v52, %v5557_v12 }
 0x9d0   :  { %v2762_v56 = vpack.c.bf16 %v2753_v46, %v2752_v49  ;;  %v6017_v49 = vld [vmem:[#allocation12_spill] sm:$0xff] }
 0x9d1   :  { %v4060_v36 = vpop.eup %4059  ;;  %v1754_v46 = vadd.f32 %v5605_v28, %v6017_v49  ;;  %v4064_v49 = vld [vmem:[%s5934_s0 + $0x8] sm:$0xff] }
 0x9d2   :  { %3672 = vmatprep.mubr.bf16.mxu1 %v2762_v56  ;;  %v2755_v62 = vmul.f32 %v4060_v36, %v5584_v14  ;;  %v1695_v14 = vadd.f32 %v5239_v32, %v5245_v44  ;;  %v1711_v32 = vadd.f32 %v5587_v25, %v5253_v3  ;;  %v1735_v3 = vadd.f32 %v5593_v20, %v6011_v4  ;;  %v6015_v20 = vld [vmem:[#allocation18_spill] sm:$0xff]  ;;  %v6018_v56 = vld [vmem:[#allocation17_spill] sm:$0xff] }
 0x9d3   :  { %v1751_v60 = vadd.f32 %v5601_v37, %v6015_v20  ;;  %v1746_v36 = vadd.f32 %v5607_v27, %v6018_v56 }
 0x9d4   :  { %v2763_v63 = vpack.c.bf16 %v2755_v62, %v2754_v1 }
 0x9d6   :  { %3673 = vmatmul.mubr.bf16.gmra.mxu1 %v2763_v63 }
 0xa30   :  { %v3598_v12 = vpop.f32.mrf.mxu1 }
 0xa31   :  { %v5654_v38 = vadd.f32 %v3598_v12, %v1703_v18 }
 0xa32   :  { %v2339_v34 = vpop.f32.mrf.mxu1 }
 0xa33   :  { %v5658_v23 = vadd.f32 %v2339_v34, %v1695_v14 }
 0xa34   :  { %v3599_v17 = vpop.f32.mrf.mxu1 }
 0xa35   :  { %v5660_v16 = vadd.f32 %v3599_v17, %v1706_v29 }
 0xa36   :  { %v2342_v0 = vpop.f32.mrf.mxu1 }
 0xa37   :  { %v5665_v11 = vadd.f32 %v2342_v0, %v5249_v48 }
 0xa38   :  { %v3602_v24 = vpop.f32.mrf.mxu1 }
 0xa39   :  { %v5669_v44 = vadd.f32 %v3602_v24, %v1719_v54 }
 0xa3a   :  { %v2355_v45 = vpop.f32.mrf.mxu1 }
 0xa3b   :  { %v5673_v8 = vadd.f32 %v2355_v45, %v1711_v32 }
 0xa3c   :  { %v3603_v6 = vpop.f32.mrf.mxu1 }
 0xa3d   :  { %v5677_v43 = vadd.f32 %v3603_v6, %v1722_v61 }
 0xa3e   :  { %v2358_v48 = vpop.f32.mrf.mxu1 }
 0xa3f   :  { %v5679_v9 = vadd.f32 %v2358_v48, %v1714_v22 }
 0xa40   :  { %v3606_v25 = vpop.f32.mrf.mxu1 }
 0xa41   :  { %v5685_v59 = vadd.f32 %v3606_v25, %v1735_v3  ;;  %v5724_v3 = vld [vmem:[%s5941_s7] ss:$0 sm:$0xff] }
 0xa42   :  { %v2371_v7 = vpop.f32.mrf.mxu1 }
 0xa43   :  { %v5689_v55 = vadd.f32 %v2371_v7, %v1727_v2 }
 0xa44   :  { %v3607_v19 = vpop.f32.mrf.mxu1 }
 0xa45   :  { %v5693_v21 = vadd.f32 %v3607_v19, %v1738_v53  ;;  %v4061_v53 = vld [vmem:[%s5934_s0 + $0x10] sm:$0xff] }
 0xa46   :  { %v2374_v31 = vpop.f32.mrf.mxu1 }
 0xa47   :  { %v5697_v30 = vadd.f32 %v2374_v31, %v1730_v51 }
 0xa48   :  { %v3610_v40 = vpop.f32.mrf.mxu1 }
 0xa49   :  { %v5701_v57 = vadd.f32 %v3610_v40, %v1751_v60  ;;  %v4063_v40 = vld [vmem:[%s5934_s0 + $0x18] sm:$0xff] }
 0xa4a   :  { %v2387_v33 = vpop.f32.mrf.mxu1 }
 0xa4b   :  { %v5705_v52 = vadd.f32 %v2387_v33, %v1743_v47 }
 0xa4c   :  { %v3611_v5 = vpop.f32.mrf.mxu1 }
 0xa4d   :  { %v5709_v1 = vadd.f32 %v3611_v5, %v1754_v46 }
 0xa4e   :  { %v2390_v37 = vpop.f32.mrf.mxu1 }
 0xa4f   :  { %v5711_v62 = vadd.f32 %v2390_v37, %v1746_v36  ;;  %v4065_v36 = vld [vmem:[%s5934_s0 + $0x30] sm:$0xff] }
 0xa57   :  { %v3662_v63 = vpop.f32.mrf.mxu0  ;;  %v3666_v13 = vpop.f32.mrf.mxu1 }
 0xa59   :  { %v2822_v10 = vpop.f32.mrf.mxu0  ;;  %v2838_v50 = vpop.f32.mrf.mxu1 }
 0xa5b   :  { %v3663_v41 = vpop.f32.mrf.mxu0  ;;  %v3667_v26 = vpop.f32.mrf.mxu1 }
 0xa5c   :  { %v2886_v14 = vpack.c.bf16 %v3663_v41, %v3662_v63  ;;  %v2888_v54 = vpack.c.bf16 %v3667_v26, %v3666_v13 }
 0xa5d   :  { %v2825_v18 = vpop.f32.mrf.mxu0  ;;  %v2841_v12 = vpop.f32.mrf.mxu1 }
 0xa5e   :  { %v2885_v28 = vpack.c.bf16 %v2825_v18, %v2822_v10  ;;  %v2887_v29 = vpack.c.bf16 %v2841_v12, %v2838_v50  ;;  %v4066_v10 = vld [vmem:[%s5934_s0 + $0x20] sm:$0xff]  ;;  %v4067_v18 = vld [vmem:[%s5934_s0 + $0x38] sm:$0xff] }
 0xa5f   :  { %v3670_v34 = vpop.f32.mrf.mxu1 }
 0xa60   :  { %3678 = vmatprep.mubr.msk.bf16.mxu1 %vm589_vm1, %v2885_v28 }
 0xa61   :  { %v2854_v27 = vpop.f32.mrf.mxu1  ;;  %3679 = vmatmul.mubr.msk.bf16.vlgmr.msra.gmra.mxu1 %vm589_vm1, %v2886_v14 }
 0xa62   :  { %3682 = vmatprep.mubr.msk.bf16.mxu1 %vm589_vm1, %v2887_v29 }
 0xa63   :  { %v3671_v17 = vpop.f32.mrf.mxu1 }
 0xa64   :  { %v2890_v32 = vpack.c.bf16 %v3671_v17, %v3670_v34  ;;  %v4068_v34 = vld [vmem:[%s5934_s0 + $0x28] sm:$0xff] }
 0xa65   :  { %v2857_v0 = vpop.f32.mrf.mxu1 }
 0xa66   :  { %v2889_v24 = vpack.c.bf16 %v2857_v0, %v2854_v27  ;;  %v4069_v0 = vld [vmem:[%s5934_s0 + $0x50] sm:$0xff] }
 0xa69   :  { %3683 = vmatmul.mubr.msk.bf16.gmra.mxu1 %vm589_vm1, %v2888_v54 }
 0xa6a   :  { %3686 = vmatprep.mubr.msk.bf16.mxu1 %vm589_vm1, %v2889_v24 }
 0xa71   :  { %3687 = vmatmul.mubr.msk.bf16.gmra.mxu1 %vm589_vm1, %v2890_v32 }
 0xa96   :  { %v3674_v45 = vpop.f32.mrf.mxu1 }
 0xa98   :  { %v2870_v61 = vpop.f32.mrf.mxu1 }
 0xa9a   :  { %v3675_v6 = vpop.f32.mrf.mxu1 }
 0xa9b   :  { %v2892_v48 = vpack.c.bf16 %v3675_v6, %v3674_v45  ;;  %v4070_v45 = vld [vmem:[%s5934_s0 + $0x40] sm:$0xff] }
 0xa9c   :  { %v2873_v35 = vpop.f32.mrf.mxu1 }
 0xa9d   :  { %v2891_v22 = vpack.c.bf16 %v2873_v35, %v2870_v61  ;;  %v4071_v35 = vld [vmem:[%s5934_s0 + $0x58] sm:$0xff] }
 0xa9f   :  { %3690 = vmatprep.mubr.msk.bf16.mxu1 %vm589_vm1, %v2891_v22 }
 0xaa0   :  { %3691 = vmatmul.mubr.msk.bf16.gmra.mxu1 %vm589_vm1, %v2892_v48 }
 0xb21   :  { %v3680_v4 = vpop.f32.mrf.mxu1 }
 0xb22   :  { %v3023_v25 = vadd.f32 %v3680_v4, %v5654_v38 }
 0xb23   :  { %v2958_v15 = vpop.f32.mrf.mxu1 }
 0xb24   :  { %v3046_v2 = vadd.f32 %v5724_v3, %v3023_v25  ;;  %v3021_v7 = vadd.f32 %v2958_v15, %v5658_v23  ;;  %v4062_v23 = vld [vmem:[%s5934_s0] sm:$0xff] }
 0xb25   :  { %v3681_v42 = vpop.f32.mrf.mxu1 }
 0xb26   :  { %3062 = vst.msk [vmem:[%s5942_s8 + $0x10] sm:$0xff] %vm64_vm0, %v3046_v2  ;;  %v3078_v19 = vadd.f32 %v4061_v53, %v3046_v2  ;;  %v3044_v39 = vadd.f32 %v5724_v3, %v3021_v7  ;;  %v3024_v38 = vadd.f32 %v3681_v42, %v5660_v16 }
 0xb27   :  { %v2961_v51 = vpop.f32.mrf.mxu1 }
 0xb28   :  { %3094 = vst.msk [vmem:[%s5943_s9 + $0x10] sm:$0xff] %vm64_vm0, %v3078_v19  ;;  %3060 = vst.msk [vmem:[%s5942_s8] sm:$0xff] %vm64_vm0, %v3044_v39  ;;  %v3076_v31 = vadd.f32 %v4062_v23, %v3044_v39  ;;  %v3047_v20 = vadd.f32 %v5724_v3, %v3024_v38  ;;  %v3022_v16 = vadd.f32 %v2961_v51, %v5665_v11  ;;  %v4073_v19 = vld [vmem:[%s5934_s0 + $0x70] sm:$0xff] }
 0xb29   :  { %v3684_v60 = vpop.f32.mrf.mxu1 }
 0xb2a   :  { %3092 = vst.msk [vmem:[%s5943_s9] sm:$0xff] %vm64_vm0, %v3076_v31  ;;  %3063 = vst.msk [vmem:[%s5942_s8 + $0x18] sm:$0xff] %vm64_vm0, %v3047_v20  ;;  %v3079_v58 = vadd.f32 %v4063_v40, %v3047_v20  ;;  %v3045_v47 = vadd.f32 %v5724_v3, %v3022_v16  ;;  %v3027_v11 = vadd.f32 %v3684_v60, %v5669_v44  ;;  %v4075_v20 = vld [vmem:[%s5934_s0 + $0x78] sm:$0xff] }
 0xb2b   :  { %v2974_v33 = vpop.f32.mrf.mxu1 }
 0xb2c   :  { %3095 = vst.msk [vmem:[%s5943_s9 + $0x18] sm:$0xff] %vm64_vm0, %v3079_v58  ;;  %3061 = vst.msk [vmem:[%s5942_s8 + $0x8] sm:$0xff] %vm64_vm0, %v3045_v47  ;;  %v3077_v46 = vadd.f32 %v4064_v49, %v3045_v47  ;;  %v3050_v5 = vadd.f32 %v5724_v3, %v3027_v11  ;;  %v3025_v44 = vadd.f32 %v2974_v33, %v5673_v8 }
 0xb2d   :  { %v3685_v56 = vpop.f32.mrf.mxu1 }
 0xb2e   :  { %3093 = vst.msk [vmem:[%s5943_s9 + $0x8] sm:$0xff] %vm64_vm0, %v3077_v46  ;;  %3066 = vst.msk [vmem:[%s5942_s8 + $0x30] sm:$0xff] %vm64_vm0, %v3050_v5  ;;  %v3082_v37 = vadd.f32 %v4065_v36, %v3050_v5  ;;  %v3048_v63 = vadd.f32 %v5724_v3, %v3025_v44  ;;  %v3028_v8 = vadd.f32 %v3685_v56, %v5677_v43 }
 0xb2f   :  { %v2977_v13 = vpop.f32.mrf.mxu1 }
 0xb30   :  { %3098 = vst.msk [vmem:[%s5943_s9 + $0x30] sm:$0xff] %vm64_vm0, %v3082_v37  ;;  %3064 = vst.msk [vmem:[%s5942_s8 + $0x20] sm:$0xff] %vm64_vm0, %v3048_v63  ;;  %v3080_v50 = vadd.f32 %v4066_v10, %v3048_v63  ;;  %v3051_v41 = vadd.f32 %v5724_v3, %v3028_v8  ;;  %v3026_v43 = vadd.f32 %v2977_v13, %v5679_v9 }
 0xb31   :  { %v3688_v26 = vpop.f32.mrf.mxu1 }
 0xb32   :  { %3096 = vst.msk [vmem:[%s5943_s9 + $0x20] sm:$0xff] %vm64_vm0, %v3080_v50  ;;  %3067 = vst.msk [vmem:[%s5942_s8 + $0x38] sm:$0xff] %vm64_vm0, %v3051_v41  ;;  %v3083_v12 = vadd.f32 %v4067_v18, %v3051_v41  ;;  %v3049_v28 = vadd.f32 %v5724_v3, %v3026_v43  ;;  %v3031_v9 = vadd.f32 %v3688_v26, %v5685_v59 }
 0xb33   :  { %v2990_v14 = vpop.f32.mrf.mxu1 }
 0xb34   :  { %3099 = vst.msk [vmem:[%s5943_s9 + $0x38] sm:$0xff] %vm64_vm0, %v3083_v12  ;;  %3065 = vst.msk [vmem:[%s5942_s8 + $0x28] sm:$0xff] %vm64_vm0, %v3049_v28  ;;  %v3081_v29 = vadd.f32 %v4068_v34, %v3049_v28  ;;  %v3054_v27 = vadd.f32 %v5724_v3, %v3031_v9  ;;  %v3029_v59 = vadd.f32 %v2990_v14, %v5689_v55 }
 0xb35   :  { %v3689_v17 = vpop.f32.mrf.mxu1 }
 0xb36   :  { %3097 = vst.msk [vmem:[%s5943_s9 + $0x28] sm:$0xff] %vm64_vm0, %v3081_v29  ;;  %3070 = vst.msk [vmem:[%s5942_s8 + $0x50] sm:$0xff] %vm64_vm0, %v3054_v27  ;;  %v3086_v54 = vadd.f32 %v4069_v0, %v3054_v27  ;;  %v3052_v24 = vadd.f32 %v5724_v3, %v3029_v59  ;;  %v3032_v55 = vadd.f32 %v3689_v17, %v5693_v21 }
 0xb37   :  { %v2993_v32 = vpop.f32.mrf.mxu1 }
 0xb38   :  { %3102 = vst.msk [vmem:[%s5943_s9 + $0x50] sm:$0xff] %vm64_vm0, %v3086_v54  ;;  %3068 = vst.msk [vmem:[%s5942_s8 + $0x40] sm:$0xff] %vm64_vm0, %v3052_v24  ;;  %v3084_v61 = vadd.f32 %v4070_v45, %v3052_v24  ;;  %v3055_v6 = vadd.f32 %v5724_v3, %v3032_v55  ;;  %v3030_v21 = vadd.f32 %v2993_v32, %v5697_v30  ;;  %v4072_v30 = vld [vmem:[%s5934_s0 + $0x48] sm:$0xff] }
 0xb3a   :  { %3100 = vst.msk [vmem:[%s5943_s9 + $0x40] sm:$0xff] %vm64_vm0, %v3084_v61  ;;  %3071 = vst.msk [vmem:[%s5942_s8 + $0x58] sm:$0xff] %vm64_vm0, %v3055_v6  ;;  %v3087_v22 = vadd.f32 %v4071_v35, %v3055_v6  ;;  %v3053_v48 = vadd.f32 %v5724_v3, %v3030_v21 }
 0xb3c   :  { %3103 = vst.msk [vmem:[%s5943_s9 + $0x58] sm:$0xff] %vm64_vm0, %v3087_v22  ;;  %3069 = vst.msk [vmem:[%s5942_s8 + $0x48] sm:$0xff] %vm64_vm0, %v3053_v48  ;;  %v3085_v4 = vadd.f32 %v4072_v30, %v3053_v48 }
 0xb3e   :  { %3101 = vst.msk [vmem:[%s5943_s9 + $0x48] sm:$0xff] %vm64_vm0, %v3085_v4 }
 0xb60   :  { %v3692_v25 = vpop.f32.mrf.mxu1 }
 0xb61   :  { %v3035_v15 = vadd.f32 %v3692_v25, %v5701_v57 }
 0xb62   :  { %v3006_v2 = vpop.f32.mrf.mxu1 }
 0xb63   :  { %v3058_v7 = vadd.f32 %v5724_v3, %v3035_v15  ;;  %v3033_v42 = vadd.f32 %v3006_v2, %v5705_v52  ;;  %v4074_v52 = vld [vmem:[%s5934_s0 + $0x60] sm:$0xff] }
 0xb64   :  { %v3693_v53 = vpop.f32.mrf.mxu1 }
 0xb65   :  { %3074 = vst.msk [vmem:[%s5942_s8 + $0x70] sm:$0xff] %vm64_vm0, %v3058_v7  ;;  %v3090_v39 = vadd.f32 %v4073_v19, %v3058_v7  ;;  %v3056_v38 = vadd.f32 %v5724_v3, %v3033_v42  ;;  %v3036_v57 = vadd.f32 %v3693_v53, %v5709_v1 }
 0xb66   :  { %v3009_v51 = vpop.f32.mrf.mxu1 }
 0xb67   :  { %3106 = vst.msk [vmem:[%s5943_s9 + $0x70] sm:$0xff] %vm64_vm0, %v3090_v39  ;;  %3072 = vst.msk [vmem:[%s5942_s8 + $0x60] sm:$0xff] %vm64_vm0, %v3056_v38  ;;  %v3088_v23 = vadd.f32 %v4074_v52, %v3056_v38  ;;  %v3059_v31 = vadd.f32 %v5724_v3, %v3036_v57  ;;  %v3034_v1 = vadd.f32 %v3009_v51, %v5711_v62  ;;  %v4076_v62 = vld [vmem:[%s5934_s0 + $0x68] sm:$0xff] }
 0xb69   :  { %3104 = vst.msk [vmem:[%s5943_s9 + $0x60] sm:$0xff] %vm64_vm0, %v3088_v23  ;;  %3075 = vst.msk [vmem:[%s5942_s8 + $0x78] sm:$0xff] %vm64_vm0, %v3059_v31  ;;  %v3091_v16 = vadd.f32 %v4075_v20, %v3059_v31  ;;  %v3057_v60 = vadd.f32 %v5724_v3, %v3034_v1 }
 0xb6b   :  { %3107 = vst.msk [vmem:[%s5943_s9 + $0x78] sm:$0xff] %vm64_vm0, %v3091_v16  ;;  %3073 = vst.msk [vmem:[%s5942_s8 + $0x68] sm:$0xff] %vm64_vm0, %v3057_v60  ;;  %v3089_v40 = vadd.f32 %v4076_v62, %v3057_v60 }
 0xb6d   :  { %3105 = vst.msk [vmem:[%s5943_s9 + $0x68] sm:$0xff] %vm64_vm0, %v3089_v40 }
 0xb6e   :  { %3116 = vsyncpa [#allocation3], 1 }

</bundles_post_ra>
